<compile_context>
chip_gen: v5e
topology: v5e:2x2
jax: 0.10.0
libtpu: 0.0.40
codegen_flags: <defaults>
</compile_context>

<pallas_src>
import jax
import jax.numpy as jnp
from jax.experimental import pallas as pl
from jax.experimental.pallas import tpu as pltpu

EPS = 1e-5
# Tap order matches the HWIO kernel flattening: t = dy*3 + dx, offset = (dy-1, dx-1).
_OFFSETS = [(oy, ox) for oy in (-1, 0, 1) for ox in (-1, 0, 1)]


# ---------------------------------------------------------------------------
# In-kernel helpers (pure value ops, all VMEM resident, channel-major)
# ---------------------------------------------------------------------------
def _conv3x3_cm(x_cm, w_cols, masks, *, img_w, pad):
    """3x3 SAME conv in channel-major layout via 9 shifted lane-dense taps.

    x_cm   : (Cin, R)         R = N*H*W (lane-dense, R % 128 == 0)
    w_cols : (9*Cin, Cout, 1) per-(tap, cin) output-channel weight columns
    masks  : (9, 1, R) f32    zero-padding masks (0 where a tap leaves the image)
    Returns (Cout, R) f32.  Pure VPU broadcast-FMAs; no MXU, no im2col matrix.
    """
    cin, r = x_cm.shape
    cout = w_cols.shape[1]
    zeros = jnp.zeros((cin, pad), x_cm.dtype)
    # Zero-extend along lanes once so every shifted window is a full-length slice.
    xe = jnp.concatenate([zeros, x_cm, zeros], axis=1)          # (Cin, R + 2*pad)

    acc = jnp.zeros((cout, r), jnp.float32)
    for t, (oy, ox) in enumerate(_OFFSETS):
        d = oy * img_w + ox                                     # flat-index shift
        if d == 0:
            tap = x_cm                                          # centre tap: no shift/mask
        else:
            tap = xe[:, pad + d:pad + d + r] * masks[t]         # shifted + zero-padded
        for ci in range(cin):
            # (Cout, 1) * (1, R) broadcast-FMA on the VPU (lane-dense rows).
            acc = acc + w_cols[t * cin + ci] * tap[ci:ci + 1, :]
    return acc


def _bn_relu_cm(y, gamma, beta, inv_r, *, relu):
    """Training-mode BatchNorm over the R axis (one-pass sum/sumsq stats)."""
    s = jnp.sum(y, axis=1, keepdims=True)
    ss = jnp.sum(y * y, axis=1, keepdims=True)
    mean = s * inv_r
    var = ss * inv_r - mean * mean                              # E[y^2] - E[y]^2
    y = (y - mean) * jax.lax.rsqrt(var + EPS) * gamma + beta
    return jnp.maximum(y, 0.0) if relu else y


def _make_residual_kernel(n, h, w):
    r = n * h * w
    pad = w + 1               # max |flat tap shift| = W + 1
    inv_r = 1.0 / r

    def kernel(x_ref, mask_ref, w1_ref, g1_ref, b1_ref,
               w2_ref, g2_ref, b2_ref, o_ref):
        x = x_ref[...]        # (C, R) channel-major input; also the skip operand
        masks = mask_ref[...]  # (9, 1, R)
        w1 = w1_ref[...]      # (9*C, C, 1)
        w2 = w2_ref[...]

        # conv1 -> bn1 -> relu (all channel-major, lane-dense)
        y = _conv3x3_cm(x, w1, masks, img_w=w, pad=pad)
        y = _bn_relu_cm(y, g1_ref[...], b1_ref[...], inv_r, relu=True)

        # conv2 -> bn2 (masks re-used: they ARE the zero padding, no re-pad needed)
        y = _conv3x3_cm(y, w2, masks, img_w=w, pad=pad)
        y = _bn_relu_cm(y, g2_ref[...], b2_ref[...], inv_r, relu=False)

        # identity skip + relu; lane-dense (C, R) store (R multiple of 128).
        o_ref[...] = jnp.maximum(y + x, 0.0)

    return kernel


# ---------------------------------------------------------------------------
# Wrapper
# ---------------------------------------------------------------------------
def _full_spec(shape):
    # Whole-array block on the trivial grid.
    return pl.BlockSpec(shape, lambda i: (0,) * len(shape))


def _pad_masks(n, h, w):
    """(9, 1, R) f32 validity masks for the 9 taps (zero-padding pattern)."""
    hh = jnp.arange(h).reshape(1, h, 1)
    ww = jnp.arange(w).reshape(1, 1, w)
    ms = []
    for oy, ox in _OFFSETS:
        valid = ((hh + oy >= 0) & (hh + oy < h) & (ww + ox >= 0) & (ww + ox < w))
        ms.append(jnp.broadcast_to(valid, (n, h, w)).reshape(1, n * h * w))
    return jnp.stack(ms, axis=0).astype(jnp.float32)


@jax.jit
def residual_forward(x_nchw, w1, g1, be1, w2, g2, be2):
    """x: (N,C,H,W); w1/w2: (3,3,C,C) HWIO; g*/be*: (C,). Returns NCHW."""
    x_nchw = x_nchw.astype(jnp.float32)
    n, c, h, w = x_nchw.shape
    cout = w1.shape[-1]
    assert cout == c, "identity-skip path requires in_channels == out_channels"
    r = n * h * w

    # Layout plumbing stays at the boundary (single leading-axes transpose each way).
    x_cm = jnp.transpose(x_nchw, (1, 0, 2, 3)).reshape(c, r)          # (C, R)
    w1c = w1.astype(jnp.float32).reshape(9 * c, cout)[:, :, None]     # (9*Cin, Cout, 1)
    w2c = w2.astype(jnp.float32).reshape(9 * cout, cout)[:, :, None]
    g1r, b1r = g1.reshape(cout, 1), be1.reshape(cout, 1)
    g2r, b2r = g2.reshape(cout, 1), be2.reshape(cout, 1)
    masks = _pad_masks(n, h, w)                                        # (9, 1, R)

    out_cm = pl.pallas_call(
        _make_residual_kernel(n, h, w),
        grid=(1,),
        in_specs=[_full_spec(x_cm.shape), _full_spec(masks.shape),
                  _full_spec(w1c.shape), _full_spec(g1r.shape), _full_spec(b1r.shape),
                  _full_spec(w2c.shape), _full_spec(g2r.shape), _full_spec(b2r.shape)],
        out_specs=_full_spec((cout, r)),
        out_shape=jax.ShapeDtypeStruct((cout, r), jnp.float32),
        compiler_params=pltpu.CompilerParams(dimension_semantics=("arbitrary",)),
    )(x_cm, masks, w1c, g1r, b1r, w2c, g2r, b2r)

    # (C, N*H*W) -> NCHW
    return jnp.transpose(out_cm.reshape(cout, n, h, w), (1, 0, 2, 3))


# ---------------------------------------------------------------------------
# Pure-XLA reference (mirrors the PyTorch module, conv biases INCLUDED)
# ---------------------------------------------------------------------------
def residual_reference(x_nchw, w1, cb1, g1, be1, w2, cb2, g2, be2):
    x = jnp.transpose(x_nchw.astype(jnp.float32), (0, 2, 3, 1))       # NHWC
    dn = ("NHWC", "HWIO", "NHWC")

    def conv(inp, wt, b):
        y = jax.lax.conv_general_dilated(inp, wt, (1, 1), "SAME",
                                         dimension_numbers=dn)
        return y + b.reshape(1, 1, 1, -1)

    def bn(y, g, be):
        m = jnp.mean(y, axis=(0, 1, 2), keepdims=True)
        v = jnp.mean(jnp.square(y - m), axis=(0, 1, 2), keepdims=True)
        return (y - m) * jax.lax.rsqrt(v + EPS) * g.reshape(1, 1, 1, -1) \
            + be.reshape(1, 1, 1, -1)

    y = jax.nn.relu(bn(conv(x, w1, cb1), g1, be1))
    y = bn(conv(y, w2, cb2), g2, be2)
    return jnp.transpose(jax.nn.relu(y + x), (0, 3, 1, 2))


# ---------------------------------------------------------------------------
# Main
# ---------------------------------------------------------------------------
if __name__ == "__main__":
    N, C, H, W = 2, 4, 16, 16

    key = jax.random.PRNGKey(0)
    kx, k1, k2, kb1, kb2, kg1, kg2, kbe1, kbe2 = jax.random.split(key, 9)

    x = jax.random.normal(kx, (N, C, H, W), jnp.float32)

    bound = 1.0 / (9 * C) ** 0.5
    # Conv weights in HWIO layout (3, 3, Cin, Cout).
    w1 = jax.random.uniform(k1, (3, 3, C, C), jnp.float32, -bound, bound)
    w2 = jax.random.uniform(k2, (3, 3, C, C), jnp.float32, -bound, bound)
    # Conv biases: used by the reference only; training-mode BN cancels them
    # exactly, so the Pallas kernel does not take them.
    cb1 = jax.random.uniform(kb1, (C,), jnp.float32, -bound, bound)
    cb2 = jax.random.uniform(kb2, (C,), jnp.float32, -bound, bound)
    # BatchNorm affine params (non-trivial values to exercise scale/shift).
    g1 = 1.0 + 0.1 * jax.random.normal(kg1, (C,), jnp.float32)
    g2 = 1.0 + 0.1 * jax.random.normal(kg2, (C,), jnp.float32)
    be1 = 0.1 * jax.random.normal(kbe1, (C,), jnp.float32)
    be2 = 0.1 * jax.random.normal(kbe2, (C,), jnp.float32)

    out = residual_forward(x, w1, g1, be1, w2, g2, be2)
    out = jax.block_until_ready(out)

    ref = residual_reference(x, w1, cb1, g1, be1, w2, cb2, g2, be2)
    assert out.shape == (N, C, H, W)
    assert jnp.allclose(out, ref, atol=1e-4, rtol=1e-4), "mismatch vs reference"

    print("KERNEL_OK")
</pallas_src>

<mosaic_0001>
module attributes {stable_mosaic.version = 11 : i64} {
  func.func @kernel(%arg0: i32, %arg1: memref<4x512xf32, #tpu.memory_space<vmem>>, %arg2: memref<9x1x512xf32, #tpu.memory_space<vmem>>, %arg3: memref<36x4x1xf32, #tpu.memory_space<vmem>>, %arg4: memref<4x1xf32, #tpu.memory_space<vmem>>, %arg5: memref<4x1xf32, #tpu.memory_space<vmem>>, %arg6: memref<36x4x1xf32, #tpu.memory_space<vmem>>, %arg7: memref<4x1xf32, #tpu.memory_space<vmem>>, %arg8: memref<4x1xf32, #tpu.memory_space<vmem>>, %arg9: memref<4x512xf32, #tpu.memory_space<vmem>>) attributes {dimension_semantics = [#tpu.dimension_semantics<arbitrary>], iteration_bounds = array<i64: 1>, scalar_prefetch = 0 : i64, scratch_operands = 0 : i64, tpu.core_type = #tpu.core_type<tc>, window_params = [{pipeline_mode = #tpu.pipeline_mode<synchronous>, transform_indices = @transform_0, window_bounds = array<i64: 4, 512>}, {pipeline_mode = #tpu.pipeline_mode<synchronous>, transform_indices = @transform_1, window_bounds = array<i64: 9, 1, 512>}, {pipeline_mode = #tpu.pipeline_mode<synchronous>, transform_indices = @transform_2, window_bounds = array<i64: 36, 4, 1>}, {pipeline_mode = #tpu.pipeline_mode<synchronous>, transform_indices = @transform_3, window_bounds = array<i64: 4, 1>}, {pipeline_mode = #tpu.pipeline_mode<synchronous>, transform_indices = @transform_4, window_bounds = array<i64: 4, 1>}, {pipeline_mode = #tpu.pipeline_mode<synchronous>, transform_indices = @transform_5, window_bounds = array<i64: 36, 4, 1>}, {pipeline_mode = #tpu.pipeline_mode<synchronous>, transform_indices = @transform_6, window_bounds = array<i64: 4, 1>}, {pipeline_mode = #tpu.pipeline_mode<synchronous>, transform_indices = @transform_7, window_bounds = array<i64: 4, 1>}, {pipeline_mode = #tpu.pipeline_mode<synchronous>, transform_indices = @transform_8, window_bounds = array<i64: 4, 512>}]} {
    %c0 = arith.constant 0 : index
    %c0_0 = arith.constant 0 : index
    %0 = vector.load %arg1[%c0, %c0_0] : memref<4x512xf32, #tpu.memory_space<vmem>>, vector<4x512xf32>
    %c0_1 = arith.constant 0 : index
    %c0_2 = arith.constant 0 : index
    %c0_3 = arith.constant 0 : index
    %1 = vector.load %arg2[%c0_1, %c0_2, %c0_3] : memref<9x1x512xf32, #tpu.memory_space<vmem>>, vector<9x1x512xf32>
    %c0_4 = arith.constant 0 : index
    %c0_5 = arith.constant 0 : index
    %c0_6 = arith.constant 0 : index
    %2 = vector.load %arg3[%c0_4, %c0_5, %c0_6] : memref<36x4x1xf32, #tpu.memory_space<vmem>>, vector<36x4x1xf32>
    %c0_7 = arith.constant 0 : index
    %c0_8 = arith.constant 0 : index
    %c0_9 = arith.constant 0 : index
    %3 = vector.load %arg6[%c0_7, %c0_8, %c0_9] : memref<36x4x1xf32, #tpu.memory_space<vmem>>, vector<36x4x1xf32>
    %cst = arith.constant 0.000000e+00 : f32
    %4 = vector.broadcast %cst : f32 to vector<4x17xf32>
    %5 = tpu.concatenate %4, %0, %4 in 1 : vector<4x17xf32>, vector<4x512xf32>, vector<4x17xf32> -> vector<4x546xf32>
    %cst_10 = arith.constant 0.000000e+00 : f32
    %6 = vector.broadcast %cst_10 : f32 to vector<4x512xf32>
    %7 = vector.extract_strided_slice %5 {offsets = [0, 0], sizes = [4, 512], strides = [1, 1]} : vector<4x546xf32> to vector<4x512xf32>
    %8 = vector.extract_strided_slice %1 {offsets = [0, 0, 0], sizes = [1, 1, 512], strides = [1, 1, 1]} : vector<9x1x512xf32> to vector<1x1x512xf32>
    %9 = vector.shape_cast %8 : vector<1x1x512xf32> to vector<1x512xf32>
    %10 = vector.broadcast %9 : vector<1x512xf32> to vector<4x512xf32>
    %11 = arith.mulf %7, %10 : vector<4x512xf32>
    %12 = vector.extract_strided_slice %2 {offsets = [0, 0, 0], sizes = [1, 4, 1], strides = [1, 1, 1]} : vector<36x4x1xf32> to vector<1x4x1xf32>
    %13 = vector.shape_cast %12 : vector<1x4x1xf32> to vector<4x1xf32>
    %14 = vector.extract_strided_slice %11 {offsets = [0, 0], sizes = [1, 512], strides = [1, 1]} : vector<4x512xf32> to vector<1x512xf32>
    %15 = vector.broadcast %13 : vector<4x1xf32> to vector<4x512xf32>
    %16 = vector.broadcast %14 : vector<1x512xf32> to vector<4x512xf32>
    %17 = arith.mulf %15, %16 : vector<4x512xf32>
    %18 = arith.addf %6, %17 : vector<4x512xf32>
    %19 = vector.extract_strided_slice %2 {offsets = [1, 0, 0], sizes = [1, 4, 1], strides = [1, 1, 1]} : vector<36x4x1xf32> to vector<1x4x1xf32>
    %20 = vector.shape_cast %19 : vector<1x4x1xf32> to vector<4x1xf32>
    %21 = vector.extract_strided_slice %11 {offsets = [1, 0], sizes = [1, 512], strides = [1, 1]} : vector<4x512xf32> to vector<1x512xf32>
    %22 = vector.broadcast %20 : vector<4x1xf32> to vector<4x512xf32>
    %23 = vector.broadcast %21 : vector<1x512xf32> to vector<4x512xf32>
    %24 = arith.mulf %22, %23 : vector<4x512xf32>
    %25 = arith.addf %18, %24 : vector<4x512xf32>
    %26 = vector.extract_strided_slice %2 {offsets = [2, 0, 0], sizes = [1, 4, 1], strides = [1, 1, 1]} : vector<36x4x1xf32> to vector<1x4x1xf32>
    %27 = vector.shape_cast %26 : vector<1x4x1xf32> to vector<4x1xf32>
    %28 = vector.extract_strided_slice %11 {offsets = [2, 0], sizes = [1, 512], strides = [1, 1]} : vector<4x512xf32> to vector<1x512xf32>
    %29 = vector.broadcast %27 : vector<4x1xf32> to vector<4x512xf32>
    %30 = vector.broadcast %28 : vector<1x512xf32> to vector<4x512xf32>
    %31 = arith.mulf %29, %30 : vector<4x512xf32>
    %32 = arith.addf %25, %31 : vector<4x512xf32>
    %33 = vector.extract_strided_slice %2 {offsets = [3, 0, 0], sizes = [1, 4, 1], strides = [1, 1, 1]} : vector<36x4x1xf32> to vector<1x4x1xf32>
    %34 = vector.shape_cast %33 : vector<1x4x1xf32> to vector<4x1xf32>
    %35 = vector.extract_strided_slice %11 {offsets = [3, 0], sizes = [1, 512], strides = [1, 1]} : vector<4x512xf32> to vector<1x512xf32>
    %36 = vector.broadcast %34 : vector<4x1xf32> to vector<4x512xf32>
    %37 = vector.broadcast %35 : vector<1x512xf32> to vector<4x512xf32>
    %38 = arith.mulf %36, %37 : vector<4x512xf32>
    %39 = arith.addf %32, %38 : vector<4x512xf32>
    %40 = vector.extract_strided_slice %5 {offsets = [0, 1], sizes = [4, 512], strides = [1, 1]} : vector<4x546xf32> to vector<4x512xf32>
    %41 = vector.extract_strided_slice %1 {offsets = [1, 0, 0], sizes = [1, 1, 512], strides = [1, 1, 1]} : vector<9x1x512xf32> to vector<1x1x512xf32>
    %42 = vector.shape_cast %41 : vector<1x1x512xf32> to vector<1x512xf32>
    %43 = vector.broadcast %42 : vector<1x512xf32> to vector<4x512xf32>
    %44 = arith.mulf %40, %43 : vector<4x512xf32>
    %45 = vector.extract_strided_slice %2 {offsets = [4, 0, 0], sizes = [1, 4, 1], strides = [1, 1, 1]} : vector<36x4x1xf32> to vector<1x4x1xf32>
    %46 = vector.shape_cast %45 : vector<1x4x1xf32> to vector<4x1xf32>
    %47 = vector.extract_strided_slice %44 {offsets = [0, 0], sizes = [1, 512], strides = [1, 1]} : vector<4x512xf32> to vector<1x512xf32>
    %48 = vector.broadcast %46 : vector<4x1xf32> to vector<4x512xf32>
    %49 = vector.broadcast %47 : vector<1x512xf32> to vector<4x512xf32>
    %50 = arith.mulf %48, %49 : vector<4x512xf32>
    %51 = arith.addf %39, %50 : vector<4x512xf32>
    %52 = vector.extract_strided_slice %2 {offsets = [5, 0, 0], sizes = [1, 4, 1], strides = [1, 1, 1]} : vector<36x4x1xf32> to vector<1x4x1xf32>
    %53 = vector.shape_cast %52 : vector<1x4x1xf32> to vector<4x1xf32>
    %54 = vector.extract_strided_slice %44 {offsets = [1, 0], sizes = [1, 512], strides = [1, 1]} : vector<4x512xf32> to vector<1x512xf32>
    %55 = vector.broadcast %53 : vector<4x1xf32> to vector<4x512xf32>
    %56 = vector.broadcast %54 : vector<1x512xf32> to vector<4x512xf32>
    %57 = arith.mulf %55, %56 : vector<4x512xf32>
    %58 = arith.addf %51, %57 : vector<4x512xf32>
    %59 = vector.extract_strided_slice %2 {offsets = [6, 0, 0], sizes = [1, 4, 1], strides = [1, 1, 1]} : vector<36x4x1xf32> to vector<1x4x1xf32>
    %60 = vector.shape_cast %59 : vector<1x4x1xf32> to vector<4x1xf32>
    %61 = vector.extract_strided_slice %44 {offsets = [2, 0], sizes = [1, 512], strides = [1, 1]} : vector<4x512xf32> to vector<1x512xf32>
    %62 = vector.broadcast %60 : vector<4x1xf32> to vector<4x512xf32>
    %63 = vector.broadcast %61 : vector<1x512xf32> to vector<4x512xf32>
    %64 = arith.mulf %62, %63 : vector<4x512xf32>
    %65 = arith.addf %58, %64 : vector<4x512xf32>
    %66 = vector.extract_strided_slice %2 {offsets = [7, 0, 0], sizes = [1, 4, 1], strides = [1, 1, 1]} : vector<36x4x1xf32> to vector<1x4x1xf32>
    %67 = vector.shape_cast %66 : vector<1x4x1xf32> to vector<4x1xf32>
    %68 = vector.extract_strided_slice %44 {offsets = [3, 0], sizes = [1, 512], strides = [1, 1]} : vector<4x512xf32> to vector<1x512xf32>
    %69 = vector.broadcast %67 : vector<4x1xf32> to vector<4x512xf32>
    %70 = vector.broadcast %68 : vector<1x512xf32> to vector<4x512xf32>
    %71 = arith.mulf %69, %70 : vector<4x512xf32>
    %72 = arith.addf %65, %71 : vector<4x512xf32>
    %73 = vector.extract_strided_slice %5 {offsets = [0, 2], sizes = [4, 512], strides = [1, 1]} : vector<4x546xf32> to vector<4x512xf32>
    %74 = vector.extract_strided_slice %1 {offsets = [2, 0, 0], sizes = [1, 1, 512], strides = [1, 1, 1]} : vector<9x1x512xf32> to vector<1x1x512xf32>
    %75 = vector.shape_cast %74 : vector<1x1x512xf32> to vector<1x512xf32>
    %76 = vector.broadcast %75 : vector<1x512xf32> to vector<4x512xf32>
    %77 = arith.mulf %73, %76 : vector<4x512xf32>
    %78 = vector.extract_strided_slice %2 {offsets = [8, 0, 0], sizes = [1, 4, 1], strides = [1, 1, 1]} : vector<36x4x1xf32> to vector<1x4x1xf32>
    %79 = vector.shape_cast %78 : vector<1x4x1xf32> to vector<4x1xf32>
    %80 = vector.extract_strided_slice %77 {offsets = [0, 0], sizes = [1, 512], strides = [1, 1]} : vector<4x512xf32> to vector<1x512xf32>
    %81 = vector.broadcast %79 : vector<4x1xf32> to vector<4x512xf32>
    %82 = vector.broadcast %80 : vector<1x512xf32> to vector<4x512xf32>
    %83 = arith.mulf %81, %82 : vector<4x512xf32>
    %84 = arith.addf %72, %83 : vector<4x512xf32>
    %85 = vector.extract_strided_slice %2 {offsets = [9, 0, 0], sizes = [1, 4, 1], strides = [1, 1, 1]} : vector<36x4x1xf32> to vector<1x4x1xf32>
    %86 = vector.shape_cast %85 : vector<1x4x1xf32> to vector<4x1xf32>
    %87 = vector.extract_strided_slice %77 {offsets = [1, 0], sizes = [1, 512], strides = [1, 1]} : vector<4x512xf32> to vector<1x512xf32>
    %88 = vector.broadcast %86 : vector<4x1xf32> to vector<4x512xf32>
    %89 = vector.broadcast %87 : vector<1x512xf32> to vector<4x512xf32>
    %90 = arith.mulf %88, %89 : vector<4x512xf32>
    %91 = arith.addf %84, %90 : vector<4x512xf32>
    %92 = vector.extract_strided_slice %2 {offsets = [10, 0, 0], sizes = [1, 4, 1], strides = [1, 1, 1]} : vector<36x4x1xf32> to vector<1x4x1xf32>
    %93 = vector.shape_cast %92 : vector<1x4x1xf32> to vector<4x1xf32>
    %94 = vector.extract_strided_slice %77 {offsets = [2, 0], sizes = [1, 512], strides = [1, 1]} : vector<4x512xf32> to vector<1x512xf32>
    %95 = vector.broadcast %93 : vector<4x1xf32> to vector<4x512xf32>
    %96 = vector.broadcast %94 : vector<1x512xf32> to vector<4x512xf32>
    %97 = arith.mulf %95, %96 : vector<4x512xf32>
    %98 = arith.addf %91, %97 : vector<4x512xf32>
    %99 = vector.extract_strided_slice %2 {offsets = [11, 0, 0], sizes = [1, 4, 1], strides = [1, 1, 1]} : vector<36x4x1xf32> to vector<1x4x1xf32>
    %100 = vector.shape_cast %99 : vector<1x4x1xf32> to vector<4x1xf32>
    %101 = vector.extract_strided_slice %77 {offsets = [3, 0], sizes = [1, 512], strides = [1, 1]} : vector<4x512xf32> to vector<1x512xf32>
    %102 = vector.broadcast %100 : vector<4x1xf32> to vector<4x512xf32>
    %103 = vector.broadcast %101 : vector<1x512xf32> to vector<4x512xf32>
    %104 = arith.mulf %102, %103 : vector<4x512xf32>
    %105 = arith.addf %98, %104 : vector<4x512xf32>
    %106 = vector.extract_strided_slice %5 {offsets = [0, 16], sizes = [4, 512], strides = [1, 1]} : vector<4x546xf32> to vector<4x512xf32>
    %107 = vector.extract_strided_slice %1 {offsets = [3, 0, 0], sizes = [1, 1, 512], strides = [1, 1, 1]} : vector<9x1x512xf32> to vector<1x1x512xf32>
    %108 = vector.shape_cast %107 : vector<1x1x512xf32> to vector<1x512xf32>
    %109 = vector.broadcast %108 : vector<1x512xf32> to vector<4x512xf32>
    %110 = arith.mulf %106, %109 : vector<4x512xf32>
    %111 = vector.extract_strided_slice %2 {offsets = [12, 0, 0], sizes = [1, 4, 1], strides = [1, 1, 1]} : vector<36x4x1xf32> to vector<1x4x1xf32>
    %112 = vector.shape_cast %111 : vector<1x4x1xf32> to vector<4x1xf32>
    %113 = vector.extract_strided_slice %110 {offsets = [0, 0], sizes = [1, 512], strides = [1, 1]} : vector<4x512xf32> to vector<1x512xf32>
    %114 = vector.broadcast %112 : vector<4x1xf32> to vector<4x512xf32>
    %115 = vector.broadcast %113 : vector<1x512xf32> to vector<4x512xf32>
    %116 = arith.mulf %114, %115 : vector<4x512xf32>
    %117 = arith.addf %105, %116 : vector<4x512xf32>
    %118 = vector.extract_strided_slice %2 {offsets = [13, 0, 0], sizes = [1, 4, 1], strides = [1, 1, 1]} : vector<36x4x1xf32> to vector<1x4x1xf32>
    %119 = vector.shape_cast %118 : vector<1x4x1xf32> to vector<4x1xf32>
    %120 = vector.extract_strided_slice %110 {offsets = [1, 0], sizes = [1, 512], strides = [1, 1]} : vector<4x512xf32> to vector<1x512xf32>
    %121 = vector.broadcast %119 : vector<4x1xf32> to vector<4x512xf32>
    %122 = vector.broadcast %120 : vector<1x512xf32> to vector<4x512xf32>
    %123 = arith.mulf %121, %122 : vector<4x512xf32>
    %124 = arith.addf %117, %123 : vector<4x512xf32>
    %125 = vector.extract_strided_slice %2 {offsets = [14, 0, 0], sizes = [1, 4, 1], strides = [1, 1, 1]} : vector<36x4x1xf32> to vector<1x4x1xf32>
    %126 = vector.shape_cast %125 : vector<1x4x1xf32> to vector<4x1xf32>
    %127 = vector.extract_strided_slice %110 {offsets = [2, 0], sizes = [1, 512], strides = [1, 1]} : vector<4x512xf32> to vector<1x512xf32>
    %128 = vector.broadcast %126 : vector<4x1xf32> to vector<4x512xf32>
    %129 = vector.broadcast %127 : vector<1x512xf32> to vector<4x512xf32>
    %130 = arith.mulf %128, %129 : vector<4x512xf32>
    %131 = arith.addf %124, %130 : vector<4x512xf32>
    %132 = vector.extract_strided_slice %2 {offsets = [15, 0, 0], sizes = [1, 4, 1], strides = [1, 1, 1]} : vector<36x4x1xf32> to vector<1x4x1xf32>
    %133 = vector.shape_cast %132 : vector<1x4x1xf32> to vector<4x1xf32>
    %134 = vector.extract_strided_slice %110 {offsets = [3, 0], sizes = [1, 512], strides = [1, 1]} : vector<4x512xf32> to vector<1x512xf32>
    %135 = vector.broadcast %133 : vector<4x1xf32> to vector<4x512xf32>
    %136 = vector.broadcast %134 : vector<1x512xf32> to vector<4x512xf32>
    %137 = arith.mulf %135, %136 : vector<4x512xf32>
    %138 = arith.addf %131, %137 : vector<4x512xf32>
    %139 = vector.extract_strided_slice %2 {offsets = [16, 0, 0], sizes = [1, 4, 1], strides = [1, 1, 1]} : vector<36x4x1xf32> to vector<1x4x1xf32>
    %140 = vector.shape_cast %139 : vector<1x4x1xf32> to vector<4x1xf32>
    %141 = vector.extract_strided_slice %0 {offsets = [0, 0], sizes = [1, 512], strides = [1, 1]} : vector<4x512xf32> to vector<1x512xf32>
    %142 = vector.broadcast %140 : vector<4x1xf32> to vector<4x512xf32>
    %143 = vector.broadcast %141 : vector<1x512xf32> to vector<4x512xf32>
    %144 = arith.mulf %142, %143 : vector<4x512xf32>
    %145 = arith.addf %138, %144 : vector<4x512xf32>
    %146 = vector.extract_strided_slice %2 {offsets = [17, 0, 0], sizes = [1, 4, 1], strides = [1, 1, 1]} : vector<36x4x1xf32> to vector<1x4x1xf32>
    %147 = vector.shape_cast %146 : vector<1x4x1xf32> to vector<4x1xf32>
    %148 = vector.extract_strided_slice %0 {offsets = [1, 0], sizes = [1, 512], strides = [1, 1]} : vector<4x512xf32> to vector<1x512xf32>
    %149 = vector.broadcast %147 : vector<4x1xf32> to vector<4x512xf32>
    %150 = vector.broadcast %148 : vector<1x512xf32> to vector<4x512xf32>
    %151 = arith.mulf %149, %150 : vector<4x512xf32>
    %152 = arith.addf %145, %151 : vector<4x512xf32>
    %153 = vector.extract_strided_slice %2 {offsets = [18, 0, 0], sizes = [1, 4, 1], strides = [1, 1, 1]} : vector<36x4x1xf32> to vector<1x4x1xf32>
    %154 = vector.shape_cast %153 : vector<1x4x1xf32> to vector<4x1xf32>
    %155 = vector.extract_strided_slice %0 {offsets = [2, 0], sizes = [1, 512], strides = [1, 1]} : vector<4x512xf32> to vector<1x512xf32>
    %156 = vector.broadcast %154 : vector<4x1xf32> to vector<4x512xf32>
    %157 = vector.broadcast %155 : vector<1x512xf32> to vector<4x512xf32>
    %158 = arith.mulf %156, %157 : vector<4x512xf32>
    %159 = arith.addf %152, %158 : vector<4x512xf32>
    %160 = vector.extract_strided_slice %2 {offsets = [19, 0, 0], sizes = [1, 4, 1], strides = [1, 1, 1]} : vector<36x4x1xf32> to vector<1x4x1xf32>
    %161 = vector.shape_cast %160 : vector<1x4x1xf32> to vector<4x1xf32>
    %162 = vector.extract_strided_slice %0 {offsets = [3, 0], sizes = [1, 512], strides = [1, 1]} : vector<4x512xf32> to vector<1x512xf32>
    %163 = vector.broadcast %161 : vector<4x1xf32> to vector<4x512xf32>
    %164 = vector.broadcast %162 : vector<1x512xf32> to vector<4x512xf32>
    %165 = arith.mulf %163, %164 : vector<4x512xf32>
    %166 = arith.addf %159, %165 : vector<4x512xf32>
    %167 = vector.extract_strided_slice %5 {offsets = [0, 18], sizes = [4, 512], strides = [1, 1]} : vector<4x546xf32> to vector<4x512xf32>
    %168 = vector.extract_strided_slice %1 {offsets = [5, 0, 0], sizes = [1, 1, 512], strides = [1, 1, 1]} : vector<9x1x512xf32> to vector<1x1x512xf32>
    %169 = vector.shape_cast %168 : vector<1x1x512xf32> to vector<1x512xf32>
    %170 = vector.broadcast %169 : vector<1x512xf32> to vector<4x512xf32>
    %171 = arith.mulf %167, %170 : vector<4x512xf32>
    %172 = vector.extract_strided_slice %2 {offsets = [20, 0, 0], sizes = [1, 4, 1], strides = [1, 1, 1]} : vector<36x4x1xf32> to vector<1x4x1xf32>
    %173 = vector.shape_cast %172 : vector<1x4x1xf32> to vector<4x1xf32>
    %174 = vector.extract_strided_slice %171 {offsets = [0, 0], sizes = [1, 512], strides = [1, 1]} : vector<4x512xf32> to vector<1x512xf32>
    %175 = vector.broadcast %173 : vector<4x1xf32> to vector<4x512xf32>
    %176 = vector.broadcast %174 : vector<1x512xf32> to vector<4x512xf32>
    %177 = arith.mulf %175, %176 : vector<4x512xf32>
    %178 = arith.addf %166, %177 : vector<4x512xf32>
    %179 = vector.extract_strided_slice %2 {offsets = [21, 0, 0], sizes = [1, 4, 1], strides = [1, 1, 1]} : vector<36x4x1xf32> to vector<1x4x1xf32>
    %180 = vector.shape_cast %179 : vector<1x4x1xf32> to vector<4x1xf32>
    %181 = vector.extract_strided_slice %171 {offsets = [1, 0], sizes = [1, 512], strides = [1, 1]} : vector<4x512xf32> to vector<1x512xf32>
    %182 = vector.broadcast %180 : vector<4x1xf32> to vector<4x512xf32>
    %183 = vector.broadcast %181 : vector<1x512xf32> to vector<4x512xf32>
    %184 = arith.mulf %182, %183 : vector<4x512xf32>
    %185 = arith.addf %178, %184 : vector<4x512xf32>
    %186 = vector.extract_strided_slice %2 {offsets = [22, 0, 0], sizes = [1, 4, 1], strides = [1, 1, 1]} : vector<36x4x1xf32> to vector<1x4x1xf32>
    %187 = vector.shape_cast %186 : vector<1x4x1xf32> to vector<4x1xf32>
    %188 = vector.extract_strided_slice %171 {offsets = [2, 0], sizes = [1, 512], strides = [1, 1]} : vector<4x512xf32> to vector<1x512xf32>
    %189 = vector.broadcast %187 : vector<4x1xf32> to vector<4x512xf32>
    %190 = vector.broadcast %188 : vector<1x512xf32> to vector<4x512xf32>
    %191 = arith.mulf %189, %190 : vector<4x512xf32>
    %192 = arith.addf %185, %191 : vector<4x512xf32>
    %193 = vector.extract_strided_slice %2 {offsets = [23, 0, 0], sizes = [1, 4, 1], strides = [1, 1, 1]} : vector<36x4x1xf32> to vector<1x4x1xf32>
    %194 = vector.shape_cast %193 : vector<1x4x1xf32> to vector<4x1xf32>
    %195 = vector.extract_strided_slice %171 {offsets = [3, 0], sizes = [1, 512], strides = [1, 1]} : vector<4x512xf32> to vector<1x512xf32>
    %196 = vector.broadcast %194 : vector<4x1xf32> to vector<4x512xf32>
    %197 = vector.broadcast %195 : vector<1x512xf32> to vector<4x512xf32>
    %198 = arith.mulf %196, %197 : vector<4x512xf32>
    %199 = arith.addf %192, %198 : vector<4x512xf32>
    %200 = vector.extract_strided_slice %5 {offsets = [0, 32], sizes = [4, 512], strides = [1, 1]} : vector<4x546xf32> to vector<4x512xf32>
    %201 = vector.extract_strided_slice %1 {offsets = [6, 0, 0], sizes = [1, 1, 512], strides = [1, 1, 1]} : vector<9x1x512xf32> to vector<1x1x512xf32>
    %202 = vector.shape_cast %201 : vector<1x1x512xf32> to vector<1x512xf32>
    %203 = vector.broadcast %202 : vector<1x512xf32> to vector<4x512xf32>
    %204 = arith.mulf %200, %203 : vector<4x512xf32>
    %205 = vector.extract_strided_slice %2 {offsets = [24, 0, 0], sizes = [1, 4, 1], strides = [1, 1, 1]} : vector<36x4x1xf32> to vector<1x4x1xf32>
    %206 = vector.shape_cast %205 : vector<1x4x1xf32> to vector<4x1xf32>
    %207 = vector.extract_strided_slice %204 {offsets = [0, 0], sizes = [1, 512], strides = [1, 1]} : vector<4x512xf32> to vector<1x512xf32>
    %208 = vector.broadcast %206 : vector<4x1xf32> to vector<4x512xf32>
    %209 = vector.broadcast %207 : vector<1x512xf32> to vector<4x512xf32>
    %210 = arith.mulf %208, %209 : vector<4x512xf32>
    %211 = arith.addf %199, %210 : vector<4x512xf32>
    %212 = vector.extract_strided_slice %2 {offsets = [25, 0, 0], sizes = [1, 4, 1], strides = [1, 1, 1]} : vector<36x4x1xf32> to vector<1x4x1xf32>
    %213 = vector.shape_cast %212 : vector<1x4x1xf32> to vector<4x1xf32>
    %214 = vector.extract_strided_slice %204 {offsets = [1, 0], sizes = [1, 512], strides = [1, 1]} : vector<4x512xf32> to vector<1x512xf32>
    %215 = vector.broadcast %213 : vector<4x1xf32> to vector<4x512xf32>
    %216 = vector.broadcast %214 : vector<1x512xf32> to vector<4x512xf32>
    %217 = arith.mulf %215, %216 : vector<4x512xf32>
    %218 = arith.addf %211, %217 : vector<4x512xf32>
    %219 = vector.extract_strided_slice %2 {offsets = [26, 0, 0], sizes = [1, 4, 1], strides = [1, 1, 1]} : vector<36x4x1xf32> to vector<1x4x1xf32>
    %220 = vector.shape_cast %219 : vector<1x4x1xf32> to vector<4x1xf32>
    %221 = vector.extract_strided_slice %204 {offsets = [2, 0], sizes = [1, 512], strides = [1, 1]} : vector<4x512xf32> to vector<1x512xf32>
    %222 = vector.broadcast %220 : vector<4x1xf32> to vector<4x512xf32>
    %223 = vector.broadcast %221 : vector<1x512xf32> to vector<4x512xf32>
    %224 = arith.mulf %222, %223 : vector<4x512xf32>
    %225 = arith.addf %218, %224 : vector<4x512xf32>
    %226 = vector.extract_strided_slice %2 {offsets = [27, 0, 0], sizes = [1, 4, 1], strides = [1, 1, 1]} : vector<36x4x1xf32> to vector<1x4x1xf32>
    %227 = vector.shape_cast %226 : vector<1x4x1xf32> to vector<4x1xf32>
    %228 = vector.extract_strided_slice %204 {offsets = [3, 0], sizes = [1, 512], strides = [1, 1]} : vector<4x512xf32> to vector<1x512xf32>
    %229 = vector.broadcast %227 : vector<4x1xf32> to vector<4x512xf32>
    %230 = vector.broadcast %228 : vector<1x512xf32> to vector<4x512xf32>
    %231 = arith.mulf %229, %230 : vector<4x512xf32>
    %232 = arith.addf %225, %231 : vector<4x512xf32>
    %233 = vector.extract_strided_slice %5 {offsets = [0, 33], sizes = [4, 512], strides = [1, 1]} : vector<4x546xf32> to vector<4x512xf32>
    %234 = vector.extract_strided_slice %1 {offsets = [7, 0, 0], sizes = [1, 1, 512], strides = [1, 1, 1]} : vector<9x1x512xf32> to vector<1x1x512xf32>
    %235 = vector.shape_cast %234 : vector<1x1x512xf32> to vector<1x512xf32>
    %236 = vector.broadcast %235 : vector<1x512xf32> to vector<4x512xf32>
    %237 = arith.mulf %233, %236 : vector<4x512xf32>
    %238 = vector.extract_strided_slice %2 {offsets = [28, 0, 0], sizes = [1, 4, 1], strides = [1, 1, 1]} : vector<36x4x1xf32> to vector<1x4x1xf32>
    %239 = vector.shape_cast %238 : vector<1x4x1xf32> to vector<4x1xf32>
    %240 = vector.extract_strided_slice %237 {offsets = [0, 0], sizes = [1, 512], strides = [1, 1]} : vector<4x512xf32> to vector<1x512xf32>
    %241 = vector.broadcast %239 : vector<4x1xf32> to vector<4x512xf32>
    %242 = vector.broadcast %240 : vector<1x512xf32> to vector<4x512xf32>
    %243 = arith.mulf %241, %242 : vector<4x512xf32>
    %244 = arith.addf %232, %243 : vector<4x512xf32>
    %245 = vector.extract_strided_slice %2 {offsets = [29, 0, 0], sizes = [1, 4, 1], strides = [1, 1, 1]} : vector<36x4x1xf32> to vector<1x4x1xf32>
    %246 = vector.shape_cast %245 : vector<1x4x1xf32> to vector<4x1xf32>
    %247 = vector.extract_strided_slice %237 {offsets = [1, 0], sizes = [1, 512], strides = [1, 1]} : vector<4x512xf32> to vector<1x512xf32>
    %248 = vector.broadcast %246 : vector<4x1xf32> to vector<4x512xf32>
    %249 = vector.broadcast %247 : vector<1x512xf32> to vector<4x512xf32>
    %250 = arith.mulf %248, %249 : vector<4x512xf32>
    %251 = arith.addf %244, %250 : vector<4x512xf32>
    %252 = vector.extract_strided_slice %2 {offsets = [30, 0, 0], sizes = [1, 4, 1], strides = [1, 1, 1]} : vector<36x4x1xf32> to vector<1x4x1xf32>
    %253 = vector.shape_cast %252 : vector<1x4x1xf32> to vector<4x1xf32>
    %254 = vector.extract_strided_slice %237 {offsets = [2, 0], sizes = [1, 512], strides = [1, 1]} : vector<4x512xf32> to vector<1x512xf32>
    %255 = vector.broadcast %253 : vector<4x1xf32> to vector<4x512xf32>
    %256 = vector.broadcast %254 : vector<1x512xf32> to vector<4x512xf32>
    %257 = arith.mulf %255, %256 : vector<4x512xf32>
    %258 = arith.addf %251, %257 : vector<4x512xf32>
    %259 = vector.extract_strided_slice %2 {offsets = [31, 0, 0], sizes = [1, 4, 1], strides = [1, 1, 1]} : vector<36x4x1xf32> to vector<1x4x1xf32>
    %260 = vector.shape_cast %259 : vector<1x4x1xf32> to vector<4x1xf32>
    %261 = vector.extract_strided_slice %237 {offsets = [3, 0], sizes = [1, 512], strides = [1, 1]} : vector<4x512xf32> to vector<1x512xf32>
    %262 = vector.broadcast %260 : vector<4x1xf32> to vector<4x512xf32>
    %263 = vector.broadcast %261 : vector<1x512xf32> to vector<4x512xf32>
    %264 = arith.mulf %262, %263 : vector<4x512xf32>
    %265 = arith.addf %258, %264 : vector<4x512xf32>
    %266 = vector.extract_strided_slice %5 {offsets = [0, 34], sizes = [4, 512], strides = [1, 1]} : vector<4x546xf32> to vector<4x512xf32>
    %267 = vector.extract_strided_slice %1 {offsets = [8, 0, 0], sizes = [1, 1, 512], strides = [1, 1, 1]} : vector<9x1x512xf32> to vector<1x1x512xf32>
    %268 = vector.shape_cast %267 : vector<1x1x512xf32> to vector<1x512xf32>
    %269 = vector.broadcast %268 : vector<1x512xf32> to vector<4x512xf32>
    %270 = arith.mulf %266, %269 : vector<4x512xf32>
    %271 = vector.extract_strided_slice %2 {offsets = [32, 0, 0], sizes = [1, 4, 1], strides = [1, 1, 1]} : vector<36x4x1xf32> to vector<1x4x1xf32>
    %272 = vector.shape_cast %271 : vector<1x4x1xf32> to vector<4x1xf32>
    %273 = vector.extract_strided_slice %270 {offsets = [0, 0], sizes = [1, 512], strides = [1, 1]} : vector<4x512xf32> to vector<1x512xf32>
    %274 = vector.broadcast %272 : vector<4x1xf32> to vector<4x512xf32>
    %275 = vector.broadcast %273 : vector<1x512xf32> to vector<4x512xf32>
    %276 = arith.mulf %274, %275 : vector<4x512xf32>
    %277 = arith.addf %265, %276 : vector<4x512xf32>
    %278 = vector.extract_strided_slice %2 {offsets = [33, 0, 0], sizes = [1, 4, 1], strides = [1, 1, 1]} : vector<36x4x1xf32> to vector<1x4x1xf32>
    %279 = vector.shape_cast %278 : vector<1x4x1xf32> to vector<4x1xf32>
    %280 = vector.extract_strided_slice %270 {offsets = [1, 0], sizes = [1, 512], strides = [1, 1]} : vector<4x512xf32> to vector<1x512xf32>
    %281 = vector.broadcast %279 : vector<4x1xf32> to vector<4x512xf32>
    %282 = vector.broadcast %280 : vector<1x512xf32> to vector<4x512xf32>
    %283 = arith.mulf %281, %282 : vector<4x512xf32>
    %284 = arith.addf %277, %283 : vector<4x512xf32>
    %285 = vector.extract_strided_slice %2 {offsets = [34, 0, 0], sizes = [1, 4, 1], strides = [1, 1, 1]} : vector<36x4x1xf32> to vector<1x4x1xf32>
    %286 = vector.shape_cast %285 : vector<1x4x1xf32> to vector<4x1xf32>
    %287 = vector.extract_strided_slice %270 {offsets = [2, 0], sizes = [1, 512], strides = [1, 1]} : vector<4x512xf32> to vector<1x512xf32>
    %288 = vector.broadcast %286 : vector<4x1xf32> to vector<4x512xf32>
    %289 = vector.broadcast %287 : vector<1x512xf32> to vector<4x512xf32>
    %290 = arith.mulf %288, %289 : vector<4x512xf32>
    %291 = arith.addf %284, %290 : vector<4x512xf32>
    %292 = vector.extract_strided_slice %2 {offsets = [35, 0, 0], sizes = [1, 4, 1], strides = [1, 1, 1]} : vector<36x4x1xf32> to vector<1x4x1xf32>
    %293 = vector.shape_cast %292 : vector<1x4x1xf32> to vector<4x1xf32>
    %294 = vector.extract_strided_slice %270 {offsets = [3, 0], sizes = [1, 512], strides = [1, 1]} : vector<4x512xf32> to vector<1x512xf32>
    %295 = vector.broadcast %293 : vector<4x1xf32> to vector<4x512xf32>
    %296 = vector.broadcast %294 : vector<1x512xf32> to vector<4x512xf32>
    %297 = arith.mulf %295, %296 : vector<4x512xf32>
    %298 = arith.addf %291, %297 : vector<4x512xf32>
    %c0_11 = arith.constant 0 : index
    %c0_12 = arith.constant 0 : index
    %299 = vector.load %arg4[%c0_11, %c0_12] : memref<4x1xf32, #tpu.memory_space<vmem>>, vector<4x1xf32>
    %c0_13 = arith.constant 0 : index
    %c0_14 = arith.constant 0 : index
    %300 = vector.load %arg5[%c0_13, %c0_14] : memref<4x1xf32, #tpu.memory_space<vmem>>, vector<4x1xf32>
    %cst_15 = arith.constant dense<0.000000e+00> : vector<4xf32>
    %301 = vector.multi_reduction <add>, %298, %cst_15 [1] : vector<4x512xf32> to vector<4xf32>
    %302 = vector.shape_cast %301 : vector<4xf32> to vector<4x1xf32>
    %303 = arith.mulf %298, %298 : vector<4x512xf32>
    %cst_16 = arith.constant dense<0.000000e+00> : vector<4xf32>
    %304 = vector.multi_reduction <add>, %303, %cst_16 [1] : vector<4x512xf32> to vector<4xf32>
    %305 = vector.shape_cast %304 : vector<4xf32> to vector<4x1xf32>
    %cst_17 = arith.constant 0.001953125 : f32
    %306 = vector.broadcast %cst_17 : f32 to vector<4x1xf32>
    %307 = arith.mulf %302, %306 : vector<4x1xf32>
    %cst_18 = arith.constant 0.001953125 : f32
    %308 = vector.broadcast %cst_18 : f32 to vector<4x1xf32>
    %309 = arith.mulf %305, %308 : vector<4x1xf32>
    %310 = arith.mulf %307, %307 : vector<4x1xf32>
    %311 = arith.subf %309, %310 : vector<4x1xf32>
    %312 = vector.broadcast %307 : vector<4x1xf32> to vector<4x512xf32>
    %313 = arith.subf %298, %312 : vector<4x512xf32>
    %cst_19 = arith.constant 9.99999974E-6 : f32
    %314 = vector.broadcast %cst_19 : f32 to vector<4x1xf32>
    %315 = arith.addf %311, %314 : vector<4x1xf32>
    %316 = math.rsqrt %315 : vector<4x1xf32>
    %317 = vector.broadcast %316 : vector<4x1xf32> to vector<4x512xf32>
    %318 = arith.mulf %313, %317 : vector<4x512xf32>
    %319 = vector.broadcast %299 : vector<4x1xf32> to vector<4x512xf32>
    %320 = arith.mulf %318, %319 : vector<4x512xf32>
    %321 = vector.broadcast %300 : vector<4x1xf32> to vector<4x512xf32>
    %322 = arith.addf %320, %321 : vector<4x512xf32>
    %cst_20 = arith.constant 0.000000e+00 : f32
    %323 = vector.broadcast %cst_20 : f32 to vector<4x512xf32>
    %324 = arith.maximumf %322, %323 : vector<4x512xf32>
    %cst_21 = arith.constant 0.000000e+00 : f32
    %325 = vector.broadcast %cst_21 : f32 to vector<4x17xf32>
    %326 = tpu.concatenate %325, %324, %325 in 1 : vector<4x17xf32>, vector<4x512xf32>, vector<4x17xf32> -> vector<4x546xf32>
    %cst_22 = arith.constant 0.000000e+00 : f32
    %327 = vector.broadcast %cst_22 : f32 to vector<4x512xf32>
    %328 = vector.extract_strided_slice %326 {offsets = [0, 0], sizes = [4, 512], strides = [1, 1]} : vector<4x546xf32> to vector<4x512xf32>
    %329 = vector.extract_strided_slice %1 {offsets = [0, 0, 0], sizes = [1, 1, 512], strides = [1, 1, 1]} : vector<9x1x512xf32> to vector<1x1x512xf32>
    %330 = vector.shape_cast %329 : vector<1x1x512xf32> to vector<1x512xf32>
    %331 = vector.broadcast %330 : vector<1x512xf32> to vector<4x512xf32>
    %332 = arith.mulf %328, %331 : vector<4x512xf32>
    %333 = vector.extract_strided_slice %3 {offsets = [0, 0, 0], sizes = [1, 4, 1], strides = [1, 1, 1]} : vector<36x4x1xf32> to vector<1x4x1xf32>
    %334 = vector.shape_cast %333 : vector<1x4x1xf32> to vector<4x1xf32>
    %335 = vector.extract_strided_slice %332 {offsets = [0, 0], sizes = [1, 512], strides = [1, 1]} : vector<4x512xf32> to vector<1x512xf32>
    %336 = vector.broadcast %334 : vector<4x1xf32> to vector<4x512xf32>
    %337 = vector.broadcast %335 : vector<1x512xf32> to vector<4x512xf32>
    %338 = arith.mulf %336, %337 : vector<4x512xf32>
    %339 = arith.addf %327, %338 : vector<4x512xf32>
    %340 = vector.extract_strided_slice %3 {offsets = [1, 0, 0], sizes = [1, 4, 1], strides = [1, 1, 1]} : vector<36x4x1xf32> to vector<1x4x1xf32>
    %341 = vector.shape_cast %340 : vector<1x4x1xf32> to vector<4x1xf32>
    %342 = vector.extract_strided_slice %332 {offsets = [1, 0], sizes = [1, 512], strides = [1, 1]} : vector<4x512xf32> to vector<1x512xf32>
    %343 = vector.broadcast %341 : vector<4x1xf32> to vector<4x512xf32>
    %344 = vector.broadcast %342 : vector<1x512xf32> to vector<4x512xf32>
    %345 = arith.mulf %343, %344 : vector<4x512xf32>
    %346 = arith.addf %339, %345 : vector<4x512xf32>
    %347 = vector.extract_strided_slice %3 {offsets = [2, 0, 0], sizes = [1, 4, 1], strides = [1, 1, 1]} : vector<36x4x1xf32> to vector<1x4x1xf32>
    %348 = vector.shape_cast %347 : vector<1x4x1xf32> to vector<4x1xf32>
    %349 = vector.extract_strided_slice %332 {offsets = [2, 0], sizes = [1, 512], strides = [1, 1]} : vector<4x512xf32> to vector<1x512xf32>
    %350 = vector.broadcast %348 : vector<4x1xf32> to vector<4x512xf32>
    %351 = vector.broadcast %349 : vector<1x512xf32> to vector<4x512xf32>
    %352 = arith.mulf %350, %351 : vector<4x512xf32>
    %353 = arith.addf %346, %352 : vector<4x512xf32>
    %354 = vector.extract_strided_slice %3 {offsets = [3, 0, 0], sizes = [1, 4, 1], strides = [1, 1, 1]} : vector<36x4x1xf32> to vector<1x4x1xf32>
    %355 = vector.shape_cast %354 : vector<1x4x1xf32> to vector<4x1xf32>
    %356 = vector.extract_strided_slice %332 {offsets = [3, 0], sizes = [1, 512], strides = [1, 1]} : vector<4x512xf32> to vector<1x512xf32>
    %357 = vector.broadcast %355 : vector<4x1xf32> to vector<4x512xf32>
    %358 = vector.broadcast %356 : vector<1x512xf32> to vector<4x512xf32>
    %359 = arith.mulf %357, %358 : vector<4x512xf32>
    %360 = arith.addf %353, %359 : vector<4x512xf32>
    %361 = vector.extract_strided_slice %326 {offsets = [0, 1], sizes = [4, 512], strides = [1, 1]} : vector<4x546xf32> to vector<4x512xf32>
    %362 = vector.extract_strided_slice %1 {offsets = [1, 0, 0], sizes = [1, 1, 512], strides = [1, 1, 1]} : vector<9x1x512xf32> to vector<1x1x512xf32>
    %363 = vector.shape_cast %362 : vector<1x1x512xf32> to vector<1x512xf32>
    %364 = vector.broadcast %363 : vector<1x512xf32> to vector<4x512xf32>
    %365 = arith.mulf %361, %364 : vector<4x512xf32>
    %366 = vector.extract_strided_slice %3 {offsets = [4, 0, 0], sizes = [1, 4, 1], strides = [1, 1, 1]} : vector<36x4x1xf32> to vector<1x4x1xf32>
    %367 = vector.shape_cast %366 : vector<1x4x1xf32> to vector<4x1xf32>
    %368 = vector.extract_strided_slice %365 {offsets = [0, 0], sizes = [1, 512], strides = [1, 1]} : vector<4x512xf32> to vector<1x512xf32>
    %369 = vector.broadcast %367 : vector<4x1xf32> to vector<4x512xf32>
    %370 = vector.broadcast %368 : vector<1x512xf32> to vector<4x512xf32>
    %371 = arith.mulf %369, %370 : vector<4x512xf32>
    %372 = arith.addf %360, %371 : vector<4x512xf32>
    %373 = vector.extract_strided_slice %3 {offsets = [5, 0, 0], sizes = [1, 4, 1], strides = [1, 1, 1]} : vector<36x4x1xf32> to vector<1x4x1xf32>
    %374 = vector.shape_cast %373 : vector<1x4x1xf32> to vector<4x1xf32>
    %375 = vector.extract_strided_slice %365 {offsets = [1, 0], sizes = [1, 512], strides = [1, 1]} : vector<4x512xf32> to vector<1x512xf32>
    %376 = vector.broadcast %374 : vector<4x1xf32> to vector<4x512xf32>
    %377 = vector.broadcast %375 : vector<1x512xf32> to vector<4x512xf32>
    %378 = arith.mulf %376, %377 : vector<4x512xf32>
    %379 = arith.addf %372, %378 : vector<4x512xf32>
    %380 = vector.extract_strided_slice %3 {offsets = [6, 0, 0], sizes = [1, 4, 1], strides = [1, 1, 1]} : vector<36x4x1xf32> to vector<1x4x1xf32>
    %381 = vector.shape_cast %380 : vector<1x4x1xf32> to vector<4x1xf32>
    %382 = vector.extract_strided_slice %365 {offsets = [2, 0], sizes = [1, 512], strides = [1, 1]} : vector<4x512xf32> to vector<1x512xf32>
    %383 = vector.broadcast %381 : vector<4x1xf32> to vector<4x512xf32>
    %384 = vector.broadcast %382 : vector<1x512xf32> to vector<4x512xf32>
    %385 = arith.mulf %383, %384 : vector<4x512xf32>
    %386 = arith.addf %379, %385 : vector<4x512xf32>
    %387 = vector.extract_strided_slice %3 {offsets = [7, 0, 0], sizes = [1, 4, 1], strides = [1, 1, 1]} : vector<36x4x1xf32> to vector<1x4x1xf32>
    %388 = vector.shape_cast %387 : vector<1x4x1xf32> to vector<4x1xf32>
    %389 = vector.extract_strided_slice %365 {offsets = [3, 0], sizes = [1, 512], strides = [1, 1]} : vector<4x512xf32> to vector<1x512xf32>
    %390 = vector.broadcast %388 : vector<4x1xf32> to vector<4x512xf32>
    %391 = vector.broadcast %389 : vector<1x512xf32> to vector<4x512xf32>
    %392 = arith.mulf %390, %391 : vector<4x512xf32>
    %393 = arith.addf %386, %392 : vector<4x512xf32>
    %394 = vector.extract_strided_slice %326 {offsets = [0, 2], sizes = [4, 512], strides = [1, 1]} : vector<4x546xf32> to vector<4x512xf32>
    %395 = vector.extract_strided_slice %1 {offsets = [2, 0, 0], sizes = [1, 1, 512], strides = [1, 1, 1]} : vector<9x1x512xf32> to vector<1x1x512xf32>
    %396 = vector.shape_cast %395 : vector<1x1x512xf32> to vector<1x512xf32>
    %397 = vector.broadcast %396 : vector<1x512xf32> to vector<4x512xf32>
    %398 = arith.mulf %394, %397 : vector<4x512xf32>
    %399 = vector.extract_strided_slice %3 {offsets = [8, 0, 0], sizes = [1, 4, 1], strides = [1, 1, 1]} : vector<36x4x1xf32> to vector<1x4x1xf32>
    %400 = vector.shape_cast %399 : vector<1x4x1xf32> to vector<4x1xf32>
    %401 = vector.extract_strided_slice %398 {offsets = [0, 0], sizes = [1, 512], strides = [1, 1]} : vector<4x512xf32> to vector<1x512xf32>
    %402 = vector.broadcast %400 : vector<4x1xf32> to vector<4x512xf32>
    %403 = vector.broadcast %401 : vector<1x512xf32> to vector<4x512xf32>
    %404 = arith.mulf %402, %403 : vector<4x512xf32>
    %405 = arith.addf %393, %404 : vector<4x512xf32>
    %406 = vector.extract_strided_slice %3 {offsets = [9, 0, 0], sizes = [1, 4, 1], strides = [1, 1, 1]} : vector<36x4x1xf32> to vector<1x4x1xf32>
    %407 = vector.shape_cast %406 : vector<1x4x1xf32> to vector<4x1xf32>
    %408 = vector.extract_strided_slice %398 {offsets = [1, 0], sizes = [1, 512], strides = [1, 1]} : vector<4x512xf32> to vector<1x512xf32>
    %409 = vector.broadcast %407 : vector<4x1xf32> to vector<4x512xf32>
    %410 = vector.broadcast %408 : vector<1x512xf32> to vector<4x512xf32>
    %411 = arith.mulf %409, %410 : vector<4x512xf32>
    %412 = arith.addf %405, %411 : vector<4x512xf32>
    %413 = vector.extract_strided_slice %3 {offsets = [10, 0, 0], sizes = [1, 4, 1], strides = [1, 1, 1]} : vector<36x4x1xf32> to vector<1x4x1xf32>
    %414 = vector.shape_cast %413 : vector<1x4x1xf32> to vector<4x1xf32>
    %415 = vector.extract_strided_slice %398 {offsets = [2, 0], sizes = [1, 512], strides = [1, 1]} : vector<4x512xf32> to vector<1x512xf32>
    %416 = vector.broadcast %414 : vector<4x1xf32> to vector<4x512xf32>
    %417 = vector.broadcast %415 : vector<1x512xf32> to vector<4x512xf32>
    %418 = arith.mulf %416, %417 : vector<4x512xf32>
    %419 = arith.addf %412, %418 : vector<4x512xf32>
    %420 = vector.extract_strided_slice %3 {offsets = [11, 0, 0], sizes = [1, 4, 1], strides = [1, 1, 1]} : vector<36x4x1xf32> to vector<1x4x1xf32>
    %421 = vector.shape_cast %420 : vector<1x4x1xf32> to vector<4x1xf32>
    %422 = vector.extract_strided_slice %398 {offsets = [3, 0], sizes = [1, 512], strides = [1, 1]} : vector<4x512xf32> to vector<1x512xf32>
    %423 = vector.broadcast %421 : vector<4x1xf32> to vector<4x512xf32>
    %424 = vector.broadcast %422 : vector<1x512xf32> to vector<4x512xf32>
    %425 = arith.mulf %423, %424 : vector<4x512xf32>
    %426 = arith.addf %419, %425 : vector<4x512xf32>
    %427 = vector.extract_strided_slice %326 {offsets = [0, 16], sizes = [4, 512], strides = [1, 1]} : vector<4x546xf32> to vector<4x512xf32>
    %428 = vector.extract_strided_slice %1 {offsets = [3, 0, 0], sizes = [1, 1, 512], strides = [1, 1, 1]} : vector<9x1x512xf32> to vector<1x1x512xf32>
    %429 = vector.shape_cast %428 : vector<1x1x512xf32> to vector<1x512xf32>
    %430 = vector.broadcast %429 : vector<1x512xf32> to vector<4x512xf32>
    %431 = arith.mulf %427, %430 : vector<4x512xf32>
    %432 = vector.extract_strided_slice %3 {offsets = [12, 0, 0], sizes = [1, 4, 1], strides = [1, 1, 1]} : vector<36x4x1xf32> to vector<1x4x1xf32>
    %433 = vector.shape_cast %432 : vector<1x4x1xf32> to vector<4x1xf32>
    %434 = vector.extract_strided_slice %431 {offsets = [0, 0], sizes = [1, 512], strides = [1, 1]} : vector<4x512xf32> to vector<1x512xf32>
    %435 = vector.broadcast %433 : vector<4x1xf32> to vector<4x512xf32>
    %436 = vector.broadcast %434 : vector<1x512xf32> to vector<4x512xf32>
    %437 = arith.mulf %435, %436 : vector<4x512xf32>
    %438 = arith.addf %426, %437 : vector<4x512xf32>
    %439 = vector.extract_strided_slice %3 {offsets = [13, 0, 0], sizes = [1, 4, 1], strides = [1, 1, 1]} : vector<36x4x1xf32> to vector<1x4x1xf32>
    %440 = vector.shape_cast %439 : vector<1x4x1xf32> to vector<4x1xf32>
    %441 = vector.extract_strided_slice %431 {offsets = [1, 0], sizes = [1, 512], strides = [1, 1]} : vector<4x512xf32> to vector<1x512xf32>
    %442 = vector.broadcast %440 : vector<4x1xf32> to vector<4x512xf32>
    %443 = vector.broadcast %441 : vector<1x512xf32> to vector<4x512xf32>
    %444 = arith.mulf %442, %443 : vector<4x512xf32>
    %445 = arith.addf %438, %444 : vector<4x512xf32>
    %446 = vector.extract_strided_slice %3 {offsets = [14, 0, 0], sizes = [1, 4, 1], strides = [1, 1, 1]} : vector<36x4x1xf32> to vector<1x4x1xf32>
    %447 = vector.shape_cast %446 : vector<1x4x1xf32> to vector<4x1xf32>
    %448 = vector.extract_strided_slice %431 {offsets = [2, 0], sizes = [1, 512], strides = [1, 1]} : vector<4x512xf32> to vector<1x512xf32>
    %449 = vector.broadcast %447 : vector<4x1xf32> to vector<4x512xf32>
    %450 = vector.broadcast %448 : vector<1x512xf32> to vector<4x512xf32>
    %451 = arith.mulf %449, %450 : vector<4x512xf32>
    %452 = arith.addf %445, %451 : vector<4x512xf32>
    %453 = vector.extract_strided_slice %3 {offsets = [15, 0, 0], sizes = [1, 4, 1], strides = [1, 1, 1]} : vector<36x4x1xf32> to vector<1x4x1xf32>
    %454 = vector.shape_cast %453 : vector<1x4x1xf32> to vector<4x1xf32>
    %455 = vector.extract_strided_slice %431 {offsets = [3, 0], sizes = [1, 512], strides = [1, 1]} : vector<4x512xf32> to vector<1x512xf32>
    %456 = vector.broadcast %454 : vector<4x1xf32> to vector<4x512xf32>
    %457 = vector.broadcast %455 : vector<1x512xf32> to vector<4x512xf32>
    %458 = arith.mulf %456, %457 : vector<4x512xf32>
    %459 = arith.addf %452, %458 : vector<4x512xf32>
    %460 = vector.extract_strided_slice %3 {offsets = [16, 0, 0], sizes = [1, 4, 1], strides = [1, 1, 1]} : vector<36x4x1xf32> to vector<1x4x1xf32>
    %461 = vector.shape_cast %460 : vector<1x4x1xf32> to vector<4x1xf32>
    %462 = vector.extract_strided_slice %324 {offsets = [0, 0], sizes = [1, 512], strides = [1, 1]} : vector<4x512xf32> to vector<1x512xf32>
    %463 = vector.broadcast %461 : vector<4x1xf32> to vector<4x512xf32>
    %464 = vector.broadcast %462 : vector<1x512xf32> to vector<4x512xf32>
    %465 = arith.mulf %463, %464 : vector<4x512xf32>
    %466 = arith.addf %459, %465 : vector<4x512xf32>
    %467 = vector.extract_strided_slice %3 {offsets = [17, 0, 0], sizes = [1, 4, 1], strides = [1, 1, 1]} : vector<36x4x1xf32> to vector<1x4x1xf32>
    %468 = vector.shape_cast %467 : vector<1x4x1xf32> to vector<4x1xf32>
    %469 = vector.extract_strided_slice %324 {offsets = [1, 0], sizes = [1, 512], strides = [1, 1]} : vector<4x512xf32> to vector<1x512xf32>
    %470 = vector.broadcast %468 : vector<4x1xf32> to vector<4x512xf32>
    %471 = vector.broadcast %469 : vector<1x512xf32> to vector<4x512xf32>
    %472 = arith.mulf %470, %471 : vector<4x512xf32>
    %473 = arith.addf %466, %472 : vector<4x512xf32>
    %474 = vector.extract_strided_slice %3 {offsets = [18, 0, 0], sizes = [1, 4, 1], strides = [1, 1, 1]} : vector<36x4x1xf32> to vector<1x4x1xf32>
    %475 = vector.shape_cast %474 : vector<1x4x1xf32> to vector<4x1xf32>
    %476 = vector.extract_strided_slice %324 {offsets = [2, 0], sizes = [1, 512], strides = [1, 1]} : vector<4x512xf32> to vector<1x512xf32>
    %477 = vector.broadcast %475 : vector<4x1xf32> to vector<4x512xf32>
    %478 = vector.broadcast %476 : vector<1x512xf32> to vector<4x512xf32>
    %479 = arith.mulf %477, %478 : vector<4x512xf32>
    %480 = arith.addf %473, %479 : vector<4x512xf32>
    %481 = vector.extract_strided_slice %3 {offsets = [19, 0, 0], sizes = [1, 4, 1], strides = [1, 1, 1]} : vector<36x4x1xf32> to vector<1x4x1xf32>
    %482 = vector.shape_cast %481 : vector<1x4x1xf32> to vector<4x1xf32>
    %483 = vector.extract_strided_slice %324 {offsets = [3, 0], sizes = [1, 512], strides = [1, 1]} : vector<4x512xf32> to vector<1x512xf32>
    %484 = vector.broadcast %482 : vector<4x1xf32> to vector<4x512xf32>
    %485 = vector.broadcast %483 : vector<1x512xf32> to vector<4x512xf32>
    %486 = arith.mulf %484, %485 : vector<4x512xf32>
    %487 = arith.addf %480, %486 : vector<4x512xf32>
    %488 = vector.extract_strided_slice %326 {offsets = [0, 18], sizes = [4, 512], strides = [1, 1]} : vector<4x546xf32> to vector<4x512xf32>
    %489 = vector.extract_strided_slice %1 {offsets = [5, 0, 0], sizes = [1, 1, 512], strides = [1, 1, 1]} : vector<9x1x512xf32> to vector<1x1x512xf32>
    %490 = vector.shape_cast %489 : vector<1x1x512xf32> to vector<1x512xf32>
    %491 = vector.broadcast %490 : vector<1x512xf32> to vector<4x512xf32>
    %492 = arith.mulf %488, %491 : vector<4x512xf32>
    %493 = vector.extract_strided_slice %3 {offsets = [20, 0, 0], sizes = [1, 4, 1], strides = [1, 1, 1]} : vector<36x4x1xf32> to vector<1x4x1xf32>
    %494 = vector.shape_cast %493 : vector<1x4x1xf32> to vector<4x1xf32>
    %495 = vector.extract_strided_slice %492 {offsets = [0, 0], sizes = [1, 512], strides = [1, 1]} : vector<4x512xf32> to vector<1x512xf32>
    %496 = vector.broadcast %494 : vector<4x1xf32> to vector<4x512xf32>
    %497 = vector.broadcast %495 : vector<1x512xf32> to vector<4x512xf32>
    %498 = arith.mulf %496, %497 : vector<4x512xf32>
    %499 = arith.addf %487, %498 : vector<4x512xf32>
    %500 = vector.extract_strided_slice %3 {offsets = [21, 0, 0], sizes = [1, 4, 1], strides = [1, 1, 1]} : vector<36x4x1xf32> to vector<1x4x1xf32>
    %501 = vector.shape_cast %500 : vector<1x4x1xf32> to vector<4x1xf32>
    %502 = vector.extract_strided_slice %492 {offsets = [1, 0], sizes = [1, 512], strides = [1, 1]} : vector<4x512xf32> to vector<1x512xf32>
    %503 = vector.broadcast %501 : vector<4x1xf32> to vector<4x512xf32>
    %504 = vector.broadcast %502 : vector<1x512xf32> to vector<4x512xf32>
    %505 = arith.mulf %503, %504 : vector<4x512xf32>
    %506 = arith.addf %499, %505 : vector<4x512xf32>
    %507 = vector.extract_strided_slice %3 {offsets = [22, 0, 0], sizes = [1, 4, 1], strides = [1, 1, 1]} : vector<36x4x1xf32> to vector<1x4x1xf32>
    %508 = vector.shape_cast %507 : vector<1x4x1xf32> to vector<4x1xf32>
    %509 = vector.extract_strided_slice %492 {offsets = [2, 0], sizes = [1, 512], strides = [1, 1]} : vector<4x512xf32> to vector<1x512xf32>
    %510 = vector.broadcast %508 : vector<4x1xf32> to vector<4x512xf32>
    %511 = vector.broadcast %509 : vector<1x512xf32> to vector<4x512xf32>
    %512 = arith.mulf %510, %511 : vector<4x512xf32>
    %513 = arith.addf %506, %512 : vector<4x512xf32>
    %514 = vector.extract_strided_slice %3 {offsets = [23, 0, 0], sizes = [1, 4, 1], strides = [1, 1, 1]} : vector<36x4x1xf32> to vector<1x4x1xf32>
    %515 = vector.shape_cast %514 : vector<1x4x1xf32> to vector<4x1xf32>
    %516 = vector.extract_strided_slice %492 {offsets = [3, 0], sizes = [1, 512], strides = [1, 1]} : vector<4x512xf32> to vector<1x512xf32>
    %517 = vector.broadcast %515 : vector<4x1xf32> to vector<4x512xf32>
    %518 = vector.broadcast %516 : vector<1x512xf32> to vector<4x512xf32>
    %519 = arith.mulf %517, %518 : vector<4x512xf32>
    %520 = arith.addf %513, %519 : vector<4x512xf32>
    %521 = vector.extract_strided_slice %326 {offsets = [0, 32], sizes = [4, 512], strides = [1, 1]} : vector<4x546xf32> to vector<4x512xf32>
    %522 = vector.extract_strided_slice %1 {offsets = [6, 0, 0], sizes = [1, 1, 512], strides = [1, 1, 1]} : vector<9x1x512xf32> to vector<1x1x512xf32>
    %523 = vector.shape_cast %522 : vector<1x1x512xf32> to vector<1x512xf32>
    %524 = vector.broadcast %523 : vector<1x512xf32> to vector<4x512xf32>
    %525 = arith.mulf %521, %524 : vector<4x512xf32>
    %526 = vector.extract_strided_slice %3 {offsets = [24, 0, 0], sizes = [1, 4, 1], strides = [1, 1, 1]} : vector<36x4x1xf32> to vector<1x4x1xf32>
    %527 = vector.shape_cast %526 : vector<1x4x1xf32> to vector<4x1xf32>
    %528 = vector.extract_strided_slice %525 {offsets = [0, 0], sizes = [1, 512], strides = [1, 1]} : vector<4x512xf32> to vector<1x512xf32>
    %529 = vector.broadcast %527 : vector<4x1xf32> to vector<4x512xf32>
    %530 = vector.broadcast %528 : vector<1x512xf32> to vector<4x512xf32>
    %531 = arith.mulf %529, %530 : vector<4x512xf32>
    %532 = arith.addf %520, %531 : vector<4x512xf32>
    %533 = vector.extract_strided_slice %3 {offsets = [25, 0, 0], sizes = [1, 4, 1], strides = [1, 1, 1]} : vector<36x4x1xf32> to vector<1x4x1xf32>
    %534 = vector.shape_cast %533 : vector<1x4x1xf32> to vector<4x1xf32>
    %535 = vector.extract_strided_slice %525 {offsets = [1, 0], sizes = [1, 512], strides = [1, 1]} : vector<4x512xf32> to vector<1x512xf32>
    %536 = vector.broadcast %534 : vector<4x1xf32> to vector<4x512xf32>
    %537 = vector.broadcast %535 : vector<1x512xf32> to vector<4x512xf32>
    %538 = arith.mulf %536, %537 : vector<4x512xf32>
    %539 = arith.addf %532, %538 : vector<4x512xf32>
    %540 = vector.extract_strided_slice %3 {offsets = [26, 0, 0], sizes = [1, 4, 1], strides = [1, 1, 1]} : vector<36x4x1xf32> to vector<1x4x1xf32>
    %541 = vector.shape_cast %540 : vector<1x4x1xf32> to vector<4x1xf32>
    %542 = vector.extract_strided_slice %525 {offsets = [2, 0], sizes = [1, 512], strides = [1, 1]} : vector<4x512xf32> to vector<1x512xf32>
    %543 = vector.broadcast %541 : vector<4x1xf32> to vector<4x512xf32>
    %544 = vector.broadcast %542 : vector<1x512xf32> to vector<4x512xf32>
    %545 = arith.mulf %543, %544 : vector<4x512xf32>
    %546 = arith.addf %539, %545 : vector<4x512xf32>
    %547 = vector.extract_strided_slice %3 {offsets = [27, 0, 0], sizes = [1, 4, 1], strides = [1, 1, 1]} : vector<36x4x1xf32> to vector<1x4x1xf32>
    %548 = vector.shape_cast %547 : vector<1x4x1xf32> to vector<4x1xf32>
    %549 = vector.extract_strided_slice %525 {offsets = [3, 0], sizes = [1, 512], strides = [1, 1]} : vector<4x512xf32> to vector<1x512xf32>
    %550 = vector.broadcast %548 : vector<4x1xf32> to vector<4x512xf32>
    %551 = vector.broadcast %549 : vector<1x512xf32> to vector<4x512xf32>
    %552 = arith.mulf %550, %551 : vector<4x512xf32>
    %553 = arith.addf %546, %552 : vector<4x512xf32>
    %554 = vector.extract_strided_slice %326 {offsets = [0, 33], sizes = [4, 512], strides = [1, 1]} : vector<4x546xf32> to vector<4x512xf32>
    %555 = vector.extract_strided_slice %1 {offsets = [7, 0, 0], sizes = [1, 1, 512], strides = [1, 1, 1]} : vector<9x1x512xf32> to vector<1x1x512xf32>
    %556 = vector.shape_cast %555 : vector<1x1x512xf32> to vector<1x512xf32>
    %557 = vector.broadcast %556 : vector<1x512xf32> to vector<4x512xf32>
    %558 = arith.mulf %554, %557 : vector<4x512xf32>
    %559 = vector.extract_strided_slice %3 {offsets = [28, 0, 0], sizes = [1, 4, 1], strides = [1, 1, 1]} : vector<36x4x1xf32> to vector<1x4x1xf32>
    %560 = vector.shape_cast %559 : vector<1x4x1xf32> to vector<4x1xf32>
    %561 = vector.extract_strided_slice %558 {offsets = [0, 0], sizes = [1, 512], strides = [1, 1]} : vector<4x512xf32> to vector<1x512xf32>
    %562 = vector.broadcast %560 : vector<4x1xf32> to vector<4x512xf32>
    %563 = vector.broadcast %561 : vector<1x512xf32> to vector<4x512xf32>
    %564 = arith.mulf %562, %563 : vector<4x512xf32>
    %565 = arith.addf %553, %564 : vector<4x512xf32>
    %566 = vector.extract_strided_slice %3 {offsets = [29, 0, 0], sizes = [1, 4, 1], strides = [1, 1, 1]} : vector<36x4x1xf32> to vector<1x4x1xf32>
    %567 = vector.shape_cast %566 : vector<1x4x1xf32> to vector<4x1xf32>
    %568 = vector.extract_strided_slice %558 {offsets = [1, 0], sizes = [1, 512], strides = [1, 1]} : vector<4x512xf32> to vector<1x512xf32>
    %569 = vector.broadcast %567 : vector<4x1xf32> to vector<4x512xf32>
    %570 = vector.broadcast %568 : vector<1x512xf32> to vector<4x512xf32>
    %571 = arith.mulf %569, %570 : vector<4x512xf32>
    %572 = arith.addf %565, %571 : vector<4x512xf32>
    %573 = vector.extract_strided_slice %3 {offsets = [30, 0, 0], sizes = [1, 4, 1], strides = [1, 1, 1]} : vector<36x4x1xf32> to vector<1x4x1xf32>
    %574 = vector.shape_cast %573 : vector<1x4x1xf32> to vector<4x1xf32>
    %575 = vector.extract_strided_slice %558 {offsets = [2, 0], sizes = [1, 512], strides = [1, 1]} : vector<4x512xf32> to vector<1x512xf32>
    %576 = vector.broadcast %574 : vector<4x1xf32> to vector<4x512xf32>
    %577 = vector.broadcast %575 : vector<1x512xf32> to vector<4x512xf32>
    %578 = arith.mulf %576, %577 : vector<4x512xf32>
    %579 = arith.addf %572, %578 : vector<4x512xf32>
    %580 = vector.extract_strided_slice %3 {offsets = [31, 0, 0], sizes = [1, 4, 1], strides = [1, 1, 1]} : vector<36x4x1xf32> to vector<1x4x1xf32>
    %581 = vector.shape_cast %580 : vector<1x4x1xf32> to vector<4x1xf32>
    %582 = vector.extract_strided_slice %558 {offsets = [3, 0], sizes = [1, 512], strides = [1, 1]} : vector<4x512xf32> to vector<1x512xf32>
    %583 = vector.broadcast %581 : vector<4x1xf32> to vector<4x512xf32>
    %584 = vector.broadcast %582 : vector<1x512xf32> to vector<4x512xf32>
    %585 = arith.mulf %583, %584 : vector<4x512xf32>
    %586 = arith.addf %579, %585 : vector<4x512xf32>
    %587 = vector.extract_strided_slice %326 {offsets = [0, 34], sizes = [4, 512], strides = [1, 1]} : vector<4x546xf32> to vector<4x512xf32>
    %588 = vector.extract_strided_slice %1 {offsets = [8, 0, 0], sizes = [1, 1, 512], strides = [1, 1, 1]} : vector<9x1x512xf32> to vector<1x1x512xf32>
    %589 = vector.shape_cast %588 : vector<1x1x512xf32> to vector<1x512xf32>
    %590 = vector.broadcast %589 : vector<1x512xf32> to vector<4x512xf32>
    %591 = arith.mulf %587, %590 : vector<4x512xf32>
    %592 = vector.extract_strided_slice %3 {offsets = [32, 0, 0], sizes = [1, 4, 1], strides = [1, 1, 1]} : vector<36x4x1xf32> to vector<1x4x1xf32>
    %593 = vector.shape_cast %592 : vector<1x4x1xf32> to vector<4x1xf32>
    %594 = vector.extract_strided_slice %591 {offsets = [0, 0], sizes = [1, 512], strides = [1, 1]} : vector<4x512xf32> to vector<1x512xf32>
    %595 = vector.broadcast %593 : vector<4x1xf32> to vector<4x512xf32>
    %596 = vector.broadcast %594 : vector<1x512xf32> to vector<4x512xf32>
    %597 = arith.mulf %595, %596 : vector<4x512xf32>
    %598 = arith.addf %586, %597 : vector<4x512xf32>
    %599 = vector.extract_strided_slice %3 {offsets = [33, 0, 0], sizes = [1, 4, 1], strides = [1, 1, 1]} : vector<36x4x1xf32> to vector<1x4x1xf32>
    %600 = vector.shape_cast %599 : vector<1x4x1xf32> to vector<4x1xf32>
    %601 = vector.extract_strided_slice %591 {offsets = [1, 0], sizes = [1, 512], strides = [1, 1]} : vector<4x512xf32> to vector<1x512xf32>
    %602 = vector.broadcast %600 : vector<4x1xf32> to vector<4x512xf32>
    %603 = vector.broadcast %601 : vector<1x512xf32> to vector<4x512xf32>
    %604 = arith.mulf %602, %603 : vector<4x512xf32>
    %605 = arith.addf %598, %604 : vector<4x512xf32>
    %606 = vector.extract_strided_slice %3 {offsets = [34, 0, 0], sizes = [1, 4, 1], strides = [1, 1, 1]} : vector<36x4x1xf32> to vector<1x4x1xf32>
    %607 = vector.shape_cast %606 : vector<1x4x1xf32> to vector<4x1xf32>
    %608 = vector.extract_strided_slice %591 {offsets = [2, 0], sizes = [1, 512], strides = [1, 1]} : vector<4x512xf32> to vector<1x512xf32>
    %609 = vector.broadcast %607 : vector<4x1xf32> to vector<4x512xf32>
    %610 = vector.broadcast %608 : vector<1x512xf32> to vector<4x512xf32>
    %611 = arith.mulf %609, %610 : vector<4x512xf32>
    %612 = arith.addf %605, %611 : vector<4x512xf32>
    %613 = vector.extract_strided_slice %3 {offsets = [35, 0, 0], sizes = [1, 4, 1], strides = [1, 1, 1]} : vector<36x4x1xf32> to vector<1x4x1xf32>
    %614 = vector.shape_cast %613 : vector<1x4x1xf32> to vector<4x1xf32>
    %615 = vector.extract_strided_slice %591 {offsets = [3, 0], sizes = [1, 512], strides = [1, 1]} : vector<4x512xf32> to vector<1x512xf32>
    %616 = vector.broadcast %614 : vector<4x1xf32> to vector<4x512xf32>
    %617 = vector.broadcast %615 : vector<1x512xf32> to vector<4x512xf32>
    %618 = arith.mulf %616, %617 : vector<4x512xf32>
    %619 = arith.addf %612, %618 : vector<4x512xf32>
    %c0_23 = arith.constant 0 : index
    %c0_24 = arith.constant 0 : index
    %620 = vector.load %arg7[%c0_23, %c0_24] : memref<4x1xf32, #tpu.memory_space<vmem>>, vector<4x1xf32>
    %c0_25 = arith.constant 0 : index
    %c0_26 = arith.constant 0 : index
    %621 = vector.load %arg8[%c0_25, %c0_26] : memref<4x1xf32, #tpu.memory_space<vmem>>, vector<4x1xf32>
    %cst_27 = arith.constant dense<0.000000e+00> : vector<4xf32>
    %622 = vector.multi_reduction <add>, %619, %cst_27 [1] : vector<4x512xf32> to vector<4xf32>
    %623 = vector.shape_cast %622 : vector<4xf32> to vector<4x1xf32>
    %624 = arith.mulf %619, %619 : vector<4x512xf32>
    %cst_28 = arith.constant dense<0.000000e+00> : vector<4xf32>
    %625 = vector.multi_reduction <add>, %624, %cst_28 [1] : vector<4x512xf32> to vector<4xf32>
    %626 = vector.shape_cast %625 : vector<4xf32> to vector<4x1xf32>
    %cst_29 = arith.constant 0.001953125 : f32
    %627 = vector.broadcast %cst_29 : f32 to vector<4x1xf32>
    %628 = arith.mulf %623, %627 : vector<4x1xf32>
    %cst_30 = arith.constant 0.001953125 : f32
    %629 = vector.broadcast %cst_30 : f32 to vector<4x1xf32>
    %630 = arith.mulf %626, %629 : vector<4x1xf32>
    %631 = arith.mulf %628, %628 : vector<4x1xf32>
    %632 = arith.subf %630, %631 : vector<4x1xf32>
    %633 = vector.broadcast %628 : vector<4x1xf32> to vector<4x512xf32>
    %634 = arith.subf %619, %633 : vector<4x512xf32>
    %cst_31 = arith.constant 9.99999974E-6 : f32
    %635 = vector.broadcast %cst_31 : f32 to vector<4x1xf32>
    %636 = arith.addf %632, %635 : vector<4x1xf32>
    %637 = math.rsqrt %636 : vector<4x1xf32>
    %638 = vector.broadcast %637 : vector<4x1xf32> to vector<4x512xf32>
    %639 = arith.mulf %634, %638 : vector<4x512xf32>
    %640 = vector.broadcast %620 : vector<4x1xf32> to vector<4x512xf32>
    %641 = arith.mulf %639, %640 : vector<4x512xf32>
    %642 = vector.broadcast %621 : vector<4x1xf32> to vector<4x512xf32>
    %643 = arith.addf %641, %642 : vector<4x512xf32>
    %644 = arith.addf %643, %0 : vector<4x512xf32>
    %cst_32 = arith.constant 0.000000e+00 : f32
    %645 = vector.broadcast %cst_32 : f32 to vector<4x512xf32>
    %646 = arith.maximumf %644, %645 : vector<4x512xf32>
    %c0_33 = arith.constant 0 : index
    %c0_34 = arith.constant 0 : index
    %647 = vector.load %arg9[%c0_33, %c0_34] : memref<4x512xf32, #tpu.memory_space<vmem>>, vector<4x512xf32>
    tpu.vector_store %arg9[%c0_33, %c0_34], %646 {strides = array<i32>} : memref<4x512xf32, #tpu.memory_space<vmem>>, vector<4x512xf32>,
    return
  }
  func.func @transform_0(%arg0: i32) -> (i32, i32) {
    %c0_i32 = arith.constant 0 : i32
    %c0_i32_0 = arith.constant 0 : i32
    %c0_i32_1 = arith.constant 0 : i32
    return %c0_i32, %c0_i32_0 : i32, i32
  }
  func.func @transform_1(%arg0: i32) -> (i32, i32, i32) {
    %c0_i32 = arith.constant 0 : i32
    %c0_i32_0 = arith.constant 0 : i32
    %c0_i32_1 = arith.constant 0 : i32
    %c0_i32_2 = arith.constant 0 : i32
    return %c0_i32, %c0_i32_0, %c0_i32_1 : i32, i32, i32
  }
  func.func @transform_2(%arg0: i32) -> (i32, i32, i32) {
    %c0_i32 = arith.constant 0 : i32
    %c0_i32_0 = arith.constant 0 : i32
    %c0_i32_1 = arith.constant 0 : i32
    %c0_i32_2 = arith.constant 0 : i32
    return %c0_i32, %c0_i32_0, %c0_i32_1 : i32, i32, i32
  }
  func.func @transform_3(%arg0: i32) -> (i32, i32) {
    %c0_i32 = arith.constant 0 : i32
    %c0_i32_0 = arith.constant 0 : i32
    %c0_i32_1 = arith.constant 0 : i32
    return %c0_i32, %c0_i32_0 : i32, i32
  }
  func.func @transform_4(%arg0: i32) -> (i32, i32) {
    %c0_i32 = arith.constant 0 : i32
    %c0_i32_0 = arith.constant 0 : i32
    %c0_i32_1 = arith.constant 0 : i32
    return %c0_i32, %c0_i32_0 : i32, i32
  }
  func.func @transform_5(%arg0: i32) -> (i32, i32, i32) {
    %c0_i32 = arith.constant 0 : i32
    %c0_i32_0 = arith.constant 0 : i32
    %c0_i32_1 = arith.constant 0 : i32
    %c0_i32_2 = arith.constant 0 : i32
    return %c0_i32, %c0_i32_0, %c0_i32_1 : i32, i32, i32
  }
  func.func @transform_6(%arg0: i32) -> (i32, i32) {
    %c0_i32 = arith.constant 0 : i32
    %c0_i32_0 = arith.constant 0 : i32
    %c0_i32_1 = arith.constant 0 : i32
    return %c0_i32, %c0_i32_0 : i32, i32
  }
  func.func @transform_7(%arg0: i32) -> (i32, i32) {
    %c0_i32 = arith.constant 0 : i32
    %c0_i32_0 = arith.constant 0 : i32
    %c0_i32_1 = arith.constant 0 : i32
    return %c0_i32, %c0_i32_0 : i32, i32
  }
  func.func @transform_8(%arg0: i32) -> (i32, i32) {
    %c0_i32 = arith.constant 0 : i32
    %c0_i32_0 = arith.constant 0 : i32
    %c0_i32_1 = arith.constant 0 : i32
    return %c0_i32, %c0_i32_0 : i32, i32
  }
}

</mosaic_0001>

<bundles_post_ra>
// kernel: residual_forward.1
= control target key start
LH: loop header
LB: loop body
LE: loop exit
PB: predicated region body
PF: predicated region fallthrough
CT: control target
= control target key end

     0   :  { %v3258_v0 = vmov 0   ;;  %s3259_s13 = smov 17   ;;  %s3260_s15 = smov 1   ;;  %vm233_vm0 = vcmask 7168   ;;  %vm128_vm1 = vcmask 138240   ;;  %vm429_vm2 = vcmask 15360   ;;  %s5569_s2 = inlined_call_operand.vmem [shape: f32[36,4,1], index: 2, kind: input, shape index: {}]   ;;  %s5570_s0 = inlined_call_operand.vmem [shape: f32[4,512], index: 0, kind: input, shape index: {}]   ;;  %s5571_s1 = inlined_call_operand.vmem [shape: f32[9,1,512], index: 1, kind: input, shape index: {}]   ;;  %s5572_s3 = inlined_call_operand.vmem [shape: f32[4,1], index: 3, kind: input, shape index: {}]   ;;  %s5573_s4 = inlined_call_operand.vmem [shape: f32[4,1], index: 4, kind: input, shape index: {}]   ;;  %s5574_s5 = inlined_call_operand.vmem [shape: f32[36,4,1], index: 5, kind: input, shape index: {}]   ;;  %s5575_s6 = inlined_call_operand.vmem [shape: f32[4,1], index: 6, kind: input, shape index: {}]   ;;  %s5576_s7 = inlined_call_operand.vmem [shape: f32[4,1], index: 7, kind: input, shape index: {}]   ;;  %s5577_s8 = inlined_call_operand.vmem [shape: f32[4,512], index: 8, kind: output, shape index: {}]  }
   0x1   :  { %3251 = vset.pattern.permute.xlu2 %v3258_v0  ;;  %v39_v1 = vld [vmem:[%s5569_s2] sm:$0xf]  ;;  %v3325_v2 = vld [vmem:[%s5570_s0 + $0x8] sm:$0xff]  ;;  %3253 = vset.pattern.permute.xlu1 %v3258_v0  ;;  %v40_v4 = vld [vmem:[%s5569_s2 + $0x4] sm:$0xf]  ;;  %s3261_s22 = smov 2  }
   0x2   :  { %5681 = vst [vmem:[#allocation2_spill] sm:$0xff] %v3325_v2  ;;  %154 = vperm.xlu2 %3251, %v39_v1   ;;  %v3331_v3 = vld [vmem:[%s5570_s0] sm:$0xff]  ;;  %3252 = vset.pattern.permute.xlu0 %v3258_v0  ;;  %v42_v12 = vld [vmem:[%s5569_s2 + $0xc] sm:$0xf]  ;;  %v41_v13 = vld [vmem:[%s5569_s2 + $0x8] sm:$0xf] }
   0x3   :  { %115 = vst [vmem:[#allocation1 + $0x10] ss:$2 sm:$0xff] %v3325_v2  ;;  %v32_v8 = vld [vmem:[%s5571_s1 + $0x4] sm:$0xf]  ;;  %v33_v14 = vld [vmem:[%s5571_s1 + $0x8] sm:$0xf] }
   0x4   :  { %5682 = vst [vmem:[#allocation3_spill] sm:$0xff] %v3331_v3  ;;  %v221_v10 = vperm.slane %v32_v8, 0  ;;  %v223_v11 = vperm.slane %v32_v8, 2  ;;  %v418_v15 = vperm.slane %v33_v14, 1  ;;  %v222_v16 = vperm.slane %v32_v8, 1  ;;  %s3262_s0 = smov 127  }
   0x5   :  { %113 = vst [vmem:[#allocation1] ss:$2 sm:$0xff] %v3331_v3  ;;  %v224_v17 = vperm.slane %v32_v8, 3  ;;  %v47_v18 = vld [vmem:[%s5569_s2 + $0x20] sm:$0xf]  ;;  %v419_v20 = vperm.slane %v33_v14, 2 }
   0x6   :  { %v43_v19 = vld [vmem:[%s5569_s2 + $0x10] sm:$0xf]  ;;  %v48_v21 = vld [vmem:[%s5569_s2 + $0x24] sm:$0xf]  ;;  %v44_v22 = vld [vmem:[%s5569_s2 + $0x14] sm:$0xf] }
   0x7   :  { %v45_v23 = vld [vmem:[%s5569_s2 + $0x18] sm:$0xf]  ;;  %v46_v24 = vld [vmem:[%s5569_s2 + $0x1c] sm:$0xf]  ;;  %v417_v25 = vperm.slane %v33_v14, 0  ;;  %v420_v26 = vperm.slane %v33_v14, 3 }
   0x8   :  { %s3263_s14 = smov 126   ;;  %s3264_s21 = smov 16   ;;  %vm625_vm3 = vcmask 130048   ;;  %vm921_vm4 = vcmask 146432   ;;  %vm1117_vm5 = vcmask 261120   ;;  %vm1313_vm6 = vcmask 269312  }
   0x9   :  { %s3265_s24 = smov 112   ;;  %s3267_s25 = smov 110   ;;  %vm1509_vm7 = vcmask 277504   ;;  %vm277_vm8 = vcmask 1039360   ;;  %vm473_vm9 = vcmask 1031168   ;;  %vm669_vm10 = vcmask 916480  }
   0xa   :  { %v118_v5 = vld.sshfl [vmem:[#allocation1 + $0x10] sm:$0xff pattern:$0x75316420]  ;;  %v119_v6 = vld.sshfl [vmem:[#allocation1 + $0x18] sm:$0xff pattern:$0x75316420]  ;;  %171 = vperm.xlu2 %3251, %v40_v4  }
   0xb   :  { %124 = vrot.lane.b32.xlu1 %v118_v5, %s3259_s13  ;;  %3202 = vst [vmem:[#allocation1 + $0x10] ss:$2 sm:$0xff] %v3325_v2  ;;  %s3268_s12 = smov 32   ;;  %s3269_s17 = smov 96   ;;  %vm965_vm11 = vcmask 900096   ;;  %vm1161_vm12 = vcmask 785408  }
   0xc   :  { %v116_v7 = vld.sshfl [vmem:[#allocation1] sm:$0xff pattern:$0x75316420]  ;;  %v117_v9 = vld.sshfl [vmem:[#allocation1 + $0x8] sm:$0xff pattern:$0x75316420] }
   0xd   :  { %120 = vrot.lane.b32.xlu0 %v116_v7, %s3259_s13  ;;  %3200 = vst [vmem:[#allocation1] ss:$2 sm:$0xff] %v3331_v3  ;;  %s3270_s28 = smov 33   ;;  %s3271_s9 = smov 95   ;;  %vm1357_vm13 = vcmask 777216   ;;  %vm1553_vm14 = vcmask 769024  }
   0xe   :  { %s3273_s26 = smov 94   ;;  %vm1694_vm15 = vcmask 1043456  }
  0x12   :  { %225 = vrot.lane.b32.xlu2 %v221_v10, %s3260_s15 }
  0x13   :  { %126 = vrot.lane.b32.xlu1 %v119_v6, %s3259_s13 }
  0x15   :  { %122 = vrot.lane.b32.xlu0 %v117_v9, %s3259_s13 }
  0x1a   :  { %229 = vrot.lane.b32.xlu2 %v223_v11, %s3260_s15 }
  0x1b   :  { %205 = vperm.xlu1 %3253, %v42_v12  }
  0x1d   :  { %188 = vperm.xlu0 %3252, %v41_v13  }
  0x22   :  { %423 = vrot.lane.b32.xlu2 %v418_v15, %s3261_s22 }
  0x23   :  { %227 = vrot.lane.b32.xlu1 %v222_v16, %s3260_s15 }
  0x25   :  { %231 = vrot.lane.b32.xlu0 %v224_v17, %s3260_s15 }
  0x2a   :  { %445 = vperm.xlu2 %3251, %v47_v18  }
  0x2b   :  { %249 = vperm.xlu1 %3253, %v43_v19  }
  0x2d   :  { %425 = vrot.lane.b32.xlu0 %v419_v20, %s3261_s22 }
  0x32   :  { %488 = vperm.xlu2 %3251, %v48_v21  }
  0x33   :  { %292 = vperm.xlu1 %3253, %v44_v22  }
  0x3b   :  { %334 = vperm.xlu1 %3253, %v45_v23  }
  0x43   :  { %376 = vperm.xlu1 %3253, %v46_v24  }
  0x4b   :  { %421 = vrot.lane.b32.xlu1 %v417_v25, %s3261_s22 }
  0x53   :  { %427 = vrot.lane.b32.xlu1 %v420_v26, %s3261_s22 }
  0x5c   :  { %v3373_v27 = vpop.permute.xlu2 %154 }
  0x64   :  { %v3375_v30 = vpop.permute.xlu2 %171 }
  0x6c   :  { %v3377_v33 = vpop.permute.xlu2 %225 }
  0x6d   :  { %5683 = vst [vmem:[#allocation4_spill] sm:$0xff] %v3377_v33 }
  0x74   :  { %v230_v36 = vpop.permute.xlu2 %229 }
  0x7c   :  { %v424_v18 = vpop.permute.xlu2 %423 }
  0x7d   :  { %v125_v28 = vpop.permute.xlu1 %124 }
  0x7f   :  { %v121_v29 = vpop.permute.xlu0 %120 }
  0x80   :  { %v3391_v40 = vsel %vm128_vm1, 0.0, %v121_v29 }
  0x81   :  { %v3407_v45 = vmul.f32 %v3377_v33, %v3391_v40 }
  0x83   :  { %v252_v47 = vperm.slane %v3407_v45, 0  ;;  %v295_v5 = vperm.slane %v3407_v45, 1  ;;  %v337_v19 = vperm.slane %v3407_v45, 2 }
  0x85   :  { %v127_v31 = vpop.permute.xlu1 %126 }
  0x86   :  { %v3418_v55 = vsel %vm128_vm1, %v125_v28, %v127_v31  ;;  %v3421_v56 = vsel %vm128_vm1, %v127_v31, 0.0 }
  0x87   :  { %v123_v32 = vpop.permute.xlu0 %122 }
  0x88   :  { %v3394_v41 = vsel %vm128_vm1, %v121_v29, %v123_v32  ;;  %v3397_v42 = vsel %vm128_vm1, %v123_v32, %v125_v28  ;;  %v446_v28 = vpop.permute.xlu2 %445 }
  0x8d   :  { %v3379_v34 = vpop.permute.xlu1 %205 }
  0x8f   :  { %v3381_v35 = vpop.permute.xlu0 %188 }
  0x95   :  { %v228_v37 = vpop.permute.xlu1 %227 }
  0x96   :  { %v3385_v38 = vsel %vm233_vm0, %v3377_v33, %v228_v37  ;;  %v3388_v39 = vsel %vm233_vm0, %v228_v37, %v230_v36 }
  0x97   :  { %5684 = vst [vmem:[#allocation5_spill] sm:$0xff] %v3385_v38  ;;  %v3401_v43 = vmul.f32 %v3385_v38, %v3394_v41  ;;  %v244_v44 = vmul.f32 %v3388_v39, %v3397_v42  ;;  %v3409_v46 = vpop.permute.xlu0 %231 }
  0x98   :  { %5685 = vst [vmem:[#allocation6_spill] sm:$0xff] %v3388_v39  ;;  %v3415_v50 = vsel %vm233_vm0, %v230_v36, %v3409_v46  ;;  %v3431_v58 = vmul.f32 %v3409_v46, %v3421_v56 }
  0x99   :  { %5686 = vst [vmem:[#allocation7_spill] sm:$0xff] %v3409_v46  ;;  %v254_v48 = vperm.slane %v244_v44, 0  ;;  %v253_v49 = vperm.slane %v3401_v43, 0  ;;  %v3425_v57 = vmul.f32 %v3415_v50, %v3418_v55  ;;  %v297_v59 = vperm.slane %v244_v44, 1 }
  0x9a   :  { %5687 = vst [vmem:[#allocation8_spill] sm:$0xff] %v3415_v50  ;;  %v256_v62 = vperm.slane %v3431_v58, 0  ;;  %v339_v4 = vperm.slane %v244_v44, 2  ;;  %v296_v7 = vperm.slane %v3401_v43, 1  ;;  %v381_v11 = vperm.slane %v244_v44, 3 }
  0x9b   :  { %v255_v60 = vperm.slane %v3425_v57, 0  ;;  %v298_v12 = vperm.slane %v3425_v57, 1  ;;  %v299_v14 = vperm.slane %v3431_v58, 1  ;;  %v338_v21 = vperm.slane %v3401_v43, 2 }
  0x9c   :  { %v340_v31 = vperm.slane %v3425_v57, 2  ;;  %v341_v36 = vperm.slane %v3431_v58, 2 }
  0x9d   :  { %v250_v51 = vpop.permute.xlu1 %249 }
  0x9e   :  { %v257_v52 = vmul.f32 %v252_v47, %v250_v51  ;;  %v259_v53 = vmul.f32 %v254_v48, %v250_v51  ;;  %v258_v54 = vmul.f32 %v253_v49, %v250_v51  ;;  %v260_v0 = vmul.f32 %v255_v60, %v250_v51 }
  0x9f   :  { %v261_v1 = vmul.f32 %v256_v62, %v250_v51  ;;  %v379_v51 = vperm.slane %v3407_v45, 3  ;;  %v426_v60 = vpop.permute.xlu0 %425  ;;  %v382_v45 = vperm.slane %v3425_v57, 3 }
  0xa0   :  { %267 = vrot.lane.b32.xlu2 %v257_v52, %s3262_s0  ;;  %271 = vrot.lane.b32.xlu1 %v259_v53, %s3262_s0  ;;  %v380_v52 = vperm.slane %v3401_v43, 3  ;;  %v3483_v62 = vsel %vm429_vm2, %v424_v18, %v426_v60  ;;  %v383_v43 = vperm.slane %v3431_v58, 3 }
  0xa1   :  { %269 = vrot.lane.b32.xlu0 %v258_v54, %s3262_s0  ;;  %5691 = vst [vmem:[#allocation12_spill] sm:$0xff] %v3483_v62 }
  0xa5   :  { %v293_v61 = vpop.permute.xlu1 %292 }
  0xa6   :  { %v302_v63 = vmul.f32 %v297_v59, %v293_v61  ;;  %v300_v9 = vmul.f32 %v295_v5, %v293_v61  ;;  %v301_v10 = vmul.f32 %v296_v7, %v293_v61  ;;  %v303_v16 = vmul.f32 %v298_v12, %v293_v61 }
  0xa7   :  { %v304_v17 = vmul.f32 %v299_v14, %v293_v61  ;;  %v489_v61 = vpop.permute.xlu2 %488 }
  0xa8   :  { %314 = vrot.lane.b32.xlu1 %v302_v63, %s3262_s0  ;;  %273 = vrot.lane.b32.xlu2 %v260_v0, %s3262_s0  ;;  %v3490_v0 = vmul.f32 %v3483_v62, %v3397_v42 }
  0xa9   :  { %275 = vrot.lane.b32.xlu0 %v261_v1, %s3262_s0 }
  0xaa   :  { %v450_v57 = vperm.slane %v3490_v0, 0  ;;  %v493_v12 = vperm.slane %v3490_v0, 1 }
  0xac   :  { %v498_v14 = vmul.f32 %v493_v12, %v489_v61 }
  0xad   :  { %v335_v6 = vpop.permute.xlu1 %334 }
  0xae   :  { %v344_v8 = vmul.f32 %v339_v4, %v335_v6  ;;  %v342_v23 = vmul.f32 %v337_v19, %v335_v6  ;;  %v343_v25 = vmul.f32 %v338_v21, %v335_v6  ;;  %v345_v44 = vmul.f32 %v340_v31, %v335_v6 }
  0xaf   :  { %v346_v47 = vmul.f32 %v341_v36, %v335_v6 }
  0xb0   :  { %356 = vrot.lane.b32.xlu1 %v344_v8, %s3262_s0  ;;  %310 = vrot.lane.b32.xlu2 %v300_v9, %s3262_s0  ;;  %v455_v9 = vmul.f32 %v450_v57, %v446_v28 }
  0xb1   :  { %312 = vrot.lane.b32.xlu0 %v301_v10, %s3262_s0 }
  0xb5   :  { %v377_v13 = vpop.permute.xlu1 %376 }
  0xb6   :  { %v386_v15 = vmul.f32 %v381_v11, %v377_v13  ;;  %v384_v53 = vmul.f32 %v379_v51, %v377_v13  ;;  %v385_v54 = vmul.f32 %v380_v52, %v377_v13  ;;  %v387_v1 = vmul.f32 %v382_v45, %v377_v13 }
  0xb7   :  { %v388_v5 = vmul.f32 %v383_v43, %v377_v13 }
  0xb8   :  { %398 = vrot.lane.b32.xlu1 %v386_v15, %s3262_s0  ;;  %316 = vrot.lane.b32.xlu2 %v303_v16, %s3262_s0 }
  0xb9   :  { %318 = vrot.lane.b32.xlu0 %v304_v17, %s3262_s0  ;;  %v49_v17 = vld [vmem:[%s5569_s2 + $0x28] sm:$0xf] }
  0xbd   :  { %v3450_v20 = vpop.permute.xlu1 %421 }
  0xbe   :  { %5688 = vst [vmem:[#allocation9_spill] sm:$0xff] %v3450_v20  ;;  %v3455_v22 = vsel %vm429_vm2, %v3450_v20, %v424_v18  ;;  %v3494_v4 = vmul.f32 %v3450_v20, %v3391_v40 }
  0xbf   :  { %5689 = vst [vmem:[#allocation10_spill] sm:$0xff] %v3455_v22  ;;  %v3459_v24 = vmul.f32 %v3455_v22, %v3394_v41 }
  0xc0   :  { %352 = vrot.lane.b32.xlu2 %v342_v23, %s3262_s0  ;;  %v448_v58 = vperm.slane %v3494_v4, 0  ;;  %v491_v16 = vperm.slane %v3494_v4, 1  ;;  %v533_v52 = vperm.slane %v3494_v4, 2 }
  0xc1   :  { %354 = vrot.lane.b32.xlu0 %v343_v25, %s3262_s0  ;;  %v449_v26 = vperm.slane %v3459_v24, 0  ;;  %v492_v59 = vperm.slane %v3459_v24, 1  ;;  %v534_v51 = vperm.slane %v3459_v24, 2 }
  0xc2   :  { %v453_v11 = vmul.f32 %v448_v58, %v446_v28  ;;  %v496_v18 = vmul.f32 %v491_v16, %v489_v61  ;;  %v576_v58 = vperm.slane %v3459_v24, 3 }
  0xc3   :  { %v454_v29 = vmul.f32 %v449_v26, %v446_v28  ;;  %v497_v63 = vmul.f32 %v492_v59, %v489_v61 }
  0xc5   :  { %v3465_v32 = vpop.permute.xlu1 %427  ;;  %465 = vrot.lane.b32.xlu1 %v454_v29, %s3263_s14 }
  0xc6   :  { %5690 = vst [vmem:[#allocation11_spill] sm:$0xff] %v3465_v32  ;;  %v3471_v37 = vmul.f32 %v3465_v32, %v3421_v56  ;;  %v3503_v8 = vsel %vm429_vm2, %v426_v60, %v3465_v32 }
  0xc7   :  { %5692 = vst [vmem:[#allocation13_spill] sm:$0xff] %v3503_v8  ;;  %v3508_v10 = vmul.f32 %v3503_v8, %v3418_v55 }
  0xc8   :  { %358 = vrot.lane.b32.xlu2 %v345_v44, %s3262_s0  ;;  %v452_v48 = vperm.slane %v3471_v37, 0  ;;  %v495_v6 = vperm.slane %v3471_v37, 1  ;;  %v579_v24 = vperm.slane %v3471_v37, 3 }
  0xc9   :  { %360 = vrot.lane.b32.xlu0 %v346_v47, %s3262_s0  ;;  %v451_v13 = vperm.slane %v3508_v10, 0  ;;  %v494_v19 = vperm.slane %v3508_v10, 1  ;;  %v536_v45 = vperm.slane %v3508_v10, 2 }
  0xca   :  { %v457_v49 = vmul.f32 %v452_v48, %v446_v28  ;;  %v500_v7 = vmul.f32 %v495_v6, %v489_v61 }
  0xcb   :  { %v456_v15 = vmul.f32 %v451_v13, %v446_v28  ;;  %v499_v21 = vmul.f32 %v494_v19, %v489_v61  ;;  %v537_v61 = vperm.slane %v3471_v37, 2 }
  0xcd   :  { %471 = vrot.lane.b32.xlu1 %v457_v49, %s3263_s14  ;;  %v535_v49 = vperm.slane %v3490_v0, 2 }
  0xd0   :  { %394 = vrot.lane.b32.xlu2 %v384_v53, %s3262_s0 }
  0xd1   :  { %396 = vrot.lane.b32.xlu0 %v385_v54, %s3262_s0 }
  0xd5   :  { %508 = vrot.lane.b32.xlu1 %v497_v63, %s3263_s14  ;;  %v50_v63 = vld [vmem:[%s5569_s2 + $0x2c] sm:$0xf] }
  0xd8   :  { %400 = vrot.lane.b32.xlu2 %v387_v1, %s3262_s0 }
  0xd9   :  { %402 = vrot.lane.b32.xlu0 %v388_v5, %s3262_s0 }
  0xdd   :  { %514 = vrot.lane.b32.xlu1 %v500_v7, %s3263_s14  ;;  %v577_v7 = vperm.slane %v3490_v0, 3  ;;  %v34_v0 = vld [vmem:[%s5571_s1 + $0xc] sm:$0xf] }
  0xde   :  { %v613_v16 = vperm.slane %v34_v0, 0 }
  0xe0   :  { %467 = vrot.lane.b32.xlu2 %v455_v9, %s3263_s14  ;;  %v575_v9 = vperm.slane %v3494_v4, 3  ;;  %v578_v4 = vperm.slane %v3508_v10, 3  ;;  %v51_v10 = vld [vmem:[%s5569_s2 + $0x30] sm:$0xf] }
  0xe1   :  { %463 = vrot.lane.b32.xlu0 %v453_v11, %s3263_s14 }
  0xe8   :  { %510 = vrot.lane.b32.xlu2 %v498_v14, %s3263_s14 }
  0xe9   :  { %469 = vrot.lane.b32.xlu0 %v456_v15, %s3263_s14 }
  0xf0   :  { %530 = vperm.xlu2 %3251, %v49_v17  }
  0xf1   :  { %506 = vrot.lane.b32.xlu0 %v496_v18, %s3263_s14 }
  0xf9   :  { %512 = vrot.lane.b32.xlu0 %v499_v21, %s3263_s14  ;;  %v616_v21 = vperm.slane %v34_v0, 3 }
  0xfa   :  { %v3523_v23 = vpop.permute.xlu2 %267 }
 0x102   :  { %v3525_v25 = vpop.permute.xlu2 %273 }
 0x10a   :  { %v3527_v26 = vpop.permute.xlu2 %310 }
 0x112   :  { %v3529_v28 = vpop.permute.xlu2 %316  ;;  %v3581_v37 = vpop.permute.xlu1 %271 }
 0x113   :  { %v3556_v5 = vpop.permute.xlu0 %269 }
 0x11a   :  { %v3531_v29 = vpop.permute.xlu2 %352 }
 0x11b   :  { %v3558_v6 = vpop.permute.xlu0 %275 }
 0x122   :  { %v3533_v31 = vpop.permute.xlu2 %358 }
 0x123   :  { %v3565_v15 = vpop.permute.xlu0 %312 }
 0x12a   :  { %v3535_v36 = vpop.permute.xlu2 %394 }
 0x12b   :  { %v3576_v19 = vpop.permute.xlu0 %318 }
 0x132   :  { %v3537_v44 = vpop.permute.xlu2 %400 }
 0x13a   :  { %v3539_v47 = vpop.permute.xlu2 %467 }
 0x142   :  { %v3541_v48 = vpop.permute.xlu2 %510 }
 0x14a   :  { %v531_v53 = vpop.permute.xlu2 %530 }
 0x14b   :  { %v540_v54 = vmul.f32 %v535_v49, %v531_v53  ;;  %v539_v59 = vmul.f32 %v534_v51, %v531_v53  ;;  %v538_v60 = vmul.f32 %v533_v52, %v531_v53  ;;  %v542_v43 = vmul.f32 %v537_v61, %v531_v53  ;;  %v3579_v52 = vpop.permute.xlu0 %354 }
 0x14c   :  { %v541_v1 = vmul.f32 %v536_v45, %v531_v53  ;;  %v615_v49 = vperm.slane %v34_v0, 2  ;;  %v614_v51 = vperm.slane %v34_v0, 1 }
 0x14d   :  { %552 = vrot.lane.b32.xlu2 %v540_v54, %s3263_s14  ;;  %550 = vrot.lane.b32.xlu1 %v539_v59, %s3263_s14  ;;  %v3588_v54 = vpop.permute.xlu1 %314 }
 0x14e   :  { %548 = vrot.lane.b32.xlu0 %v538_v60, %s3263_s14 }
 0x153   :  { %v3586_v53 = vpop.permute.xlu0 %360 }
 0x155   :  { %572 = vperm.xlu2 %3251, %v50_v63   ;;  %556 = vrot.lane.b32.xlu1 %v542_v43, %s3263_s14  ;;  %v3592_v60 = vpop.permute.xlu1 %356 }
 0x156   :  { %554 = vrot.lane.b32.xlu0 %v541_v1, %s3263_s14 }
 0x15b   :  { %v3590_v59 = vpop.permute.xlu0 %396 }
 0x15d   :  { %v3596_v63 = vpop.permute.xlu1 %398 }
 0x163   :  { %v3594_v61 = vpop.permute.xlu0 %402 }
 0x165   :  { %v3598_v45 = vpop.permute.xlu1 %465 }
 0x16b   :  { %v3600_v43 = vpop.permute.xlu0 %463 }
 0x16d   :  { %v3602_v1 = vpop.permute.xlu1 %471 }
 0x1a7   :  { %v3560_v57 = vpop.permute.xlu2 %552 }
 0x1af   :  { %v573_v11 = vpop.permute.xlu2 %572 }
 0x1b0   :  { %v582_v12 = vmul.f32 %v577_v7, %v573_v11  ;;  %v581_v13 = vmul.f32 %v576_v58, %v573_v11  ;;  %v580_v14 = vmul.f32 %v575_v9, %v573_v11  ;;  %v584_v17 = vmul.f32 %v579_v24, %v573_v11  ;;  %v3604_v7 = vpop.permute.xlu0 %469  ;;  %v3606_v58 = vpop.permute.xlu1 %508 }
 0x1b1   :  { %v583_v18 = vmul.f32 %v578_v4, %v573_v11 }
 0x1b2   :  { %594 = vrot.lane.b32.xlu2 %v582_v12, %s3263_s14  ;;  %592 = vrot.lane.b32.xlu1 %v581_v13, %s3263_s14 }
 0x1b3   :  { %590 = vrot.lane.b32.xlu0 %v580_v14, %s3263_s14 }
 0x1b8   :  { %v3608_v9 = vpop.permute.xlu0 %506  ;;  %v3610_v11 = vpop.permute.xlu1 %514 }
 0x1ba   :  { %617 = vrot.lane.b32.xlu2 %v613_v16, %s3264_s21  ;;  %598 = vrot.lane.b32.xlu1 %v584_v17, %s3263_s14 }
 0x1bb   :  { %596 = vrot.lane.b32.xlu0 %v583_v18, %s3263_s14 }
 0x1c0   :  { %v3612_v12 = vpop.permute.xlu0 %512  ;;  %v3614_v13 = vpop.permute.xlu1 %550 }
 0x1c2   :  { %623 = vrot.lane.b32.xlu2 %v616_v21, %s3264_s21  ;;  %621 = vrot.lane.b32.xlu1 %v615_v49, %s3264_s21 }
 0x1c3   :  { %619 = vrot.lane.b32.xlu0 %v614_v51, %s3264_s21  ;;  %s3266_s21 = smov 18  }
 0x1c8   :  { %v3616_v14 = vpop.permute.xlu0 %548  ;;  %v3618_v0 = vpop.permute.xlu1 %556 }
 0x1cb   :  { %641 = vperm.xlu0 %3252, %v51_v10  }
 0x1d0   :  { %v3620_v16 = vpop.permute.xlu0 %554 }
 0x20c   :  { %v3626_v17 = vpop.permute.xlu2 %594 }
 0x20d   :  { %5695 = vst [vmem:[#allocation16_spill] sm:$0xff] %v3626_v17 }
 0x214   :  { %v3632_v49 = vpop.permute.xlu2 %617 }
 0x215   :  { %5698 = vst [vmem:[#allocation19_spill] sm:$0xff] %v3632_v49  ;;  %v3641_v20 = vmul.f32 %v3632_v49, %v3391_v40 }
 0x217   :  { %v644_v46 = vperm.slane %v3641_v20, 0 }
 0x224   :  { %v3622_v24 = vpop.permute.xlu1 %592 }
 0x225   :  { %5693 = vst [vmem:[#allocation14_spill] sm:$0xff] %v3622_v24  ;;  %v3624_v4 = vpop.permute.xlu0 %590 }
 0x226   :  { %5694 = vst [vmem:[#allocation15_spill] sm:$0xff] %v3624_v4 }
 0x22c   :  { %v3628_v18 = vpop.permute.xlu1 %598 }
 0x22d   :  { %5696 = vst [vmem:[#allocation17_spill] sm:$0xff] %v3628_v18  ;;  %v3630_v21 = vpop.permute.xlu0 %596 }
 0x22e   :  { %5697 = vst [vmem:[#allocation18_spill] sm:$0xff] %v3630_v21 }
 0x234   :  { %v622_v51 = vpop.permute.xlu1 %621 }
 0x235   :  { %v620_v10 = vpop.permute.xlu0 %619 }
 0x236   :  { %v3635_v8 = vsel %vm625_vm3, %v3632_v49, %v620_v10  ;;  %v3637_v32 = vsel %vm625_vm3, %v620_v10, %v622_v51  ;;  %v3654_v10 = vpop.permute.xlu2 %623 }
 0x237   :  { %5699 = vst [vmem:[#allocation20_spill] sm:$0xff] %v3635_v8  ;;  %v3645_v22 = vmul.f32 %v3635_v8, %v3394_v41  ;;  %v3649_v62 = vmul.f32 %v3637_v32, %v3397_v42  ;;  %v3657_v49 = vsel %vm625_vm3, %v622_v51, %v3654_v10  ;;  %v3661_v3 = vmul.f32 %v3654_v10, %v3421_v56 }
 0x238   :  { %5700 = vst [vmem:[#allocation21_spill] sm:$0xff] %v3637_v32  ;;  %v3667_v32 = vmul.f32 %v3657_v49, %v3418_v55 }
 0x239   :  { %v646_v39 = vperm.slane %v3649_v62, 0  ;;  %v645_v50 = vperm.slane %v3645_v22, 0  ;;  %5701 = vst [vmem:[#allocation22_spill] sm:$0xff] %v3654_v10  ;;  %v648_v51 = vperm.slane %v3661_v3, 0 }
 0x23a   :  { %5702 = vst [vmem:[#allocation23_spill] sm:$0xff] %v3657_v49  ;;  %v687_v49 = vperm.slane %v3641_v20, 1 }
 0x23d   :  { %v642_v38 = vpop.permute.xlu0 %641 }
 0x23e   :  { %v651_v33 = vmul.f32 %v646_v39, %v642_v38  ;;  %v650_v2 = vmul.f32 %v645_v50, %v642_v38  ;;  %v649_v8 = vmul.f32 %v644_v46, %v642_v38  ;;  %v52_v39 = vld [vmem:[%s5569_s2 + $0x34] sm:$0xf]  ;;  %v647_v46 = vperm.slane %v3667_v32, 0 }
 0x23f   :  { %v653_v50 = vmul.f32 %v648_v51, %v642_v38  ;;  %v690_v51 = vperm.slane %v3667_v32, 1 }
 0x240   :  { %663 = vrot.lane.b32.xlu0 %v651_v33, %s3265_s24  ;;  %661 = vrot.lane.b32.xlu2 %v650_v2, %s3265_s24  ;;  %v652_v10 = vmul.f32 %v647_v46, %v642_v38  ;;  %v689_v33 = vperm.slane %v3649_v62, 1  ;;  %v691_v38 = vperm.slane %v3661_v3, 1 }
 0x241   :  { %659 = vrot.lane.b32.xlu1 %v649_v8, %s3265_s24  ;;  %v688_v8 = vperm.slane %v3645_v22, 1 }
 0x248   :  { %684 = vperm.xlu0 %3252, %v52_v39   ;;  %667 = vrot.lane.b32.xlu2 %v653_v50, %s3265_s24 }
 0x249   :  { %665 = vrot.lane.b32.xlu1 %v652_v10, %s3265_s24  ;;  %v53_v10 = vld [vmem:[%s5569_s2 + $0x38] sm:$0xf] }
 0x2b2   :  { %v3677_v2 = vpop.permute.xlu0 %663 }
 0x2b3   :  { %5703 = vst [vmem:[#allocation24_spill] sm:$0xff] %v3677_v2 }
 0x2ba   :  { %v685_v18 = vpop.permute.xlu0 %684 }
 0x2bb   :  { %v694_v21 = vmul.f32 %v689_v33, %v685_v18  ;;  %v693_v4 = vmul.f32 %v688_v8, %v685_v18  ;;  %v692_v24 = vmul.f32 %v687_v49, %v685_v18  ;;  %v696_v39 = vmul.f32 %v691_v38, %v685_v18  ;;  %v54_v38 = vld [vmem:[%s5569_s2 + $0x3c] sm:$0xf] }
 0x2bc   :  { %v695_v46 = vmul.f32 %v690_v51, %v685_v18  ;;  %v729_v49 = vperm.slane %v3641_v20, 2  ;;  %v733_v18 = vperm.slane %v3661_v3, 2 }
 0x2bd   :  { %706 = vrot.lane.b32.xlu0 %v694_v21, %s3265_s24  ;;  %704 = vrot.lane.b32.xlu2 %v693_v4, %s3265_s24  ;;  %v731_v4 = vperm.slane %v3649_v62, 2 }
 0x2be   :  { %702 = vrot.lane.b32.xlu1 %v692_v24, %s3265_s24  ;;  %v730_v24 = vperm.slane %v3645_v22, 2 }
 0x2c5   :  { %726 = vperm.xlu0 %3252, %v53_v10   ;;  %710 = vrot.lane.b32.xlu2 %v696_v39, %s3265_s24  ;;  %v732_v10 = vperm.slane %v3667_v32, 2 }
 0x2c6   :  { %708 = vrot.lane.b32.xlu1 %v695_v46, %s3265_s24 }
 0x32f   :  { %v3692_v21 = vpop.permute.xlu0 %706 }
 0x330   :  { %5704 = vst [vmem:[#allocation25_spill] sm:$0xff] %v3692_v21 }
 0x337   :  { %v727_v50 = vpop.permute.xlu0 %726 }
 0x338   :  { %v736_v33 = vmul.f32 %v731_v4, %v727_v50  ;;  %v735_v8 = vmul.f32 %v730_v24, %v727_v50  ;;  %v734_v2 = vmul.f32 %v729_v49, %v727_v50  ;;  %v738_v51 = vmul.f32 %v733_v18, %v727_v50 }
 0x339   :  { %v737_v39 = vmul.f32 %v732_v10, %v727_v50  ;;  %v773_v4 = vperm.slane %v3649_v62, 3  ;;  %v771_v24 = vperm.slane %v3641_v20, 3  ;;  %v775_v50 = vperm.slane %v3661_v3, 3  ;;  %v55_v62 = vld [vmem:[%s5569_s2 + $0x40] sm:$0xf] }
 0x33a   :  { %748 = vrot.lane.b32.xlu0 %v736_v33, %s3265_s24  ;;  %746 = vrot.lane.b32.xlu2 %v735_v8, %s3265_s24  ;;  %v57_v3 = vld [vmem:[%s5569_s2 + $0x48] sm:$0xf] }
 0x33b   :  { %744 = vrot.lane.b32.xlu1 %v734_v2, %s3265_s24  ;;  %v772_v2 = vperm.slane %v3645_v22, 3  ;;  %v774_v22 = vperm.slane %v3667_v32, 3  ;;  %v35_v32 = vld [vmem:[%s5571_s1 + $0x14] sm:$0xf] }
 0x33c   :  { %v911_v10 = vperm.slane %v35_v32, 2 }
 0x342   :  { %768 = vperm.xlu0 %3252, %v54_v38   ;;  %752 = vrot.lane.b32.xlu2 %v738_v51, %s3265_s24  ;;  %v58_v38 = vld [vmem:[%s5569_s2 + $0x4c] sm:$0xf]  ;;  %v910_v51 = vperm.slane %v35_v32, 1 }
 0x343   :  { %750 = vrot.lane.b32.xlu1 %v737_v39, %s3265_s24  ;;  %v909_v39 = vperm.slane %v35_v32, 0 }
 0x3ac   :  { %v3707_v46 = vpop.permute.xlu0 %748 }
 0x3ad   :  { %5705 = vst [vmem:[#allocation26_spill] sm:$0xff] %v3707_v46 }
 0x3b4   :  { %v769_v49 = vpop.permute.xlu0 %768 }
 0x3b5   :  { %v778_v33 = vmul.f32 %v773_v4, %v769_v49  ;;  %v777_v8 = vmul.f32 %v772_v2, %v769_v49  ;;  %v776_v21 = vmul.f32 %v771_v24, %v769_v49  ;;  %v780_v18 = vmul.f32 %v775_v50, %v769_v49  ;;  %v59_v4 = vld [vmem:[%s5569_s2 + $0x50] sm:$0xf]  ;;  %v3737_v24 = vpop.permute.xlu2 %661 }
 0x3b6   :  { %v779_v20 = vmul.f32 %v774_v22, %v769_v49  ;;  %v912_v2 = vperm.slane %v35_v32, 3  ;;  %5706 = vst [vmem:[#allocation27_spill] sm:$0xff] %v3737_v24 }
 0x3b7   :  { %790 = vrot.lane.b32.xlu0 %v778_v33, %s3265_s24  ;;  %788 = vrot.lane.b32.xlu2 %v777_v8, %s3265_s24  ;;  %v3741_v33 = vpop.permute.xlu1 %659 }
 0x3b8   :  { %786 = vrot.lane.b32.xlu1 %v776_v21, %s3265_s24  ;;  %v56_v21 = vld [vmem:[%s5569_s2 + $0x44] sm:$0xf]  ;;  %5708 = vst [vmem:[#allocation29_spill] sm:$0xff] %v3741_v33 }
 0x3bd   :  { %v3739_v49 = vpop.permute.xlu2 %667 }
 0x3be   :  { %5707 = vst [vmem:[#allocation28_spill] sm:$0xff] %v3739_v49 }
 0x3bf   :  { %810 = vperm.xlu0 %3252, %v55_v62   ;;  %794 = vrot.lane.b32.xlu2 %v780_v18, %s3265_s24  ;;  %v3745_v50 = vpop.permute.xlu1 %665 }
 0x3c0   :  { %792 = vrot.lane.b32.xlu1 %v779_v20, %s3265_s24  ;;  %5710 = vst [vmem:[#allocation31_spill] sm:$0xff] %v3745_v50 }
 0x3c5   :  { %v3743_v8 = vpop.permute.xlu2 %704 }
 0x3c6   :  { %5709 = vst [vmem:[#allocation30_spill] sm:$0xff] %v3743_v8 }
 0x3c7   :  { %885 = vperm.xlu0 %3252, %v58_v38   ;;  %860 = vperm.xlu2 %3251, %v57_v3   ;;  %v3749_v22 = vpop.permute.xlu1 %702 }
 0x3c8   :  { %835 = vperm.xlu1 %3253, %v56_v21   ;;  %5712 = vst [vmem:[#allocation33_spill] sm:$0xff] %v3749_v22 }
 0x3cd   :  { %v3747_v62 = vpop.permute.xlu2 %710 }
 0x3ce   :  { %5711 = vst [vmem:[#allocation32_spill] sm:$0xff] %v3747_v62 }
 0x3cf   :  { %917 = vrot.lane.b32.xlu0 %v911_v10, %s3266_s21  ;;  %915 = vrot.lane.b32.xlu2 %v910_v51, %s3266_s21  ;;  %v3753_v20 = vpop.permute.xlu1 %708 }
 0x3d0   :  { %913 = vrot.lane.b32.xlu1 %v909_v39, %s3266_s21  ;;  %5714 = vst [vmem:[#allocation35_spill] sm:$0xff] %v3753_v20 }
 0x3d5   :  { %v3751_v18 = vpop.permute.xlu2 %746 }
 0x3d6   :  { %5713 = vst [vmem:[#allocation34_spill] sm:$0xff] %v3751_v18 }
 0x3d7   :  { %937 = vperm.xlu2 %3251, %v59_v4   ;;  %v3757_v3 = vpop.permute.xlu1 %744 }
 0x3d8   :  { %919 = vrot.lane.b32.xlu1 %v912_v2, %s3266_s21  ;;  %5716 = vst [vmem:[#allocation37_spill] sm:$0xff] %v3757_v3  ;;  %s3272_s21 = smov 34  }
 0x3dd   :  { %v3755_v38 = vpop.permute.xlu2 %752 }
 0x3de   :  { %5715 = vst [vmem:[#allocation36_spill] sm:$0xff] %v3755_v38 }
 0x3df   :  { %v3761_v32 = vpop.permute.xlu1 %750 }
 0x3e0   :  { %5718 = vst [vmem:[#allocation39_spill] sm:$0xff] %v3761_v32 }
 0x411   :  { %v3759_v21 = vpop.permute.xlu2 %788 }
 0x412   :  { %5717 = vst [vmem:[#allocation38_spill] sm:$0xff] %v3759_v21 }
 0x419   :  { %v3763_v10 = vpop.permute.xlu2 %794 }
 0x41a   :  { %5719 = vst [vmem:[#allocation40_spill] sm:$0xff] %v3763_v10 }
 0x421   :  { %v3771_v2 = vpop.permute.xlu2 %860 }
 0x422   :  { %5723 = vst [vmem:[#allocation44_spill] sm:$0xff] %v3771_v2 }
 0x429   :  { %v3765_v51 = vpop.permute.xlu0 %790  ;;  %v916_v3 = vpop.permute.xlu2 %915 }
 0x42a   :  { %5720 = vst [vmem:[#allocation41_spill] sm:$0xff] %v3765_v51  ;;  %v3767_v39 = vpop.permute.xlu1 %786 }
 0x42b   :  { %5721 = vst [vmem:[#allocation42_spill] sm:$0xff] %v3767_v39 }
 0x431   :  { %v3769_v4 = vpop.permute.xlu0 %810  ;;  %v938_v51 = vpop.permute.xlu2 %937 }
 0x432   :  { %5722 = vst [vmem:[#allocation43_spill] sm:$0xff] %v3769_v4  ;;  %v3773_v18 = vpop.permute.xlu1 %792 }
 0x433   :  { %5724 = vst [vmem:[#allocation45_spill] sm:$0xff] %v3773_v18 }
 0x439   :  { %v3775_v46 = vpop.permute.xlu0 %885 }
 0x43a   :  { %5725 = vst [vmem:[#allocation46_spill] sm:$0xff] %v3775_v46  ;;  %v3777_v38 = vpop.permute.xlu1 %835 }
 0x43b   :  { %5726 = vst [vmem:[#allocation47_spill] sm:$0xff] %v3777_v38 }
 0x441   :  { %v918_v21 = vpop.permute.xlu0 %917 }
 0x442   :  { %v3780_v32 = vsel %vm921_vm4, %v916_v3, %v918_v21  ;;  %v3782_v10 = vpop.permute.xlu1 %913 }
 0x443   :  { %5727 = vst [vmem:[#allocation48_spill] sm:$0xff] %v3780_v32  ;;  %v3786_v39 = vmul.f32 %v3780_v32, %v3397_v42  ;;  %v3790_v2 = vsel %vm921_vm4, %v3782_v10, %v916_v3  ;;  %v3794_v46 = vmul.f32 %v3782_v10, %v3391_v40 }
 0x444   :  { %5728 = vst [vmem:[#allocation49_spill] sm:$0xff] %v3782_v10  ;;  %v3798_v38 = vmul.f32 %v3790_v2, %v3394_v41 }
 0x445   :  { %5729 = vst [vmem:[#allocation50_spill] sm:$0xff] %v3790_v2  ;;  %v940_v18 = vperm.slane %v3794_v46, 0  ;;  %v942_v4 = vperm.slane %v3786_v39, 0  ;;  %v983_v8 = vperm.slane %v3794_v46, 1 }
 0x446   :  { %v941_v32 = vperm.slane %v3798_v38, 0 }
 0x447   :  { %v945_v62 = vmul.f32 %v940_v18, %v938_v51  ;;  %v947_v20 = vmul.f32 %v942_v4, %v938_v51 }
 0x448   :  { %v946_v22 = vmul.f32 %v941_v32, %v938_v51 }
 0x449   :  { %955 = vrot.lane.b32.xlu0 %v945_v62, %s3267_s25  ;;  %959 = vrot.lane.b32.xlu2 %v947_v20, %s3267_s25 }
 0x44a   :  { %957 = vrot.lane.b32.xlu1 %v946_v22, %s3267_s25  ;;  %v3806_v3 = vpop.permute.xlu1 %919  ;;  %v60_v22 = vld [vmem:[%s5569_s2 + $0x54] sm:$0xf] }
 0x44b   :  { %5730 = vst [vmem:[#allocation51_spill] sm:$0xff] %v3806_v3  ;;  %v3810_v10 = vsel %vm921_vm4, %v918_v21, %v3806_v3  ;;  %v3814_v2 = vmul.f32 %v3806_v3, %v3421_v56  ;;  %v984_v3 = vperm.slane %v3798_v38, 1 }
 0x44c   :  { %5731 = vst [vmem:[#allocation52_spill] sm:$0xff] %v3810_v10  ;;  %v3818_v18 = vmul.f32 %v3810_v10, %v3418_v55  ;;  %v985_v10 = vperm.slane %v3786_v39, 1 }
 0x44d   :  { %v944_v62 = vperm.slane %v3814_v2, 0 }
 0x44e   :  { %v943_v20 = vperm.slane %v3818_v18, 0 }
 0x44f   :  { %v949_v32 = vmul.f32 %v944_v62, %v938_v51  ;;  %v61_v62 = vld [vmem:[%s5569_s2 + $0x58] sm:$0xf] }
 0x450   :  { %v948_v4 = vmul.f32 %v943_v20, %v938_v51  ;;  %v987_v51 = vperm.slane %v3814_v2, 1 }
 0x451   :  { %980 = vperm.xlu2 %3251, %v60_v22   ;;  %v986_v22 = vperm.slane %v3818_v18, 1 }
 0x452   :  { %963 = vrot.lane.b32.xlu1 %v949_v32, %s3267_s25  ;;  %961 = vrot.lane.b32.xlu0 %v948_v4, %s3267_s25 }
 0x4a3   :  { %v3827_v21 = vpop.permute.xlu2 %959 }
 0x4a4   :  { %5732 = vst [vmem:[#allocation53_spill] sm:$0xff] %v3827_v21 }
 0x4ab   :  { %v981_v49 = vpop.permute.xlu2 %980 }
 0x4ac   :  { %v990_v50 = vmul.f32 %v985_v10, %v981_v49  ;;  %v989_v33 = vmul.f32 %v984_v3, %v981_v49  ;;  %v988_v24 = vmul.f32 %v983_v8, %v981_v49  ;;  %v992_v20 = vmul.f32 %v987_v51, %v981_v49  ;;  %v62_v51 = vld [vmem:[%s5569_s2 + $0x5c] sm:$0xf] }
 0x4ad   :  { %v991_v32 = vmul.f32 %v986_v22, %v981_v49  ;;  %v1029_v49 = vperm.slane %v3814_v2, 2 }
 0x4ae   :  { %1002 = vrot.lane.b32.xlu2 %v990_v50, %s3267_s25  ;;  %1000 = vrot.lane.b32.xlu1 %v989_v33, %s3267_s25  ;;  %v1027_v33 = vperm.slane %v3786_v39, 2  ;;  %v1025_v50 = vperm.slane %v3794_v46, 2 }
 0x4af   :  { %998 = vrot.lane.b32.xlu0 %v988_v24, %s3267_s25  ;;  %v1026_v24 = vperm.slane %v3798_v38, 2 }
 0x4b6   :  { %1022 = vperm.xlu2 %3251, %v61_v62   ;;  %1006 = vrot.lane.b32.xlu1 %v992_v20, %s3267_s25  ;;  %v1028_v62 = vperm.slane %v3818_v18, 2 }
 0x4b7   :  { %1004 = vrot.lane.b32.xlu0 %v991_v32, %s3267_s25 }
 0x508   :  { %v3842_v8 = vpop.permute.xlu2 %1002 }
 0x509   :  { %5733 = vst [vmem:[#allocation54_spill] sm:$0xff] %v3842_v8 }
 0x510   :  { %v1023_v10 = vpop.permute.xlu2 %1022 }
 0x511   :  { %v1032_v3 = vmul.f32 %v1027_v33, %v1023_v10  ;;  %v1031_v4 = vmul.f32 %v1026_v24, %v1023_v10  ;;  %v1030_v21 = vmul.f32 %v1025_v50, %v1023_v10  ;;  %v1034_v22 = vmul.f32 %v1029_v49, %v1023_v10 }
 0x512   :  { %v1033_v20 = vmul.f32 %v1028_v62, %v1023_v10  ;;  %v1069_v33 = vperm.slane %v3786_v39, 3  ;;  %v1067_v24 = vperm.slane %v3794_v46, 3  ;;  %v36_v10 = vld [vmem:[%s5571_s1 + $0x18] sm:$0xf]  ;;  %v1071_v39 = vperm.slane %v3814_v2, 3 }
 0x513   :  { %1044 = vrot.lane.b32.xlu2 %v1032_v3, %s3267_s25  ;;  %1042 = vrot.lane.b32.xlu1 %v1031_v4, %s3267_s25  ;;  %v1105_v49 = vperm.slane %v36_v10, 0  ;;  %v1108_v62 = vperm.slane %v36_v10, 3  ;;  %v63_v2 = vld [vmem:[%s5569_s2 + $0x60] sm:$0xf] }
 0x514   :  { %1040 = vrot.lane.b32.xlu0 %v1030_v21, %s3267_s25  ;;  %v1068_v21 = vperm.slane %v3798_v38, 3  ;;  %v1070_v38 = vperm.slane %v3818_v18, 3  ;;  %v3875_v18 = vpop.permute.xlu1 %957 }
 0x515   :  { %5735 = vst [vmem:[#allocation56_spill] sm:$0xff] %v3875_v18 }
 0x51b   :  { %1064 = vperm.xlu2 %3251, %v62_v51   ;;  %1048 = vrot.lane.b32.xlu1 %v1034_v22, %s3267_s25  ;;  %v1107_v22 = vperm.slane %v36_v10, 2 }
 0x51c   :  { %1046 = vrot.lane.b32.xlu0 %v1033_v20, %s3267_s25  ;;  %v3877_v20 = vpop.permute.xlu0 %955 }
 0x51d   :  { %5736 = vst [vmem:[#allocation57_spill] sm:$0xff] %v3877_v20 }
 0x56d   :  { %v3857_v32 = vpop.permute.xlu2 %1044 }
 0x56e   :  { %5734 = vst [vmem:[#allocation55_spill] sm:$0xff] %v3857_v32 }
 0x575   :  { %v1065_v50 = vpop.permute.xlu2 %1064 }
 0x576   :  { %v1074_v3 = vmul.f32 %v1069_v33, %v1065_v50  ;;  %v1073_v4 = vmul.f32 %v1068_v21, %v1065_v50  ;;  %v1072_v8 = vmul.f32 %v1067_v24, %v1065_v50  ;;  %v1076_v46 = vmul.f32 %v1071_v39, %v1065_v50  ;;  %v3879_v33 = vpop.permute.xlu1 %963  ;;  %v3881_v21 = vpop.permute.xlu0 %961 }
 0x577   :  { %v1075_v51 = vmul.f32 %v1070_v38, %v1065_v50  ;;  %5737 = vst [vmem:[#allocation58_spill] sm:$0xff] %v3879_v33 }
 0x578   :  { %1086 = vrot.lane.b32.xlu2 %v1074_v3, %s3267_s25  ;;  %1084 = vrot.lane.b32.xlu1 %v1073_v4, %s3267_s25  ;;  %5738 = vst [vmem:[#allocation59_spill] sm:$0xff] %v3881_v21 }
 0x579   :  { %1082 = vrot.lane.b32.xlu0 %v1072_v8, %s3267_s25  ;;  %v1106_v8 = vperm.slane %v36_v10, 1 }
 0x57e   :  { %v3883_v24 = vpop.permute.xlu1 %1000  ;;  %v3885_v50 = vpop.permute.xlu0 %998 }
 0x57f   :  { %5739 = vst [vmem:[#allocation60_spill] sm:$0xff] %v3883_v24 }
 0x580   :  { %1109 = vrot.lane.b32.xlu2 %v1105_v49, %s3268_s12  ;;  %1090 = vrot.lane.b32.xlu1 %v1076_v46, %s3267_s25  ;;  %5740 = vst [vmem:[#allocation61_spill] sm:$0xff] %v3885_v50 }
 0x581   :  { %1088 = vrot.lane.b32.xlu0 %v1075_v51, %s3267_s25 }
 0x586   :  { %v3887_v3 = vpop.permute.xlu1 %1006  ;;  %v3889_v4 = vpop.permute.xlu0 %1004 }
 0x587   :  { %5741 = vst [vmem:[#allocation62_spill] sm:$0xff] %v3887_v3 }
 0x588   :  { %1115 = vrot.lane.b32.xlu2 %v1108_v62, %s3268_s12  ;;  %1113 = vrot.lane.b32.xlu1 %v1107_v22, %s3268_s12  ;;  %5742 = vst [vmem:[#allocation63_spill] sm:$0xff] %v3889_v4 }
 0x589   :  { %1111 = vrot.lane.b32.xlu0 %v1106_v8, %s3268_s12 }
 0x58e   :  { %v3891_v10 = vpop.permute.xlu1 %1042  ;;  %v3893_v49 = vpop.permute.xlu0 %1040 }
 0x58f   :  { %5743 = vst [vmem:[#allocation64_spill] sm:$0xff] %v3891_v10 }
 0x590   :  { %5744 = vst [vmem:[#allocation65_spill] sm:$0xff] %v3893_v49 }
 0x591   :  { %1133 = vperm.xlu0 %3252, %v63_v2  }
 0x596   :  { %v3895_v39 = vpop.permute.xlu1 %1048  ;;  %v3897_v38 = vpop.permute.xlu0 %1046 }
 0x597   :  { %5745 = vst [vmem:[#allocation66_spill] sm:$0xff] %v3895_v39 }
 0x598   :  { %5746 = vst [vmem:[#allocation67_spill] sm:$0xff] %v3897_v38 }
 0x5d2   :  { %v3903_v62 = vpop.permute.xlu2 %1086 }
 0x5d3   :  { %5749 = vst [vmem:[#allocation70_spill] sm:$0xff] %v3903_v62 }
 0x5da   :  { %v3909_v2 = vpop.permute.xlu2 %1109 }
 0x5db   :  { %5752 = vst [vmem:[#allocation73_spill] sm:$0xff] %v3909_v2  ;;  %v3918_v38 = vmul.f32 %v3909_v2, %v3391_v40 }
 0x5dd   :  { %v1179_v50 = vperm.slane %v3918_v38, 1 }
 0x5ea   :  { %v3899_v46 = vpop.permute.xlu1 %1084 }
 0x5eb   :  { %5747 = vst [vmem:[#allocation68_spill] sm:$0xff] %v3899_v46  ;;  %v3901_v51 = vpop.permute.xlu0 %1082  ;;  %v1136_v46 = vperm.slane %v3918_v38, 0 }
 0x5ec   :  { %5748 = vst [vmem:[#allocation69_spill] sm:$0xff] %v3901_v51 }
 0x5f2   :  { %v3905_v22 = vpop.permute.xlu1 %1090 }
 0x5f3   :  { %5750 = vst [vmem:[#allocation71_spill] sm:$0xff] %v3905_v22  ;;  %v3907_v8 = vpop.permute.xlu0 %1088 }
 0x5f4   :  { %5751 = vst [vmem:[#allocation72_spill] sm:$0xff] %v3907_v8  ;;  %v3928_v8 = vpop.permute.xlu2 %1115 }
 0x5f5   :  { %5755 = vst [vmem:[#allocation76_spill] sm:$0xff] %v3928_v8  ;;  %v3938_v10 = vmul.f32 %v3928_v8, %v3421_v56 }
 0x5fa   :  { %v1114_v3 = vpop.permute.xlu1 %1113 }
 0x5fb   :  { %v1112_v4 = vpop.permute.xlu0 %1111  ;;  %v3934_v21 = vsel %vm1117_vm5, %v1114_v3, %v3928_v8  ;;  %v64_v8 = vld [vmem:[%s5569_s2 + $0x64] sm:$0xf] }
 0x5fc   :  { %v3912_v33 = vsel %vm1117_vm5, %v3909_v2, %v1112_v4  ;;  %v3914_v39 = vsel %vm1117_vm5, %v1112_v4, %v1114_v3  ;;  %5756 = vst [vmem:[#allocation77_spill] sm:$0xff] %v3934_v21  ;;  %v1140_v3 = vperm.slane %v3938_v10, 0 }
 0x5fd   :  { %5753 = vst [vmem:[#allocation74_spill] sm:$0xff] %v3912_v33  ;;  %v3922_v62 = vmul.f32 %v3912_v33, %v3394_v41  ;;  %v3926_v22 = vmul.f32 %v3914_v39, %v3397_v42 }
 0x5fe   :  { %5754 = vst [vmem:[#allocation75_spill] sm:$0xff] %v3914_v39  ;;  %v3942_v39 = vmul.f32 %v3934_v21, %v3418_v55 }
 0x5ff   :  { %v1137_v51 = vperm.slane %v3922_v62, 0  ;;  %v1138_v4 = vperm.slane %v3926_v22, 0 }
 0x603   :  { %v1134_v2 = vpop.permute.xlu0 %1133 }
 0x604   :  { %v1142_v32 = vmul.f32 %v1137_v51, %v1134_v2  ;;  %v1141_v49 = vmul.f32 %v1136_v46, %v1134_v2  ;;  %v1143_v33 = vmul.f32 %v1138_v4, %v1134_v2  ;;  %v1139_v46 = vperm.slane %v3942_v39, 0 }
 0x605   :  { %v1145_v51 = vmul.f32 %v1140_v3, %v1134_v2 }
 0x606   :  { %1153 = vrot.lane.b32.xlu2 %v1142_v32, %s3269_s17  ;;  %1151 = vrot.lane.b32.xlu1 %v1141_v49, %s3269_s17  ;;  %v1144_v4 = vmul.f32 %v1139_v46, %v1134_v2  ;;  %v1181_v49 = vperm.slane %v3926_v22, 1 }
 0x607   :  { %1155 = vrot.lane.b32.xlu0 %v1143_v33, %s3269_s17  ;;  %v1180_v33 = vperm.slane %v3922_v62, 1 }
 0x60e   :  { %1159 = vrot.lane.b32.xlu2 %v1145_v51, %s3269_s17  ;;  %1157 = vrot.lane.b32.xlu1 %v1144_v4, %s3269_s17  ;;  %v65_v51 = vld [vmem:[%s5569_s2 + $0x68] sm:$0xf]  ;;  %v1182_v4 = vperm.slane %v3942_v39, 1 }
 0x60f   :  { %1176 = vperm.xlu0 %3252, %v64_v8   ;;  %v1183_v8 = vperm.slane %v3938_v10, 1 }
 0x679   :  { %v3954_v32 = vpop.permute.xlu0 %1155 }
 0x67a   :  { %5757 = vst [vmem:[#allocation78_spill] sm:$0xff] %v3954_v32 }
 0x681   :  { %v1177_v21 = vpop.permute.xlu0 %1176 }
 0x682   :  { %v1186_v3 = vmul.f32 %v1181_v49, %v1177_v21  ;;  %v1185_v2 = vmul.f32 %v1180_v33, %v1177_v21  ;;  %v1184_v46 = vmul.f32 %v1179_v50, %v1177_v21  ;;  %v1188_v32 = vmul.f32 %v1183_v8, %v1177_v21 }
 0x683   :  { %v1187_v24 = vmul.f32 %v1182_v4, %v1177_v21  ;;  %v1223_v49 = vperm.slane %v3926_v22, 2  ;;  %v1222_v33 = vperm.slane %v3922_v62, 2  ;;  %v1225_v21 = vperm.slane %v3938_v10, 2 }
 0x684   :  { %1198 = vrot.lane.b32.xlu0 %v1186_v3, %s3269_s17  ;;  %1196 = vrot.lane.b32.xlu2 %v1185_v2, %s3269_s17  ;;  %v1221_v3 = vperm.slane %v3918_v38, 2 }
 0x685   :  { %1194 = vrot.lane.b32.xlu1 %v1184_v46, %s3269_s17 }
 0x68c   :  { %1218 = vperm.xlu0 %3252, %v65_v51   ;;  %1202 = vrot.lane.b32.xlu2 %v1188_v32, %s3269_s17  ;;  %v1224_v32 = vperm.slane %v3942_v39, 2 }
 0x68d   :  { %1200 = vrot.lane.b32.xlu1 %v1187_v24, %s3269_s17  ;;  %v66_v24 = vld [vmem:[%s5569_s2 + $0x6c] sm:$0xf] }
 0x6f6   :  { %v3969_v50 = vpop.permute.xlu0 %1198 }
 0x6f7   :  { %5758 = vst [vmem:[#allocation79_spill] sm:$0xff] %v3969_v50 }
 0x6fe   :  { %v1219_v2 = vpop.permute.xlu0 %1218 }
 0x6ff   :  { %v1228_v46 = vmul.f32 %v1223_v49, %v1219_v2  ;;  %v1227_v20 = vmul.f32 %v1222_v33, %v1219_v2  ;;  %v1226_v18 = vmul.f32 %v1221_v3, %v1219_v2  ;;  %v1230_v8 = vmul.f32 %v1225_v21, %v1219_v2 }
 0x700   :  { %v1229_v51 = vmul.f32 %v1224_v32, %v1219_v2  ;;  %v1263_v49 = vperm.slane %v3918_v38, 3  ;;  %v37_v2 = vld [vmem:[%s5571_s1 + $0x1c] sm:$0xf] }
 0x701   :  { %1240 = vrot.lane.b32.xlu0 %v1228_v46, %s3269_s17  ;;  %1238 = vrot.lane.b32.xlu2 %v1227_v20, %s3269_s17  ;;  %v1265_v20 = vperm.slane %v3926_v22, 3  ;;  %v1301_v21 = vperm.slane %v37_v2, 0  ;;  %v1267_v22 = vperm.slane %v3938_v10, 3  ;;  %v1304_v32 = vperm.slane %v37_v2, 3  ;;  %v67_v10 = vld [vmem:[%s5569_s2 + $0x70] sm:$0xf] }
 0x702   :  { %1236 = vrot.lane.b32.xlu1 %v1226_v18, %s3269_s17  ;;  %v1264_v18 = vperm.slane %v3922_v62, 3  ;;  %v1266_v62 = vperm.slane %v3942_v39, 3  ;;  %v4002_v39 = vpop.permute.xlu2 %1153 }
 0x703   :  { %5760 = vst [vmem:[#allocation81_spill] sm:$0xff] %v4002_v39 }
 0x709   :  { %1260 = vperm.xlu0 %3252, %v66_v24   ;;  %1244 = vrot.lane.b32.xlu2 %v1230_v8, %s3269_s17  ;;  %v1303_v8 = vperm.slane %v37_v2, 2 }
 0x70a   :  { %1242 = vrot.lane.b32.xlu1 %v1229_v51, %s3269_s17  ;;  %v4004_v51 = vpop.permute.xlu1 %1151 }
 0x70b   :  { %5761 = vst [vmem:[#allocation82_spill] sm:$0xff] %v4004_v51 }
 0x773   :  { %v3984_v4 = vpop.permute.xlu0 %1240 }
 0x774   :  { %5759 = vst [vmem:[#allocation80_spill] sm:$0xff] %v3984_v4 }
 0x77b   :  { %v1261_v33 = vpop.permute.xlu0 %1260 }
 0x77c   :  { %v1270_v3 = vmul.f32 %v1265_v20, %v1261_v33  ;;  %v1269_v46 = vmul.f32 %v1264_v18, %v1261_v33  ;;  %v1268_v50 = vmul.f32 %v1263_v49, %v1261_v33  ;;  %v1272_v38 = vmul.f32 %v1267_v22, %v1261_v33  ;;  %v4006_v20 = vpop.permute.xlu2 %1159  ;;  %v4008_v18 = vpop.permute.xlu1 %1157 }
 0x77d   :  { %v1271_v24 = vmul.f32 %v1266_v62, %v1261_v33  ;;  %5762 = vst [vmem:[#allocation83_spill] sm:$0xff] %v4006_v20 }
 0x77e   :  { %1282 = vrot.lane.b32.xlu0 %v1270_v3, %s3269_s17  ;;  %1280 = vrot.lane.b32.xlu2 %v1269_v46, %s3269_s17  ;;  %5763 = vst [vmem:[#allocation84_spill] sm:$0xff] %v4008_v18 }
 0x77f   :  { %1278 = vrot.lane.b32.xlu1 %v1268_v50, %s3269_s17  ;;  %v1302_v50 = vperm.slane %v37_v2, 1 }
 0x784   :  { %v4010_v49 = vpop.permute.xlu2 %1196  ;;  %v4012_v33 = vpop.permute.xlu1 %1194 }
 0x785   :  { %5764 = vst [vmem:[#allocation85_spill] sm:$0xff] %v4010_v49 }
 0x786   :  { %1305 = vrot.lane.b32.xlu0 %v1301_v21, %s3270_s28  ;;  %1286 = vrot.lane.b32.xlu2 %v1272_v38, %s3269_s17  ;;  %5765 = vst [vmem:[#allocation86_spill] sm:$0xff] %v4012_v33 }
 0x787   :  { %1284 = vrot.lane.b32.xlu1 %v1271_v24, %s3269_s17 }
 0x78c   :  { %v4014_v3 = vpop.permute.xlu2 %1202  ;;  %v4016_v46 = vpop.permute.xlu1 %1200 }
 0x78d   :  { %5766 = vst [vmem:[#allocation87_spill] sm:$0xff] %v4014_v3 }
 0x78e   :  { %1311 = vrot.lane.b32.xlu0 %v1304_v32, %s3270_s28  ;;  %1309 = vrot.lane.b32.xlu2 %v1303_v8, %s3270_s28  ;;  %5767 = vst [vmem:[#allocation88_spill] sm:$0xff] %v4016_v46 }
 0x78f   :  { %1307 = vrot.lane.b32.xlu1 %v1302_v50, %s3270_s28 }
 0x794   :  { %v4018_v2 = vpop.permute.xlu2 %1238  ;;  %v4020_v21 = vpop.permute.xlu1 %1236 }
 0x795   :  { %5768 = vst [vmem:[#allocation89_spill] sm:$0xff] %v4018_v2 }
 0x796   :  { %5769 = vst [vmem:[#allocation90_spill] sm:$0xff] %v4020_v21 }
 0x797   :  { %1329 = vperm.xlu1 %3253, %v67_v10  }
 0x79c   :  { %v4022_v22 = vpop.permute.xlu2 %1244  ;;  %v4024_v62 = vpop.permute.xlu1 %1242 }
 0x79d   :  { %5770 = vst [vmem:[#allocation91_spill] sm:$0xff] %v4022_v22 }
 0x79e   :  { %5771 = vst [vmem:[#allocation92_spill] sm:$0xff] %v4024_v62 }
 0x7d8   :  { %v4026_v38 = vpop.permute.xlu2 %1280 }
 0x7d9   :  { %5772 = vst [vmem:[#allocation93_spill] sm:$0xff] %v4026_v38 }
 0x7e0   :  { %v4032_v8 = vpop.permute.xlu2 %1286 }
 0x7e1   :  { %5775 = vst [vmem:[#allocation96_spill] sm:$0xff] %v4032_v8 }
 0x7e8   :  { %v1310_v3 = vpop.permute.xlu2 %1309 }
 0x7f0   :  { %v4030_v32 = vpop.permute.xlu0 %1282 }
 0x7f1   :  { %v4028_v24 = vpop.permute.xlu1 %1278  ;;  %5774 = vst [vmem:[#allocation95_spill] sm:$0xff] %v4030_v32 }
 0x7f2   :  { %5773 = vst [vmem:[#allocation94_spill] sm:$0xff] %v4028_v24 }
 0x7f8   :  { %v4036_v10 = vpop.permute.xlu0 %1305 }
 0x7f9   :  { %v4034_v50 = vpop.permute.xlu1 %1284  ;;  %5777 = vst [vmem:[#allocation98_spill] sm:$0xff] %v4036_v10  ;;  %v4045_v62 = vmul.f32 %v4036_v10, %v3391_v40 }
 0x7fa   :  { %5776 = vst [vmem:[#allocation97_spill] sm:$0xff] %v4034_v50 }
 0x800   :  { %v4055_v50 = vpop.permute.xlu0 %1311 }
 0x801   :  { %v1308_v46 = vpop.permute.xlu1 %1307  ;;  %5780 = vst [vmem:[#allocation101_spill] sm:$0xff] %v4055_v50  ;;  %v4065_v4 = vmul.f32 %v4055_v50, %v3421_v56 }
 0x802   :  { %v4039_v20 = vsel %vm1313_vm6, %v4036_v10, %v1308_v46  ;;  %v4041_v22 = vsel %vm1313_vm6, %v1308_v46, %v1310_v3  ;;  %v1332_v46 = vperm.slane %v4045_v62, 0  ;;  %v4061_v10 = vsel %vm1313_vm6, %v1310_v3, %v4055_v50 }
 0x803   :  { %5778 = vst [vmem:[#allocation99_spill] sm:$0xff] %v4039_v20  ;;  %v4049_v24 = vmul.f32 %v4039_v20, %v3394_v41  ;;  %v4053_v8 = vmul.f32 %v4041_v22, %v3397_v42  ;;  %v1336_v3 = vperm.slane %v4065_v4, 0 }
 0x804   :  { %5779 = vst [vmem:[#allocation100_spill] sm:$0xff] %v4041_v22  ;;  %v4071_v22 = vmul.f32 %v4061_v10, %v3418_v55 }
 0x805   :  { %v1334_v38 = vperm.slane %v4053_v8, 0  ;;  %v1333_v32 = vperm.slane %v4049_v24, 0  ;;  %5781 = vst [vmem:[#allocation102_spill] sm:$0xff] %v4061_v10  ;;  %v1375_v10 = vperm.slane %v4045_v62, 1 }
 0x809   :  { %v1330_v18 = vpop.permute.xlu1 %1329 }
 0x80a   :  { %v1339_v21 = vmul.f32 %v1334_v38, %v1330_v18  ;;  %v1338_v2 = vmul.f32 %v1333_v32, %v1330_v18  ;;  %v1337_v20 = vmul.f32 %v1332_v46, %v1330_v18  ;;  %v68_v38 = vld [vmem:[%s5569_s2 + $0x74] sm:$0xf]  ;;  %v1335_v32 = vperm.slane %v4071_v22, 0 }
 0x80b   :  { %v1341_v46 = vmul.f32 %v1336_v3, %v1330_v18  ;;  %v1378_v3 = vperm.slane %v4071_v22, 1 }
 0x80c   :  { %1351 = vrot.lane.b32.xlu1 %v1339_v21, %s3271_s9  ;;  %1349 = vrot.lane.b32.xlu0 %v1338_v2, %s3271_s9  ;;  %v1340_v50 = vmul.f32 %v1335_v32, %v1330_v18  ;;  %v1377_v21 = vperm.slane %v4053_v8, 1  ;;  %v1379_v18 = vperm.slane %v4065_v4, 1 }
 0x80d   :  { %1347 = vrot.lane.b32.xlu2 %v1337_v20, %s3271_s9  ;;  %v1376_v20 = vperm.slane %v4049_v24, 1 }
 0x814   :  { %1372 = vperm.xlu1 %3253, %v68_v38   ;;  %1355 = vrot.lane.b32.xlu0 %v1341_v46, %s3271_s9 }
 0x815   :  { %1353 = vrot.lane.b32.xlu2 %v1340_v50, %s3271_s9  ;;  %v69_v50 = vld [vmem:[%s5569_s2 + $0x78] sm:$0xf] }
 0x87e   :  { %v4081_v2 = vpop.permute.xlu1 %1351 }
 0x87f   :  { %5782 = vst [vmem:[#allocation103_spill] sm:$0xff] %v4081_v2 }
 0x886   :  { %v1373_v33 = vpop.permute.xlu1 %1372 }
 0x887   :  { %v1382_v49 = vmul.f32 %v1377_v21, %v1373_v33  ;;  %v1381_v51 = vmul.f32 %v1376_v20, %v1373_v33  ;;  %v1380_v39 = vmul.f32 %v1375_v10, %v1373_v33  ;;  %v1384_v38 = vmul.f32 %v1379_v18, %v1373_v33  ;;  %v70_v18 = vld [vmem:[%s5569_s2 + $0x7c] sm:$0xf] }
 0x888   :  { %v1383_v32 = vmul.f32 %v1378_v3, %v1373_v33  ;;  %v1417_v10 = vperm.slane %v4045_v62, 2  ;;  %v1421_v33 = vperm.slane %v4065_v4, 2 }
 0x889   :  { %1394 = vrot.lane.b32.xlu1 %v1382_v49, %s3271_s9  ;;  %1392 = vrot.lane.b32.xlu0 %v1381_v51, %s3271_s9  ;;  %v1419_v51 = vperm.slane %v4053_v8, 2 }
 0x88a   :  { %1390 = vrot.lane.b32.xlu2 %v1380_v39, %s3271_s9  ;;  %v1418_v39 = vperm.slane %v4049_v24, 2 }
 0x891   :  { %1414 = vperm.xlu1 %3253, %v69_v50   ;;  %1398 = vrot.lane.b32.xlu0 %v1384_v38, %s3271_s9  ;;  %v1420_v50 = vperm.slane %v4071_v22, 2 }
 0x892   :  { %1396 = vrot.lane.b32.xlu2 %v1383_v32, %s3271_s9 }
 0x8fb   :  { %v4096_v49 = vpop.permute.xlu1 %1394 }
 0x8fc   :  { %5783 = vst [vmem:[#allocation104_spill] sm:$0xff] %v4096_v49 }
 0x903   :  { %v1415_v46 = vpop.permute.xlu1 %1414 }
 0x904   :  { %v1424_v21 = vmul.f32 %v1419_v51, %v1415_v46  ;;  %v1423_v20 = vmul.f32 %v1418_v39, %v1415_v46  ;;  %v1422_v2 = vmul.f32 %v1417_v10, %v1415_v46  ;;  %v1426_v3 = vmul.f32 %v1421_v33, %v1415_v46 }
 0x905   :  { %v1425_v38 = vmul.f32 %v1420_v50, %v1415_v46  ;;  %v1461_v51 = vperm.slane %v4053_v8, 3  ;;  %v1459_v39 = vperm.slane %v4045_v62, 3  ;;  %v38_v46 = vld [vmem:[%s5571_s1 + $0x20] sm:$0xf]  ;;  %v1463_v8 = vperm.slane %v4065_v4, 3 }
 0x906   :  { %1436 = vrot.lane.b32.xlu1 %v1424_v21, %s3271_s9  ;;  %1434 = vrot.lane.b32.xlu0 %v1423_v20, %s3271_s9  ;;  %v1497_v33 = vperm.slane %v38_v46, 0  ;;  %v1500_v50 = vperm.slane %v38_v46, 3  ;;  %v71_v4 = vld [vmem:[%s5569_s2 + $0x80] sm:$0xf] }
 0x907   :  { %1432 = vrot.lane.b32.xlu2 %v1422_v2, %s3271_s9  ;;  %v1460_v2 = vperm.slane %v4049_v24, 3  ;;  %v1462_v24 = vperm.slane %v4071_v22, 3  ;;  %v4129_v22 = vpop.permute.xlu2 %1347 }
 0x908   :  { %5785 = vst [vmem:[#allocation106_spill] sm:$0xff] %v4129_v22 }
 0x90e   :  { %1456 = vperm.xlu1 %3253, %v70_v18   ;;  %1440 = vrot.lane.b32.xlu0 %v1426_v3, %s3271_s9  ;;  %v1499_v3 = vperm.slane %v38_v46, 2 }
 0x90f   :  { %1438 = vrot.lane.b32.xlu2 %v1425_v38, %s3271_s9  ;;  %v4131_v38 = vpop.permute.xlu2 %1353 }
 0x910   :  { %5786 = vst [vmem:[#allocation107_spill] sm:$0xff] %v4131_v38 }
 0x978   :  { %v4111_v32 = vpop.permute.xlu1 %1436 }
 0x979   :  { %5784 = vst [vmem:[#allocation105_spill] sm:$0xff] %v4111_v32 }
 0x980   :  { %v1457_v10 = vpop.permute.xlu1 %1456 }
 0x981   :  { %v1466_v21 = vmul.f32 %v1461_v51, %v1457_v10  ;;  %v1465_v20 = vmul.f32 %v1460_v2, %v1457_v10  ;;  %v1464_v49 = vmul.f32 %v1459_v39, %v1457_v10  ;;  %v1468_v62 = vmul.f32 %v1463_v8, %v1457_v10  ;;  %v4133_v51 = vpop.permute.xlu0 %1349  ;;  %v4135_v2 = vpop.permute.xlu2 %1390 }
 0x982   :  { %v1467_v18 = vmul.f32 %v1462_v24, %v1457_v10  ;;  %5787 = vst [vmem:[#allocation108_spill] sm:$0xff] %v4133_v51 }
 0x983   :  { %1478 = vrot.lane.b32.xlu1 %v1466_v21, %s3271_s9  ;;  %1476 = vrot.lane.b32.xlu0 %v1465_v20, %s3271_s9  ;;  %5788 = vst [vmem:[#allocation109_spill] sm:$0xff] %v4135_v2 }
 0x984   :  { %1474 = vrot.lane.b32.xlu2 %v1464_v49, %s3271_s9  ;;  %v1498_v49 = vperm.slane %v38_v46, 1 }
 0x989   :  { %v4137_v39 = vpop.permute.xlu0 %1355  ;;  %v4139_v10 = vpop.permute.xlu2 %1396 }
 0x98a   :  { %5789 = vst [vmem:[#allocation110_spill] sm:$0xff] %v4137_v39 }
 0x98b   :  { %1501 = vrot.lane.b32.xlu1 %v1497_v33, %s3272_s21  ;;  %1482 = vrot.lane.b32.xlu0 %v1468_v62, %s3271_s9  ;;  %5790 = vst [vmem:[#allocation111_spill] sm:$0xff] %v4139_v10 }
 0x98c   :  { %1480 = vrot.lane.b32.xlu2 %v1467_v18, %s3271_s9 }
 0x991   :  { %v4141_v21 = vpop.permute.xlu0 %1392  ;;  %v4143_v20 = vpop.permute.xlu2 %1432 }
 0x992   :  { %5791 = vst [vmem:[#allocation112_spill] sm:$0xff] %v4141_v21 }
 0x993   :  { %1507 = vrot.lane.b32.xlu1 %v1500_v50, %s3272_s21  ;;  %1505 = vrot.lane.b32.xlu0 %v1499_v3, %s3272_s21  ;;  %5792 = vst [vmem:[#allocation113_spill] sm:$0xff] %v4143_v20 }
 0x994   :  { %1503 = vrot.lane.b32.xlu2 %v1498_v49, %s3272_s21 }
 0x999   :  { %v4145_v46 = vpop.permute.xlu0 %1398  ;;  %v4147_v33 = vpop.permute.xlu2 %1438 }
 0x99a   :  { %5793 = vst [vmem:[#allocation114_spill] sm:$0xff] %v4145_v46 }
 0x99b   :  { %5794 = vst [vmem:[#allocation115_spill] sm:$0xff] %v4147_v33 }
 0x99c   :  { %1525 = vperm.xlu2 %3251, %v71_v4  }
 0x9a1   :  { %v4149_v8 = vpop.permute.xlu0 %1434 }
 0x9a2   :  { %5795 = vst [vmem:[#allocation116_spill] sm:$0xff] %v4149_v8 }
 0x9a9   :  { %v4153_v62 = vpop.permute.xlu0 %1440 }
 0x9aa   :  { %5797 = vst [vmem:[#allocation118_spill] sm:$0xff] %v4153_v62 }
 0x9de   :  { %v4151_v24 = vpop.permute.xlu2 %1474 }
 0x9df   :  { %5796 = vst [vmem:[#allocation117_spill] sm:$0xff] %v4151_v24 }
 0x9e6   :  { %v4155_v18 = vpop.permute.xlu2 %1480 }
 0x9e7   :  { %5798 = vst [vmem:[#allocation119_spill] sm:$0xff] %v4155_v18 }
 0x9ee   :  { %v1504_v49 = vpop.permute.xlu2 %1503 }
 0x9f5   :  { %v4157_v50 = vpop.permute.xlu1 %1478  ;;  %v4159_v3 = vpop.permute.xlu0 %1476 }
 0x9f6   :  { %5799 = vst [vmem:[#allocation120_spill] sm:$0xff] %v4157_v50  ;;  %v1526_v39 = vpop.permute.xlu2 %1525 }
 0x9f7   :  { %5800 = vst [vmem:[#allocation121_spill] sm:$0xff] %v4159_v3 }
 0x9fd   :  { %v4161_v4 = vpop.permute.xlu1 %1501  ;;  %v4163_v10 = vpop.permute.xlu0 %1482 }
 0x9fe   :  { %5801 = vst [vmem:[#allocation122_spill] sm:$0xff] %v4161_v4  ;;  %v4167_v33 = vsel %vm1509_vm7, %v4161_v4, %v1504_v49  ;;  %v4171_v46 = vmul.f32 %v4161_v4, %v3391_v40 }
 0x9ff   :  { %5802 = vst [vmem:[#allocation123_spill] sm:$0xff] %v4163_v10  ;;  %v4175_v18 = vmul.f32 %v4167_v33, %v3394_v41 }
 0xa00   :  { %5803 = vst [vmem:[#allocation124_spill] sm:$0xff] %v4167_v33  ;;  %v1528_v62 = vperm.slane %v4171_v46, 0 }
 0xa01   :  { %v1529_v38 = vperm.slane %v4175_v18, 0 }
 0xa02   :  { %v1533_v50 = vmul.f32 %v1528_v62, %v1526_v39 }
 0xa03   :  { %v1534_v24 = vmul.f32 %v1529_v38, %v1526_v39 }
 0xa04   :  { %1543 = vrot.lane.b32.xlu0 %v1533_v50, %s3273_s26 }
 0xa05   :  { %v4180_v10 = vpop.permute.xlu1 %1507  ;;  %v1506_v3 = vpop.permute.xlu0 %1505  ;;  %1545 = vrot.lane.b32.xlu1 %v1534_v24, %s3273_s26 }
 0xa06   :  { %5804 = vst [vmem:[#allocation125_spill] sm:$0xff] %v4180_v10  ;;  %v4185_v4 = vmul.f32 %v4180_v10, %v3421_v56  ;;  %v4188_v33 = vsel %vm1509_vm7, %v1504_v49, %v1506_v3  ;;  %v4192_v32 = vsel %vm1509_vm7, %v1506_v3, %v4180_v10  ;;  %v72_v3 = vld [vmem:[%s5569_s2 + $0x84] sm:$0xf] }
 0xa07   :  { %5805 = vst [vmem:[#allocation126_spill] sm:$0xff] %v4188_v33  ;;  %v1520_v38 = vmul.f32 %v4188_v33, %v3397_v42  ;;  %v4198_v62 = vmul.f32 %v4192_v32, %v3418_v55  ;;  %v1572_v33 = vperm.slane %v4175_v18, 1 }
 0xa08   :  { %5806 = vst [vmem:[#allocation127_spill] sm:$0xff] %v4192_v32  ;;  %v1532_v24 = vperm.slane %v4185_v4, 0 }
 0xa09   :  { %v1530_v50 = vperm.slane %v1520_v38, 0  ;;  %v1531_v56 = vperm.slane %v4198_v62, 0  ;;  %v1573_v32 = vperm.slane %v1520_v38, 1 }
 0xa0a   :  { %v1537_v20 = vmul.f32 %v1532_v24, %v1526_v39  ;;  %v1571_v24 = vperm.slane %v4171_v46, 1 }
 0xa0b   :  { %v1535_v8 = vmul.f32 %v1530_v50, %v1526_v39  ;;  %v1536_v49 = vmul.f32 %v1531_v56, %v1526_v39 }
 0xa0d   :  { %1547 = vrot.lane.b32.xlu2 %v1535_v8, %s3273_s26  ;;  %1551 = vrot.lane.b32.xlu1 %v1537_v20, %s3273_s26  ;;  %v1575_v20 = vperm.slane %v4185_v4, 1 }
 0xa0e   :  { %1549 = vrot.lane.b32.xlu0 %v1536_v49, %s3273_s26  ;;  %v73_v49 = vld [vmem:[%s5569_s2 + $0x88] sm:$0xf] }
 0xa15   :  { %1568 = vperm.xlu2 %3251, %v72_v3   ;;  %v1574_v3 = vperm.slane %v4198_v62, 1 }
 0xa67   :  { %v4208_v10 = vpop.permute.xlu2 %1547 }
 0xa68   :  { %5807 = vst [vmem:[#allocation128_spill] sm:$0xff] %v4208_v10 }
 0xa6f   :  { %v1569_v50 = vpop.permute.xlu2 %1568 }
 0xa70   :  { %v1578_v39 = vmul.f32 %v1573_v32, %v1569_v50  ;;  %v1577_v56 = vmul.f32 %v1572_v33, %v1569_v50  ;;  %v1576_v8 = vmul.f32 %v1571_v24, %v1569_v50  ;;  %v1580_v10 = vmul.f32 %v1575_v20, %v1569_v50 }
 0xa71   :  { %v1579_v2 = vmul.f32 %v1574_v3, %v1569_v50  ;;  %v1615_v33 = vperm.slane %v1520_v38, 2  ;;  %v1614_v24 = vperm.slane %v4175_v18, 2  ;;  %v1616_v50 = vperm.slane %v4198_v62, 2 }
 0xa72   :  { %1590 = vrot.lane.b32.xlu2 %v1578_v39, %s3273_s26  ;;  %1588 = vrot.lane.b32.xlu1 %v1577_v56, %s3273_s26  ;;  %v1613_v39 = vperm.slane %v4171_v46, 2 }
 0xa73   :  { %1586 = vrot.lane.b32.xlu0 %v1576_v8, %s3273_s26 }
 0xa7a   :  { %1610 = vperm.xlu2 %3251, %v73_v49   ;;  %1594 = vrot.lane.b32.xlu1 %v1580_v10, %s3273_s26  ;;  %v1617_v10 = vperm.slane %v4185_v4, 2 }
 0xa7b   :  { %1592 = vrot.lane.b32.xlu0 %v1579_v2, %s3273_s26  ;;  %v74_v2 = vld [vmem:[%s5569_s2 + $0x8c] sm:$0xf] }
 0xacc   :  { %v4222_v32 = vpop.permute.xlu2 %1590 }
 0xacd   :  { %5808 = vst [vmem:[#allocation129_spill] sm:$0xff] %v4222_v32 }
 0xad4   :  { %v1611_v56 = vpop.permute.xlu2 %1610 }
 0xad5   :  { %v1620_v8 = vmul.f32 %v1615_v33, %v1611_v56  ;;  %v1619_v21 = vmul.f32 %v1614_v24, %v1611_v56  ;;  %v1618_v22 = vmul.f32 %v1613_v39, %v1611_v56  ;;  %v1622_v20 = vmul.f32 %v1617_v10, %v1611_v56 }
 0xad6   :  { %v1621_v49 = vmul.f32 %v1616_v50, %v1611_v56  ;;  %v1655_v33 = vperm.slane %v4171_v46, 3  ;;  %v1659_v56 = vperm.slane %v4185_v4, 3  ;;  %v1658_v10 = vperm.slane %v4198_v62, 3  ;;  %v4250_v46 = vld [vmem:[%s5571_s1] sm:$0xf] }
 0xad7   :  { %1632 = vrot.lane.b32.xlu2 %v1620_v8, %s3273_s26  ;;  %1630 = vrot.lane.b32.xlu1 %v1619_v21, %s3273_s26  ;;  %v1657_v21 = vperm.slane %v1520_v38, 3  ;;  %5810 = vst [vmem:[#allocation131_spill] sm:$0xff] %v4250_v46  ;;  %v5672_v62 = vperm.slane %v4250_v46, 2  ;;  %v5675_v50 = vperm.slane %v4250_v46, 3 }
 0xad8   :  { %1628 = vrot.lane.b32.xlu0 %v1618_v22, %s3273_s26  ;;  %v1656_v22 = vperm.slane %v4175_v18, 3  ;;  %v1692_v18 = vld [vmem:[%s5572_s3] sm:$0xf] }
 0xadf   :  { %1652 = vperm.xlu2 %3251, %v74_v2   ;;  %1636 = vrot.lane.b32.xlu1 %v1622_v20, %s3273_s26  ;;  %v1693_v20 = vld [vmem:[%s5573_s4] sm:$0xf] }
 0xae0   :  { %1634 = vrot.lane.b32.xlu0 %v1621_v49, %s3273_s26  ;;  %v5676_v49 = vperm.slane %v4250_v46, 0 }
 0xb31   :  { %v4236_v3 = vpop.permute.xlu2 %1632 }
 0xb32   :  { %5809 = vst [vmem:[#allocation130_spill] sm:$0xff] %v4236_v3 }
 0xb39   :  { %v1653_v24 = vpop.permute.xlu2 %1652 }
 0xb3a   :  { %v1662_v39 = vmul.f32 %v1657_v21, %v1653_v24  ;;  %v1661_v8 = vmul.f32 %v1656_v22, %v1653_v24  ;;  %v1660_v32 = vmul.f32 %v1655_v33, %v1653_v24  ;;  %v1664_v2 = vmul.f32 %v1659_v56, %v1653_v24 }
 0xb3b   :  { %v1663_v38 = vmul.f32 %v1658_v10, %v1653_v24  ;;  %v150_v33 = vmul.f32 %v5672_v62, %v3397_v42  ;;  %v148_v24 = vmul.f32 %v5676_v49, %v3391_v40 }
 0xb3c   :  { %1674 = vrot.lane.b32.xlu2 %v1662_v39, %s3273_s26  ;;  %1672 = vrot.lane.b32.xlu1 %v1661_v8, %s3273_s26 }
 0xb3d   :  { %1670 = vrot.lane.b32.xlu0 %v1660_v32, %s3273_s26  ;;  %v5673_v32 = vperm.slane %v4250_v46, 1  ;;  %v159_v10 = vperm.slane %v150_v33, 0  ;;  %v174_v62 = vperm.slane %v148_v24, 1  ;;  %v191_v3 = vperm.slane %v148_v24, 2 }
 0xb3f   :  { %v149_v4 = vmul.f32 %v5673_v32, %v3394_v41  ;;  %v151_v41 = vmul.f32 %v5675_v50, %v3418_v55  ;;  %v163_v55 = vmul.f32 %v159_v10, %v3373_v27  ;;  %v178_v46 = vmul.f32 %v174_v62, %v3375_v30 }
 0xb41   :  { %v158_v21 = vperm.slane %v149_v4, 0  ;;  %v175_v22 = vperm.slane %v149_v4, 1  ;;  %v192_v39 = vperm.slane %v149_v4, 2  ;;  %v209_v40 = vperm.slane %v149_v4, 3 }
 0xb42   :  { %v194_v17 = vperm.slane %v151_v41, 2 }
 0xb43   :  { %v162_v8 = vmul.f32 %v158_v21, %v3373_v27  ;;  %v179_v56 = vmul.f32 %v175_v22, %v3375_v30  ;;  %v196_v42 = vmul.f32 %v192_v39, %v3381_v35  ;;  %v193_v39 = vperm.slane %v150_v33, 2 }
 0xb44   :  { %1678 = vrot.lane.b32.xlu1 %v1664_v2, %s3273_s26  ;;  %v176_v2 = vperm.slane %v150_v33, 1  ;;  %v213_v10 = vmul.f32 %v209_v40, %v3379_v34  ;;  %v198_v4 = vmul.f32 %v194_v17, %v3381_v35 }
 0xb45   :  { %1676 = vrot.lane.b32.xlu0 %v1663_v38, %s3273_s26  ;;  %v160_v38 = vperm.slane %v151_v41, 0  ;;  %v183_v32 = vadd.f32 %v179_v56, %v162_v8  ;;  %v195_v8 = vmul.f32 %v191_v3, %v3381_v35 }
 0xb46   :  { %v180_v50 = vmul.f32 %v176_v2, %v3375_v30  ;;  %v197_v2 = vmul.f32 %v193_v39, %v3381_v35  ;;  %v363_v35 = vsel %vm277_vm8, %v3579_v52, %v3592_v60 }
 0xb47   :  { %v164_v49 = vmul.f32 %v160_v38, %v3373_v27  ;;  %v200_v51 = vadd.f32 %v196_v42, %v183_v32  ;;  %v279_v38 = vsel %vm277_vm8, %v3556_v5, %v3581_v37  ;;  %v321_v32 = vsel %vm277_vm8, %v3565_v15, %v3588_v54 }
 0xb48   :  { %v184_v56 = vadd.f32 %v180_v50, %v163_v55  ;;  %v211_v50 = vperm.slane %v151_v41, 3  ;;  %v210_v55 = vperm.slane %v150_v33, 3  ;;  %v405_v33 = vsel %vm277_vm8, %v3590_v59, %v3596_v63 }
 0xb4a   :  { %v201_v42 = vadd.f32 %v197_v2, %v184_v56  ;;  %v281_v56 = vsel %vm277_vm8, %v3525_v25, %v3558_v6  ;;  %v323_v2 = vsel %vm277_vm8, %v3529_v28, %v3576_v19  ;;  %v406_v19 = vsel %vm277_vm8, %v3596_v63, %v3537_v44 }
 0xb4b   :  { %v476_v63 = vsel %vm473_vm9, %v3539_v47, %v3604_v7 }
 0xb4c   :  { %1742 = vperm.xlu1 %3253, %v1692_v18   ;;  %v177_v18 = vperm.slane %v151_v41, 1  ;;  %v280_v41 = vsel %vm277_vm8, %v3581_v37, %v3525_v25  ;;  %v362_v25 = vsel %vm277_vm8, %v3531_v29, %v3579_v52 }
 0xb4e   :  { %v181_v21 = vmul.f32 %v177_v18, %v3375_v30  ;;  %v217_v30 = vadd.f32 %v213_v10, %v200_v51  ;;  %v278_v51 = vsel %vm277_vm8, %v3523_v23, %v3556_v5  ;;  %v322_v5 = vsel %vm277_vm8, %v3588_v54, %v3529_v28 }
 0xb4f   :  { %v475_v54 = vsel %vm473_vm9, %v3598_v45, %v3539_v47  ;;  %v404_v28 = vsel %vm277_vm8, %v3535_v36, %v3590_v59  ;;  %v474_v36 = vsel %vm473_vm9, %v3600_v43, %v3598_v45  ;;  %v518_v45 = vsel %vm473_vm9, %v3541_v48, %v3612_v12 }
 0xb50   :  { %v185_v18 = vadd.f32 %v181_v21, %v164_v49  ;;  %v287_v62 = vadd.f32 %v279_v38, %v217_v30  ;;  %v365_v38 = vsel %vm277_vm8, %v3533_v31, %v3586_v53  ;;  %v477_v30 = vsel %vm473_vm9, %v3604_v7, %v3602_v1 }
 0xb51   :  { %v519_v47 = vsel %vm473_vm9, %v3612_v12, %v3610_v11  ;;  %v559_v1 = vsel %vm473_vm9, %v3614_v13, %v3560_v57  ;;  %v558_v7 = vsel %vm473_vm9, %v3616_v14, %v3614_v13  ;;  %v561_v11 = vsel %vm473_vm9, %v3620_v16, %v3618_v0  ;;  %v5811_v12 = vld [vmem:[#allocation16_spill] sm:$0xff] }
 0xb52   :  { %v202_v40 = vadd.f32 %v198_v4, %v185_v18  ;;  %v329_v49 = vadd.f32 %v321_v32, %v287_v62  ;;  %v516_v32 = vsel %vm473_vm9, %v3608_v9, %v3606_v58  ;;  %v560_v62 = vsel %vm473_vm9, %v3560_v57, %v3620_v16  ;;  %v5816_v16 = vld [vmem:[#allocation24_spill] sm:$0xff] }
 0xb54   :  { %1751 = vperm.xlu1 %3253, %v1693_v20   ;;  %v157_v20 = vperm.slane %v148_v24, 0 }
 0xb56   :  { %v161_v22 = vmul.f32 %v157_v20, %v3373_v27  ;;  %v208_v20 = vperm.slane %v148_v24, 3  ;;  %v215_v24 = vmul.f32 %v211_v50, %v3379_v34  ;;  %v5812_v50 = vld [vmem:[#allocation14_spill] sm:$0xff] }
 0xb58   :  { %v182_v27 = vadd.f32 %v178_v46, %v161_v22  ;;  %v212_v17 = vmul.f32 %v208_v20, %v3379_v34  ;;  %v214_v46 = vmul.f32 %v210_v55, %v3379_v34  ;;  %v371_v22 = vadd.f32 %v363_v35, %v329_v49  ;;  %v5813_v55 = vld [vmem:[#allocation15_spill] sm:$0xff] }
 0xb59   :  { %v320_v34 = vsel %vm277_vm8, %v3527_v26, %v3565_v15  ;;  %v364_v26 = vsel %vm277_vm8, %v3592_v60, %v3533_v31  ;;  %v407_v31 = vsel %vm277_vm8, %v3537_v44, %v3594_v61  ;;  %v600_v13 = vsel %vm473_vm9, %v5813_v55, %v5812_v50 }
 0xb5a   :  { %v199_v3 = vadd.f32 %v195_v8, %v182_v27  ;;  %v218_v39 = vadd.f32 %v214_v46, %v201_v42  ;;  %v219_v8 = vadd.f32 %v215_v24, %v202_v40  ;;  %v413_v10 = vadd.f32 %v405_v33, %v371_v22  ;;  %v5815_v46 = vld [vmem:[#allocation17_spill] sm:$0xff]  ;;  %v4389_v22 = vpop.permute.xlu1 %1545 }
 0xb5b   :  { %v517_v27 = vsel %vm473_vm9, %v3606_v58, %v3541_v48  ;;  %v601_v42 = vsel %vm473_vm9, %v5812_v50, %v5811_v12 }
 0xb5c   :  { %v216_v21 = vadd.f32 %v212_v17, %v199_v3  ;;  %v288_v37 = vadd.f32 %v280_v41, %v218_v39  ;;  %v289_v6 = vadd.f32 %v281_v56, %v219_v8  ;;  %v483_v60 = vadd.f32 %v475_v54, %v413_v10  ;;  %v5814_v17 = vld [vmem:[#allocation18_spill] sm:$0xff]  ;;  %v5818_v8 = vld [vmem:[#allocation29_spill] sm:$0xff] }
 0xb5d   :  { %v602_v57 = vsel %vm473_vm9, %v5811_v12, %v5814_v17  ;;  %v603_v0 = vsel %vm473_vm9, %v5814_v17, %v5815_v46  ;;  %v5832_v12 = vld [vmem:[#allocation2_spill] sm:$0xff] }
 0xb5e   :  { %v286_v23 = vadd.f32 %v278_v51, %v216_v21  ;;  %v330_v4 = vadd.f32 %v322_v5, %v288_v37  ;;  %v331_v29 = vadd.f32 %v323_v2, %v289_v6  ;;  %v525_v44 = vadd.f32 %v517_v27, %v483_v60  ;;  %v5817_v51 = vld [vmem:[#allocation27_spill] sm:$0xff]  ;;  %v5820_v5 = vld [vmem:[#allocation28_spill] sm:$0xff]  ;;  %v4400_v37 = vpop.permute.xlu0 %1543  ;;  %v5821_v6 = vld [vmem:[#allocation25_spill] sm:$0xff] }
 0xb5f   :  { %v671_v24 = vsel %vm669_vm10, %v5817_v51, %v5816_v16  ;;  %v670_v56 = vsel %vm669_vm10, %v5818_v8, %v5817_v51  ;;  %v815_v50 = vperm.slane %v5832_v12, 0  ;;  %v5835_v46 = vld [vmem:[#allocation42_spill] sm:$0xff] }
 0xb60   :  { %v328_v15 = vadd.f32 %v320_v34, %v286_v23  ;;  %v372_v18 = vadd.f32 %v364_v26, %v330_v4  ;;  %v373_v53 = vadd.f32 %v365_v38, %v331_v29  ;;  %v567_v40 = vadd.f32 %v559_v1, %v525_v44  ;;  %v5819_v34 = vld [vmem:[#allocation31_spill] sm:$0xff]  ;;  %v5822_v26 = vld [vmem:[#allocation30_spill] sm:$0xff]  ;;  %v5823_v4 = vld [vmem:[#allocation33_spill] sm:$0xff] }
 0xb61   :  { %v672_v23 = vsel %vm669_vm10, %v5816_v16, %v5819_v34  ;;  %v673_v10 = vsel %vm669_vm10, %v5819_v34, %v5820_v5  ;;  %v712_v54 = vsel %vm669_vm10, %v5823_v4, %v5822_v26  ;;  %v5824_v38 = vld [vmem:[#allocation35_spill] sm:$0xff]  ;;  %v5825_v29 = vld [vmem:[#allocation32_spill] sm:$0xff]  ;;  %v840_v16 = vperm.slane %v5832_v12, 1 }
 0xb62   :  { %v370_v52 = vadd.f32 %v362_v25, %v328_v15  ;;  %v414_v20 = vadd.f32 %v406_v19, %v372_v18  ;;  %v415_v61 = vadd.f32 %v407_v31, %v373_v53  ;;  %v609_v41 = vadd.f32 %v601_v42, %v567_v40  ;;  %v5827_v53 = vld [vmem:[#allocation26_spill] sm:$0xff]  ;;  %v5830_v1 = vld [vmem:[#allocation39_spill] sm:$0xff]  ;;  %v4441_v51 = vpop.permute.xlu1 %1551 }
 0xb63   :  { %v713_v15 = vsel %vm669_vm10, %v5822_v26, %v5821_v6  ;;  %v715_v19 = vsel %vm669_vm10, %v5824_v38, %v5825_v29  ;;  %v816_v42 = vperm.slane %v5832_v12, 4 }
 0xb64   :  { %v412_v59 = vadd.f32 %v404_v28, %v370_v52  ;;  %v484_v43 = vadd.f32 %v476_v63, %v414_v20  ;;  %v485_v58 = vadd.f32 %v477_v30, %v415_v61  ;;  %v679_v25 = vadd.f32 %v671_v24, %v609_v41  ;;  %v5826_v52 = vld [vmem:[#allocation3_spill] sm:$0xff] }
 0xb65   :  { %v714_v28 = vsel %vm669_vm10, %v5821_v6, %v5824_v38  ;;  %v813_v60 = vperm.slane %v5826_v52, 0  ;;  %v814_v18 = vperm.slane %v5826_v52, 4  ;;  %v838_v30 = vperm.slane %v5826_v52, 1  ;;  %v5838_v6 = vld [vmem:[#allocation47_spill] sm:$0xff] }
 0xb66   :  { %v482_v3 = vadd.f32 %v474_v36, %v412_v59  ;;  %v526_v48 = vadd.f32 %v518_v45, %v484_v43  ;;  %v527_v14 = vadd.f32 %v519_v47, %v485_v58  ;;  %v5828_v59 = vld [vmem:[#allocation34_spill] sm:$0xff]  ;;  %v721_v20 = vadd.f32 %v713_v15, %v679_v25  ;;  %v5829_v45 = vld [vmem:[#allocation37_spill] sm:$0xff]  ;;  %v4446_v8 = vpop.permute.xlu0 %1549 }
 0xb67   :  { %v755_v63 = vsel %vm669_vm10, %v5828_v59, %v5827_v53  ;;  %v754_v43 = vsel %vm669_vm10, %v5829_v45, %v5828_v59  ;;  %v821_v58 = vperm.slane %v813_v60, 0  ;;  %v824_v5 = vperm.slane %v816_v42, 0 }
 0xb68   :  { %v524_v9 = vadd.f32 %v516_v32, %v482_v3  ;;  %v568_v49 = vadd.f32 %v560_v62, %v526_v48  ;;  %v569_v33 = vadd.f32 %v561_v11, %v527_v14  ;;  %v839_v32 = vperm.slane %v5826_v52, 5  ;;  %v5831_v62 = vld [vmem:[#allocation36_spill] sm:$0xff]  ;;  %v5834_v14 = vld [vmem:[#allocation38_spill] sm:$0xff] }
 0xb69   :  { %v763_v47 = vadd.f32 %v755_v63, %v721_v20  ;;  %v757_v48 = vsel %vm669_vm10, %v5830_v1, %v5831_v62  ;;  %v863_v11 = vperm.slane %v5826_v52, 2  ;;  %v888_v29 = vperm.slane %v5826_v52, 3 }
 0xb6a   :  { %v566_v35 = vadd.f32 %v558_v7, %v524_v9  ;;  %v610_v39 = vadd.f32 %v602_v57, %v568_v49  ;;  %v611_v2 = vadd.f32 %v603_v0, %v569_v33  ;;  %v756_v7 = vsel %vm669_vm10, %v5827_v53, %v5830_v1  ;;  %v5836_v33 = vld [vmem:[#allocation43_spill] sm:$0xff]  ;;  %v4464_v45 = vpop.permute.xlu1 %1588 }
 0xb6b   :  { %v822_v9 = vperm.slane %v814_v18, 0  ;;  %v847_v17 = vperm.slane %v839_v32, 1  ;;  %v864_v49 = vperm.slane %v5826_v52, 6  ;;  %v796_v0 = vsel %vm669_vm10, %v5835_v46, %v5834_v14  ;;  %v5842_v46 = vld [vmem:[#allocation56_spill] sm:$0xff] }
 0xb6c   :  { %v608_v21 = vadd.f32 %v600_v13, %v566_v35  ;;  %v680_v31 = vadd.f32 %v672_v23, %v610_v39  ;;  %v681_v36 = vadd.f32 %v673_v10, %v611_v2  ;;  %v5833_v13 = vld [vmem:[#allocation41_spill] sm:$0xff]  ;;  %v846_v35 = vperm.slane %v838_v30, 1 }
 0xb6d   :  { %v797_v40 = vsel %vm669_vm10, %v5834_v14, %v5833_v13  ;;  %v825_v41 = vmul.f32 %v821_v58, %v5836_v33  ;;  %v841_v39 = vperm.slane %v5832_v12, 5  ;;  %v823_v23 = vperm.slane %v815_v50, 0  ;;  %v5837_v2 = vld [vmem:[#allocation45_spill] sm:$0xff]  ;;  %v5841_v14 = vld [vmem:[#allocation46_spill] sm:$0xff] }
 0xb6e   :  { %v678_v27 = vadd.f32 %v670_v56, %v608_v21  ;;  %v722_v61 = vadd.f32 %v714_v28, %v680_v31  ;;  %v723_v3 = vadd.f32 %v715_v19, %v681_v36  ;;  %v826_v21 = vmul.f32 %v822_v9, %v5836_v33  ;;  %v4469_v58 = vpop.permute.xlu0 %1586 }
 0xb6f   :  { %v871_v56 = vperm.slane %v863_v11, 2  ;;  %v805_v34 = vadd.f32 %v797_v40, %v763_v47  ;;  %v798_v25 = vsel %vm669_vm10, %v5833_v13, %v5837_v2  ;;  %v850_v26 = vmul.f32 %v846_v35, %v5838_v6 }
 0xb70   :  { %v720_v44 = vadd.f32 %v712_v54, %v678_v27  ;;  %v764_v57 = vadd.f32 %v756_v7, %v722_v61  ;;  %v765_v24 = vadd.f32 %v757_v48, %v723_v3  ;;  %v851_v15 = vmul.f32 %v847_v17, %v5838_v6  ;;  %v5839_v54 = vld [vmem:[#allocation40_spill] sm:$0xff] }
 0xb71   :  { %v872_v4 = vperm.slane %v864_v49, 2  ;;  %v799_v38 = vsel %vm669_vm10, %v5837_v2, %v5839_v54  ;;  %v848_v28 = vperm.slane %v840_v16, 1  ;;  %v830_v60 = vadd.f32 %v826_v21, %v805_v34  ;;  %v5845_v34 = vld [vmem:[#allocation60_spill] sm:$0xff] }
 0xb72   :  { %v762_v55 = vadd.f32 %v754_v43, %v720_v44  ;;  %v849_v18 = vperm.slane %v841_v39, 1  ;;  %v889_v27 = vperm.slane %v5826_v52, 7  ;;  %v865_v31 = vperm.slane %v5832_v12, 2  ;;  %v5840_v52 = vld [vmem:[#allocation44_spill] sm:$0xff] }
 0xb73   :  { %v866_v36 = vperm.slane %v5832_v12, 6  ;;  %v827_v53 = vmul.f32 %v823_v23, %v5836_v33  ;;  %v806_v59 = vadd.f32 %v798_v25, %v764_v57  ;;  %v828_v63 = vmul.f32 %v824_v5, %v5836_v33  ;;  %v5846_v23 = vld [vmem:[#allocation61_spill] sm:$0xff]  ;;  %v5848_v54 = vld [vmem:[#allocation64_spill] sm:$0xff] }
 0xb74   :  { %v804_v10 = vadd.f32 %v796_v0, %v762_v55  ;;  %v807_v20 = vadd.f32 %v799_v38, %v765_v24  ;;  %v855_v32 = vadd.f32 %v851_v15, %v830_v60  ;;  %v852_v44 = vmul.f32 %v848_v28, %v5838_v6  ;;  %v5843_v0 = vld [vmem:[#allocation57_spill] sm:$0xff]  ;;  %v4496_v60 = vpop.permute.xlu1 %1594 }
 0xb75   :  { %v896_v61 = vperm.slane %v888_v29, 3  ;;  %v890_v3 = vperm.slane %v5832_v12, 3  ;;  %v875_v43 = vmul.f32 %v871_v56, %v5840_v52  ;;  %v876_v47 = vmul.f32 %v872_v4, %v5840_v52  ;;  %v5844_v24 = vld [vmem:[#allocation53_spill] sm:$0xff]  ;;  %v5850_v29 = vld [vmem:[#allocation55_spill] sm:$0xff] }
 0xb76   :  { %v829_v19 = vadd.f32 %v825_v41, %v804_v10  ;;  %v853_v1 = vmul.f32 %v849_v18, %v5838_v6  ;;  %v897_v7 = vperm.slane %v889_v27, 3  ;;  %v873_v9 = vperm.slane %v865_v31, 2  ;;  %v5847_v10 = vld [vmem:[#allocation54_spill] sm:$0xff]  ;;  %v5849_v38 = vld [vmem:[#allocation65_spill] sm:$0xff]  ;;  %v5851_v18 = vld [vmem:[#allocation59_spill] sm:$0xff] }
 0xb77   :  { %v874_v62 = vperm.slane %v866_v36, 2  ;;  %v831_v48 = vadd.f32 %v827_v53, %v806_v59  ;;  %v891_v11 = vperm.slane %v5832_v12, 7  ;;  %v832_v50 = vadd.f32 %v828_v63, %v807_v20  ;;  %v4501_v53 = vpop.permute.xlu0 %1592  ;;  %v5852_v63 = vld [vmem:[#allocation58_spill] sm:$0xff] }
 0xb78   :  { %v854_v30 = vadd.f32 %v850_v26, %v829_v19  ;;  %v880_v55 = vadd.f32 %v876_v47, %v855_v32  ;;  %v900_v40 = vmul.f32 %v896_v61, %v5841_v14  ;;  %v901_v35 = vmul.f32 %v897_v7, %v5841_v14  ;;  %v5854_v32 = vld [vmem:[#allocation69_spill] sm:$0xff]  ;;  %v5855_v61 = vld [vmem:[#allocation70_spill] sm:$0xff] }
 0xb79   :  { %v856_v13 = vadd.f32 %v852_v44, %v831_v48  ;;  %v898_v17 = vperm.slane %v890_v3, 3  ;;  %v857_v57 = vadd.f32 %v853_v1, %v832_v50  ;;  %v877_v49 = vmul.f32 %v873_v9, %v5840_v52  ;;  %v5859_v50 = vld [vmem:[#allocation81_spill] sm:$0xff] }
 0xb7a   :  { %v879_v42 = vadd.f32 %v875_v43, %v854_v30  ;;  %v966_v16 = vsel %vm965_vm11, %v5843_v0, %v5842_v46  ;;  %v967_v12 = vsel %vm965_vm11, %v5842_v46, %v5844_v24  ;;  %v899_v33 = vperm.slane %v891_v11, 3  ;;  %v5853_v30 = vld [vmem:[#allocation68_spill] sm:$0xff]  ;;  %v5856_v43 = vld [vmem:[#allocation63_spill] sm:$0xff]  ;;  %v5858_v11 = vld [vmem:[#allocation78_spill] sm:$0xff] }
 0xb7b   :  { %v878_v41 = vmul.f32 %v874_v62, %v5840_v52  ;;  %v905_v39 = vadd.f32 %v901_v35, %v880_v55  ;;  %v881_v56 = vadd.f32 %v877_v49, %v856_v13  ;;  %v1008_v5 = vsel %vm965_vm11, %v5846_v23, %v5845_v34  ;;  %v5857_v62 = vld [vmem:[#allocation62_spill] sm:$0xff]  ;;  %v5862_v46 = vld [vmem:[#allocation79_spill] sm:$0xff]  ;;  %v5863_v0 = vld [vmem:[#allocation85_spill] sm:$0xff] }
 0xb7c   :  { %v904_v21 = vadd.f32 %v900_v40, %v879_v42  ;;  %v1009_v2 = vsel %vm965_vm11, %v5845_v34, %v5847_v10  ;;  %v902_v15 = vmul.f32 %v898_v17, %v5841_v14  ;;  %v903_v4 = vmul.f32 %v899_v33, %v5841_v14  ;;  %v5860_v55 = vld [vmem:[#allocation82_spill] sm:$0xff]  ;;  %v5861_v40 = vld [vmem:[#allocation67_spill] sm:$0xff]  ;;  %v5866_v23 = vld [vmem:[#allocation72_spill] sm:$0xff] }
 0xb7d   :  { %v975_v6 = vadd.f32 %v967_v12, %v905_v39  ;;  %v882_v26 = vadd.f32 %v878_v41, %v857_v57  ;;  %v1050_v28 = vsel %vm965_vm11, %v5849_v38, %v5848_v54  ;;  %v1051_v19 = vsel %vm965_vm11, %v5848_v54, %v5850_v29  ;;  %v5865_v41 = vld [vmem:[#allocation66_spill] sm:$0xff] }
 0xb7e   :  { %v974_v25 = vadd.f32 %v966_v16, %v904_v21  ;;  %v968_v27 = vsel %vm965_vm11, %v5844_v24, %v5851_v18  ;;  %v906_v59 = vadd.f32 %v902_v15, %v881_v56  ;;  %v969_v20 = vsel %vm965_vm11, %v5851_v18, %v5852_v63  ;;  %v5864_v24 = vld [vmem:[#allocation86_spill] sm:$0xff]  ;;  %v4545_v15 = vpop.permute.xlu1 %1630  ;;  %v5871_v18 = vld [vmem:[#allocation84_spill] sm:$0xff] }
 0xb7f   :  { %v1017_v36 = vadd.f32 %v1009_v2, %v975_v6  ;;  %v1092_v44 = vsel %vm965_vm11, %v5854_v32, %v5853_v30  ;;  %v1093_v3 = vsel %vm965_vm11, %v5853_v30, %v5855_v61  ;;  %v907_v52 = vadd.f32 %v903_v4, %v882_v26  ;;  %v5868_v2 = vld [vmem:[#allocation89_spill] sm:$0xff]  ;;  %v5869_v6 = vld [vmem:[#allocation90_spill] sm:$0xff]  ;;  %v5870_v4 = vld [vmem:[#allocation71_spill] sm:$0xff] }
 0xb80   :  { %v1016_v31 = vadd.f32 %v1008_v5, %v974_v25  ;;  %v1010_v47 = vsel %vm965_vm11, %v5847_v10, %v5856_v43  ;;  %v976_v9 = vadd.f32 %v968_v27, %v906_v59  ;;  %v1011_v48 = vsel %vm965_vm11, %v5856_v43, %v5857_v62  ;;  %v5867_v10 = vld [vmem:[#allocation80_spill] sm:$0xff]  ;;  %v5874_v63 = vld [vmem:[#allocation94_spill] sm:$0xff]  ;;  %v5875_v32 = vld [vmem:[#allocation83_spill] sm:$0xff] }
 0xb81   :  { %v1059_v7 = vadd.f32 %v1051_v19, %v1017_v36  ;;  %v1163_v42 = vsel %vm1161_vm12, %v5859_v50, %v5858_v11  ;;  %v1162_v13 = vsel %vm1161_vm12, %v5860_v55, %v5859_v50  ;;  %v977_v14 = vadd.f32 %v969_v20, %v907_v52  ;;  %v5873_v36 = vld [vmem:[#allocation93_spill] sm:$0xff]  ;;  %v5876_v43 = vld [vmem:[#allocation88_spill] sm:$0xff]  ;;  %v5879_v62 = vld [vmem:[#allocation103_spill] sm:$0xff] }
 0xb82   :  { %v1058_v1 = vadd.f32 %v1050_v28, %v1016_v31  ;;  %v1052_v35 = vsel %vm965_vm11, %v5850_v29, %v5861_v40  ;;  %v1018_v49 = vadd.f32 %v1010_v47, %v976_v9  ;;  %v1205_v16 = vsel %vm1161_vm12, %v5863_v0, %v5862_v46  ;;  %v1629_v29 = vpop.permute.xlu0 %1628  ;;  %v5872_v31 = vld [vmem:[#allocation95_spill] sm:$0xff] }
 0xb83   :  { %v1101_v57 = vadd.f32 %v1093_v3, %v1059_v7  ;;  %v1204_v12 = vsel %vm1161_vm12, %v5864_v24, %v5863_v0  ;;  %v1019_v33 = vadd.f32 %v1011_v48, %v977_v14  ;;  %v1053_v21 = vsel %vm965_vm11, %v5861_v40, %v5865_v41  ;;  %v5878_v7 = vld [vmem:[#allocation106_spill] sm:$0xff]  ;;  %v5880_v50 = vld [vmem:[#allocation87_spill] sm:$0xff]  ;;  %v5881_v40 = vld [vmem:[#allocation112_spill] sm:$0xff] }
 0xb84   :  { %v1100_v17 = vadd.f32 %v1092_v44, %v1058_v1  ;;  %v1060_v34 = vadd.f32 %v1052_v35, %v1018_v49  ;;  %v1094_v5 = vsel %vm965_vm11, %v5855_v61, %v5866_v23  ;;  %v1247_v25 = vsel %vm1161_vm12, %v5868_v2, %v5867_v10  ;;  %v5877_v1 = vld [vmem:[#allocation108_spill] sm:$0xff]  ;;  %v5882_v35 = vld [vmem:[#allocation109_spill] sm:$0xff]  ;;  %v5885_v41 = vld [vmem:[#allocation91_spill] sm:$0xff] }
 0xb85   :  { %v1171_v39 = vadd.f32 %v1163_v42, %v1101_v57  ;;  %v1246_v26 = vsel %vm1161_vm12, %v5869_v6, %v5868_v2  ;;  %v1095_v54 = vsel %vm965_vm11, %v5866_v23, %v5870_v4  ;;  %v1061_v19 = vadd.f32 %v1053_v21, %v1019_v33  ;;  %v5883_v57 = vld [vmem:[#allocation104_spill] sm:$0xff]  ;;  %v5888_v23 = vld [vmem:[#allocation105_spill] sm:$0xff] }
 0xb86   :  { %v1170_v56 = vadd.f32 %v1162_v13, %v1100_v17  ;;  %v1164_v27 = vsel %vm1161_vm12, %v5858_v11, %v5871_v18  ;;  %v1289_v59 = vsel %vm1161_vm12, %v5873_v36, %v5872_v31  ;;  %v1288_v20 = vsel %vm1161_vm12, %v5874_v63, %v5873_v36  ;;  %v5884_v0 = vld [vmem:[#allocation92_spill] sm:$0xff]  ;;  %v5889_v2 = vld [vmem:[#allocation97_spill] sm:$0xff]  ;;  %v1637_v36 = vpop.permute.xlu1 %1636  ;;  %v5894_v63 = vld [vmem:[#allocation107_spill] sm:$0xff] }
 0xb87   :  { %v1213_v38 = vadd.f32 %v1205_v16, %v1171_v39  ;;  %v1102_v30 = vadd.f32 %v1094_v5, %v1060_v34  ;;  %v1165_v44 = vsel %vm1161_vm12, %v5871_v18, %v5875_v32  ;;  %v1103_v52 = vadd.f32 %v1095_v54, %v1061_v19  ;;  %v5886_v39 = vld [vmem:[#allocation116_spill] sm:$0xff] }
 0xb88   :  { %v1212_v28 = vadd.f32 %v1204_v12, %v1170_v56  ;;  %v1206_v47 = vsel %vm1161_vm12, %v5862_v46, %v5876_v43  ;;  %v1358_v9 = vsel %vm1357_vm13, %v5878_v7, %v5877_v1  ;;  %v1359_v48 = vsel %vm1357_vm13, %v5877_v1, %v5879_v62  ;;  %v5887_v56 = vld [vmem:[#allocation113_spill] sm:$0xff]  ;;  %v5890_v4 = vld [vmem:[#allocation96_spill] sm:$0xff]  ;;  %v5897_v7 = vld [vmem:[#allocation111_spill] sm:$0xff] }
 0xb89   :  { %v1255_v61 = vadd.f32 %v1247_v25, %v1213_v38  ;;  %v1172_v11 = vadd.f32 %v1164_v27, %v1102_v30  ;;  %v1207_v42 = vsel %vm1161_vm12, %v5876_v43, %v5880_v50  ;;  %v1173_v14 = vadd.f32 %v1165_v44, %v1103_v52  ;;  %v5891_v38 = vld [vmem:[#allocation121_spill] sm:$0xff]  ;;  %v5893_v18 = vld [vmem:[#allocation120_spill] sm:$0xff]  ;;  %v5898_v50 = vld [vmem:[#allocation114_spill] sm:$0xff] }
 0xb8a   :  { %v1254_v3 = vadd.f32 %v1246_v26, %v1212_v28  ;;  %v1400_v17 = vsel %vm1357_vm13, %v5882_v35, %v5881_v40  ;;  %v1401_v49 = vsel %vm1357_vm13, %v5881_v40, %v5883_v57  ;;  %v1248_v16 = vsel %vm1161_vm12, %v5867_v10, %v5884_v0  ;;  %v5892_v28 = vld [vmem:[#allocation117_spill] sm:$0xff]  ;;  %v1635_v32 = vpop.permute.xlu0 %1634  ;;  %v5896_v43 = vld [vmem:[#allocation128_spill] sm:$0xff] }
 0xb8b   :  { %v1297_v55 = vadd.f32 %v1289_v59, %v1255_v61  ;;  %v1214_v46 = vadd.f32 %v1206_v47, %v1172_v11  ;;  %v1215_v33 = vadd.f32 %v1207_v42, %v1173_v14  ;;  %v1249_v21 = vsel %vm1161_vm12, %v5884_v0, %v5885_v41  ;;  %v5895_v61 = vld [vmem:[#allocation110_spill] sm:$0xff]  ;;  %v5900_v14 = vld [vmem:[#allocation115_spill] sm:$0xff] }
 0xb8c   :  { %v1296_v13 = vadd.f32 %v1288_v20, %v1254_v3  ;;  %v1442_v34 = vsel %vm1357_vm13, %v5887_v56, %v5886_v39  ;;  %v1443_v5 = vsel %vm1357_vm13, %v5886_v39, %v5888_v23  ;;  %v1290_v25 = vsel %vm1161_vm12, %v5872_v31, %v5889_v2  ;;  %v5902_v0 = vld [vmem:[#allocation130_spill] sm:$0xff]  ;;  %v5903_v41 = vld [vmem:[#allocation119_spill] sm:$0xff] }
 0xb8d   :  { %v1367_v12 = vadd.f32 %v1359_v48, %v1297_v55  ;;  %v1256_v26 = vadd.f32 %v1248_v16, %v1214_v46  ;;  %v1291_v54 = vsel %vm1161_vm12, %v5889_v2, %v5890_v4  ;;  %v1484_v19 = vsel %vm1357_vm13, %v5892_v28, %v5891_v38  ;;  %v5899_v55 = vld [vmem:[#allocation129_spill] sm:$0xff]  ;;  %v5904_v39 = vld [vmem:[#allocation123_spill] sm:$0xff] }
 0xb8e   :  { %v1366_v24 = vadd.f32 %v1358_v9, %v1296_v13  ;;  %v1485_v27 = vsel %vm1357_vm13, %v5891_v38, %v5893_v18  ;;  %v1257_v59 = vadd.f32 %v1249_v21, %v1215_v33  ;;  %v1360_v31 = vsel %vm1357_vm13, %v5879_v62, %v5894_v63 }
 0xb8f   :  { %v1409_v6 = vadd.f32 %v1401_v49, %v1367_v12  ;;  %v1298_v44 = vadd.f32 %v1290_v25, %v1256_v26  ;;  %v1361_v3 = vsel %vm1357_vm13, %v5894_v63, %v5895_v61  ;;  %v1554_v52 = vsel %vm1553_vm14, %v4400_v37, %v4389_v22  ;;  %v5901_v49 = vld [vmem:[#allocation118_spill] sm:$0xff] }
 0xb90   :  { %v1408_v10 = vadd.f32 %v1400_v17, %v1366_v24  ;;  %v1555_v47 = vsel %vm1553_vm14, %v4389_v22, %v5896_v43  ;;  %v1299_v1 = vadd.f32 %v1291_v54, %v1257_v59  ;;  %v1402_v9 = vsel %vm1357_vm13, %v5883_v57, %v5897_v7 }
 0xb91   :  { %v1451_v30 = vadd.f32 %v1443_v5, %v1409_v6  ;;  %v1368_v11 = vadd.f32 %v1360_v31, %v1298_v44  ;;  %v1403_v42 = vsel %vm1357_vm13, %v5897_v7, %v5898_v50  ;;  %v1597_v37 = vsel %vm1553_vm14, %v4464_v45, %v5899_v55 }
 0xb92   :  { %v1450_v20 = vadd.f32 %v1442_v34, %v1408_v10  ;;  %v1596_v22 = vsel %vm1553_vm14, %v4469_v58, %v4464_v45  ;;  %v1369_v13 = vadd.f32 %v1361_v3, %v1299_v1  ;;  %v1444_v40 = vsel %vm1357_vm13, %v5888_v23, %v5900_v14 }
 0xb93   :  { %v1493_v48 = vadd.f32 %v1485_v27, %v1451_v30  ;;  %v1410_v57 = vadd.f32 %v1402_v9, %v1368_v11  ;;  %v1445_v46 = vsel %vm1357_vm13, %v5900_v14, %v5901_v49  ;;  %v1639_v16 = vsel %vm1553_vm14, %v4545_v15, %v5902_v0 }
 0xb94   :  { %v1492_v62 = vadd.f32 %v1484_v19, %v1450_v20  ;;  %v1638_v24 = vsel %vm1553_vm14, %v1629_v29, %v4545_v15  ;;  %v1411_v45 = vadd.f32 %v1403_v42, %v1369_v13  ;;  %v1486_v21 = vsel %vm1357_vm13, %v5893_v18, %v5903_v41 }
 0xb95   :  { %v1563_v17 = vadd.f32 %v1555_v47, %v1493_v48  ;;  %v1452_v33 = vadd.f32 %v1444_v40, %v1410_v57  ;;  %v1487_v56 = vsel %vm1357_vm13, %v5903_v41, %v5904_v39  ;;  %v1556_v29 = vsel %vm1553_vm14, %v5896_v43, %v4446_v8 }
 0xb96   :  { %v1562_v35 = vadd.f32 %v1554_v52, %v1492_v62  ;;  %v1675_v34 = vpop.permute.xlu2 %1674  ;;  %v1453_v5 = vadd.f32 %v1445_v46, %v1411_v45  ;;  %v1557_v6 = vsel %vm1553_vm14, %v4446_v8, %v4441_v51  ;;  %v1598_v19 = vsel %vm1553_vm14, %v5899_v55, %v4501_v53 }
 0xb97   :  { %v1605_v58 = vadd.f32 %v1597_v37, %v1563_v17  ;;  %v1494_v4 = vadd.f32 %v1486_v21, %v1452_v33  ;;  %v1599_v18 = vsel %vm1553_vm14, %v4501_v53, %v4496_v60  ;;  %v1640_v51 = vsel %vm1553_vm14, %v5902_v0, %v1635_v32 }
 0xb98   :  { %v1604_v12 = vadd.f32 %v1596_v22, %v1562_v35  ;;  %v1495_v54 = vadd.f32 %v1487_v56, %v1453_v5  ;;  %v1641_v8 = vsel %vm1553_vm14, %v1635_v32, %v1637_v36  ;;  %v76_v35 = vld [vmem:[%s5574_s5 + $0x4] sm:$0xf] }
 0xb99   :  { %v1647_v2 = vadd.f32 %v1639_v16, %v1605_v58  ;;  %v1564_v27 = vadd.f32 %v1556_v29, %v1494_v4 }
 0xb9a   :  { %v1646_v25 = vadd.f32 %v1638_v24, %v1604_v12  ;;  %v1565_v59 = vadd.f32 %v1557_v6, %v1495_v54 }
 0xb9b   :  { %v1606_v63 = vadd.f32 %v1598_v19, %v1564_v27 }
 0xb9c   :  { %v1607_v31 = vadd.f32 %v1599_v18, %v1565_v59  ;;  %v79_v59 = vld [vmem:[%s5574_s5 + $0x10] sm:$0xf] }
 0xb9d   :  { %v1648_v61 = vadd.f32 %v1640_v51, %v1606_v63 }
 0xb9e   :  { %v1649_v3 = vadd.f32 %v1641_v8, %v1607_v31 }
 0xbae   :  { %v1673_v23 = vpop.permute.xlu1 %1672 }
 0xbaf   :  { %v1681_v10 = vsel %vm1553_vm14, %v1673_v23, %v1675_v34  ;;  %v1671_v15 = vpop.permute.xlu0 %1670 }
 0xbb0   :  { %v1680_v26 = vsel %vm1553_vm14, %v1671_v15, %v1673_v23  ;;  %v4653_v38 = vadd.f32 %v1681_v10, %v1647_v2 }
 0xbb1   :  { %v4655_v28 = vadd.f32 %v1680_v26, %v1646_v25 }
 0xbb2   :  { %v1705_v20 = vmul.f32 %v4653_v38, %v4653_v38  ;;  %v1696_v52 = vsel %vm1694_vm15, %v4653_v38, 0.0 }
 0xbb3   :  { %v1704_v30 = vmul.f32 %v4655_v28, %v4655_v28  ;;  %v1695_v60 = vsel %vm1694_vm15, %v4655_v28, 0.0 }
 0xbb4   :  { %v1709_v7 = vsel %vm1694_vm15, %v1705_v20, 0.0  ;;  %v1697_v9 = vadd.f32 %v1696_v52, %v1695_v60  ;;  %v75_v20 = vld [vmem:[%s5574_s5] sm:$0xf] }
 0xbb5   :  { %v1708_v1 = vsel %vm1694_vm15, %v1704_v30, 0.0  ;;  %v77_v30 = vld [vmem:[%s5574_s5 + $0x8] sm:$0xf] }
 0xbb6   :  { %v1679_v44 = vpop.permute.xlu1 %1678  ;;  %v1710_v42 = vadd.f32 %v1709_v7, %v1708_v1  ;;  %v5906_v7 = vld [vmem:[#allocation5_spill] sm:$0xff] }
 0xbb7   :  { %v1677_v53 = vpop.permute.xlu0 %1676 }
 0xbb8   :  { %v1682_v36 = vsel %vm1553_vm14, %v1675_v34, %v1677_v53  ;;  %v1683_v32 = vsel %vm1553_vm14, %v1677_v53, %v1679_v44  ;;  %v78_v44 = vld [vmem:[%s5574_s5 + $0xc] sm:$0xf]  ;;  %v5905_v53 = vld [vmem:[#allocation4_spill] sm:$0xff] }
 0xbb9   :  { %v1690_v43 = vadd.f32 %v1682_v36, %v1648_v61  ;;  %v1691_v47 = vadd.f32 %v1683_v32, %v1649_v3 }
 0xbbb   :  { %v1698_v62 = vsel %vm1694_vm15, %v1690_v43, 0.0  ;;  %v1706_v48 = vmul.f32 %v1690_v43, %v1690_v43  ;;  %v1707_v11 = vmul.f32 %v1691_v47, %v1691_v47  ;;  %v1700_v55 = vsel %vm1694_vm15, %v1691_v47, 0.0 }
 0xbbc   :  { %v1699_v50 = vadd.f32 %v1698_v62, %v1697_v9 }
 0xbbd   :  { %v1711_v37 = vsel %vm1694_vm15, %v1706_v48, 0.0  ;;  %v1713_v14 = vsel %vm1694_vm15, %v1707_v11, 0.0 }
 0xbbe   :  { %v1701_v22 = vadd.f32 %v1700_v55, %v1699_v50  ;;  %v1712_v13 = vadd.f32 %v1711_v37, %v1710_v42  ;;  %v1743_v33 = vpop.permute.xlu1 %1742  ;;  %v5907_v50 = vld [vmem:[#allocation7_spill] sm:$0xff] }
 0xbc0   :  { %1702 = vadd.xlane.f32.xlu2 %v1701_v22  ;;  %v1714_v40 = vadd.f32 %v1713_v14, %v1712_v13  ;;  %v5908_v13 = vld [vmem:[#allocation8_spill] sm:$0xff] }
 0xbc2   :  { %1715 = vadd.xlane.f32.xlu0 %v1714_v40  ;;  %v5909_v40 = vld [vmem:[#allocation6_spill] sm:$0xff] }
 0xbc6   :  { %v1752_v6 = vpop.permute.xlu1 %1751 }
 0xbd6   :  { %1807 = vperm.xlu0 %3252, %v76_v35  }
 0xc33   :  { %v1703_v17 = vpop.xlane.xlu2 %1702 }
 0xc34   :  { %v1717_v57 = vmul.f32 0.001953125, %v1703_v17 }
 0xc35   :  { %v1716_v49 = vpop.xlane.xlu0 %1715 }
 0xc36   :  { %v1718_v46 = vmul.f32 0.001953125, %v1716_v49  ;;  %v1719_v0 = vmul.f32 %v1717_v57, %v1717_v57  ;;  %v1721_v56 = vsub.f32 %v4655_v28, %v1717_v57  ;;  %v1724_v34 = vsub.f32 %v1691_v47, %v1717_v57 }
 0xc37   :  { %v1722_v5 = vsub.f32 %v4653_v38, %v1717_v57  ;;  %v1723_v27 = vsub.f32 %v1690_v43, %v1717_v57 }
 0xc38   :  { %v1720_v16 = vsub.f32 %v1718_v46, %v1719_v0 }
 0xc3a   :  { %v1725_v24 = vadd.f32 1e-05, %v1720_v16 }
 0xc3c   :  { %3254 = vrsqrt.f32 %v1725_v24  ;;  %vm1732_vm2 = vweird.f32 %v1725_v24 }
 0xc42   :  { %v3255_v45 = vpop.eup %3254 }
 0xc43   :  { %v1727_v58 = vmul.f32 %v3255_v45, %v1725_v24  ;;  %vm1733_vm0 = vweird.f32 %v3255_v45  ;;  %v80_v24 = vld [vmem:[%s5574_s5 + $0x14] sm:$0xf] }
 0xc44   :  { %vm1734_vm3 = vmor %vm1732_vm2, %vm1733_vm0 }
 0xc45   :  { %v1728_v12 = vmul.f32 %v3255_v45, %v1727_v58 }
 0xc47   :  { %v1729_v41 = vmul.f32 0.5, %v1728_v12 }
 0xc49   :  { %v1730_v21 = vsub.f32 1.5, %v1729_v41 }
 0xc4b   :  { %v1731_v39 = vmul.f32 %v3255_v45, %v1730_v21 }
 0xc4d   :  { %v1735_v23 = vsel %vm1734_vm3, %v3255_v45, %v1731_v39 }
 0xc4e   :  { %v1736_v2 = vmul.f32 %v1735_v23, %v1721_v56  ;;  %v1739_v25 = vmul.f32 %v1735_v23, %v1724_v34  ;;  %v1737_v10 = vmul.f32 %v1735_v23, %v1722_v5  ;;  %v1738_v38 = vmul.f32 %v1735_v23, %v1723_v27  ;;  %v81_v23 = vld [vmem:[%s5574_s5 + $0x18] sm:$0xf] }
 0xc50   :  { %v1748_v15 = vmul.f32 %v1743_v33, %v1739_v25  ;;  %v1745_v29 = vmul.f32 %v1743_v33, %v1736_v2  ;;  %v1746_v18 = vmul.f32 %v1743_v33, %v1737_v10  ;;  %v1747_v8 = vmul.f32 %v1743_v33, %v1738_v38 }
 0xc52   :  { %v1757_v26 = vadd.f32 %v1752_v6, %v1748_v15  ;;  %v1754_v4 = vadd.f32 %v1752_v6, %v1745_v29  ;;  %v1755_v28 = vadd.f32 %v1752_v6, %v1746_v18  ;;  %v1756_v63 = vadd.f32 %v1752_v6, %v1747_v8 }
 0xc54   :  { %v4687_v54 = vmax.f32 %v1757_v26, 0.0  ;;  %v4689_v19 = vmax.f32 %v1754_v4, 0.0  ;;  %v4698_v51 = vmax.f32 %v1755_v28, 0.0  ;;  %v4702_v31 = vmax.f32 %v1756_v63, 0.0  ;;  %v82_v28 = vld [vmem:[%s5574_s5 + $0x1c] sm:$0xf] }
 0xc56   :  { %1772 = vrot.lane.b32.xlu2 %v4687_v54, %s3259_s13  ;;  %1766 = vrot.lane.b32.xlu1 %v4689_v19, %s3259_s13 }
 0xc5e   :  { %1863 = vperm.xlu2 %3251, %v79_v59   ;;  %1768 = vrot.lane.b32.xlu1 %v4698_v51, %s3259_s13 }
 0xc66   :  { %1770 = vrot.lane.b32.xlu1 %v4702_v31, %s3259_s13 }
 0xc6e   :  { %1790 = vperm.xlu1 %3253, %v75_v20  }
 0xc76   :  { %1824 = vperm.xlu1 %3253, %v77_v30  }
 0xc7e   :  { %1841 = vperm.xlu1 %3253, %v78_v44  }
 0xcb0   :  { %v1773_v61 = vpop.permute.xlu2 %1772 }
 0xcb1   :  { %v4733_v48 = vsel %vm128_vm1, %v1773_v61, 0.0 }
 0xcb2   :  { %v4737_v42 = vmul.f32 %v4733_v48, %v5907_v50 }
 0xcb4   :  { %v1870_v17 = vperm.slane %v4737_v42, 0  ;;  %v1912_v34 = vperm.slane %v4737_v42, 1  ;;  %v1954_v38 = vperm.slane %v4737_v42, 2 }
 0xcb8   :  { %v1864_v32 = vpop.permute.xlu2 %1863 }
 0xcb9   :  { %v1875_v46 = vmul.f32 %v1870_v17, %v1864_v32 }
 0xcc8   :  { %v1767_v3 = vpop.permute.xlu1 %1766 }
 0xcc9   :  { %v4716_v60 = vsel %vm128_vm1, 0.0, %v1767_v3 }
 0xcca   :  { %v4720_v52 = vmul.f32 %v4716_v60, %v5905_v53 }
 0xccc   :  { %v1866_v36 = vperm.slane %v4720_v52, 0  ;;  %v1908_v33 = vperm.slane %v4720_v52, 1  ;;  %v1950_v6 = vperm.slane %v4720_v52, 2 }
 0xcce   :  { %v1871_v43 = vmul.f32 %v1866_v36, %v1864_v32 }
 0xcd0   :  { %1881 = vrot.lane.b32.xlu0 %v1871_v43, %s3262_s0  ;;  %v1769_v47 = vpop.permute.xlu1 %1768  ;;  %v1996_v43 = vperm.slane %v4737_v42, 3  ;;  %v5911_v42 = vld [vmem:[#allocation10_spill] sm:$0xff] }
 0xcd1   :  { %v4725_v1 = vsel %vm128_vm1, %v1767_v3, %v1769_v47 }
 0xcd2   :  { %v4729_v9 = vmul.f32 %v4725_v1, %v5906_v7 }
 0xcd4   :  { %v1867_v62 = vperm.slane %v4729_v9, 0  ;;  %v1909_v12 = vperm.slane %v4729_v9, 1  ;;  %v1951_v29 = vperm.slane %v4729_v9, 2  ;;  %v1993_v44 = vperm.slane %v4729_v9, 3 }
 0xcd6   :  { %v1872_v11 = vmul.f32 %v1867_v62, %v1864_v32 }
 0xcd8   :  { %1883 = vrot.lane.b32.xlu1 %v1872_v11, %s3262_s0  ;;  %v1771_v55 = vpop.permute.xlu1 %1770  ;;  %v5910_v11 = vld [vmem:[#allocation12_spill] sm:$0xff] }
 0xcd9   :  { %v4741_v37 = vsel %vm128_vm1, %v1769_v47, %v1771_v55  ;;  %v4744_v22 = vsel %vm128_vm1, %v1771_v55, %v1773_v61  ;;  %v1992_v61 = vperm.slane %v4720_v52, 3  ;;  %v83_v47 = vld [vmem:[%s5574_s5 + $0x20] sm:$0xf]  ;;  %v4810_v55 = vmul.f32 %v4725_v1, %v5911_v42 }
 0xcda   :  { %v4748_v14 = vmul.f32 %v4744_v22, %v5908_v13  ;;  %v1858_v35 = vmul.f32 %v4741_v37, %v5909_v40  ;;  %v4806_v50 = vmul.f32 %v4741_v37, %v5910_v11  ;;  %v5912_v13 = vld [vmem:[#allocation9_spill] sm:$0xff] }
 0xcdc   :  { %v1869_v57 = vperm.slane %v4748_v14, 0  ;;  %v1868_v49 = vperm.slane %v1858_v35, 0  ;;  %v1910_v58 = vperm.slane %v1858_v35, 1  ;;  %v1911_v5 = vperm.slane %v4748_v14, 1 }
 0xcdd   :  { %v1952_v15 = vperm.slane %v1858_v35, 2  ;;  %v1953_v59 = vperm.slane %v4748_v14, 2  ;;  %v1994_v30 = vperm.slane %v1858_v35, 3  ;;  %v1995_v7 = vperm.slane %v4748_v14, 3 }
 0xcde   :  { %v1874_v0 = vmul.f32 %v1869_v57, %v1864_v32  ;;  %v1873_v16 = vmul.f32 %v1868_v49, %v1864_v32  ;;  %v4814_v14 = vmul.f32 %v4716_v60, %v5912_v13  ;;  %v2041_v40 = vperm.slane %v4806_v50, 0 }
 0xcdf   :  { %v2040_v35 = vperm.slane %v4810_v55, 0 }
 0xce0   :  { %1889 = vrot.lane.b32.xlu1 %v1875_v46, %s3262_s0  ;;  %1887 = vrot.lane.b32.xlu0 %v1874_v0, %s3262_s0  ;;  %v2039_v17 = vperm.slane %v4814_v14, 0 }
 0xce1   :  { %1885 = vrot.lane.b32.xlu2 %v1873_v16, %s3262_s0  ;;  %v5913_v16 = vld [vmem:[#allocation11_spill] sm:$0xff] }
 0xce9   :  { %1905 = vperm.xlu2 %3251, %v80_v24   ;;  %v4821_v24 = vmul.f32 %v4733_v48, %v5913_v16 }
 0xd3b   :  { %v4760_v45 = vpop.permute.xlu2 %1885 }
 0xd43   :  { %v1906_v41 = vpop.permute.xlu2 %1905 }
 0xd44   :  { %v1915_v21 = vmul.f32 %v1910_v58, %v1906_v41  ;;  %v1914_v39 = vmul.f32 %v1909_v12, %v1906_v41  ;;  %v1913_v56 = vmul.f32 %v1908_v33, %v1906_v41  ;;  %v1917_v2 = vmul.f32 %v1912_v34, %v1906_v41  ;;  %v5914_v58 = vld [vmem:[#allocation13_spill] sm:$0xff] }
 0xd45   :  { %v1916_v25 = vmul.f32 %v1911_v5, %v1906_v41  ;;  %v4828_v12 = vmul.f32 %v4744_v22, %v5914_v58  ;;  %v2043_v33 = vperm.slane %v4821_v24, 0  ;;  %v84_v41 = vld [vmem:[%s5574_s5 + $0x24] sm:$0xf]  ;;  %v2083_v5 = vperm.slane %v4806_v50, 1 }
 0xd46   :  { %1927 = vrot.lane.b32.xlu2 %v1915_v21, %s3262_s0  ;;  %1925 = vrot.lane.b32.xlu1 %v1914_v39, %s3262_s0 }
 0xd47   :  { %1923 = vrot.lane.b32.xlu0 %v1913_v56, %s3262_s0  ;;  %v2042_v21 = vperm.slane %v4828_v12, 0 }
 0xd4e   :  { %1947 = vperm.xlu2 %3251, %v81_v23   ;;  %1931 = vrot.lane.b32.xlu1 %v1917_v2, %s3262_s0  ;;  %v4839_v23 = vpop.permute.xlu1 %1790  ;;  %v2082_v2 = vperm.slane %v4810_v55, 1 }
 0xd4f   :  { %1929 = vrot.lane.b32.xlu0 %v1916_v25, %s3262_s0  ;;  %v2081_v25 = vperm.slane %v4814_v14, 1 }
 0xda0   :  { %v4774_v10 = vpop.permute.xlu2 %1927 }
 0xda8   :  { %v1948_v26 = vpop.permute.xlu2 %1947 }
 0xda9   :  { %v1957_v4 = vmul.f32 %v1952_v15, %v1948_v26  ;;  %v1956_v18 = vmul.f32 %v1951_v29, %v1948_v26  ;;  %v1955_v27 = vmul.f32 %v1950_v6, %v1948_v26  ;;  %v1959_v8 = vmul.f32 %v1954_v38, %v1948_v26  ;;  %v4852_v38 = vpop.permute.xlu1 %1824 }
 0xdaa   :  { %v1958_v63 = vmul.f32 %v1953_v59, %v1948_v26 }
 0xdab   :  { %1969 = vrot.lane.b32.xlu2 %v1957_v4, %s3262_s0  ;;  %1967 = vrot.lane.b32.xlu1 %v1956_v18, %s3262_s0  ;;  %v2085_v4 = vperm.slane %v4821_v24, 1  ;;  %v85_v18 = vld [vmem:[%s5574_s5 + $0x28] sm:$0xf] }
 0xdac   :  { %1965 = vrot.lane.b32.xlu0 %v1955_v27, %s3262_s0  ;;  %v2084_v27 = vperm.slane %v4828_v12, 1 }
 0xdb3   :  { %1989 = vperm.xlu2 %3251, %v82_v28   ;;  %1973 = vrot.lane.b32.xlu1 %v1959_v8, %s3262_s0  ;;  %v4856_v8 = vpop.permute.xlu1 %1841 }
 0xdb4   :  { %1971 = vrot.lane.b32.xlu0 %v1958_v63, %s3262_s0  ;;  %v4858_v63 = vpop.permute.xlu0 %1807 }
 0xe05   :  { %v4788_v20 = vpop.permute.xlu2 %1969 }
 0xe0d   :  { %v1990_v3 = vpop.permute.xlu2 %1989 }
 0xe0e   :  { %v1999_v53 = vmul.f32 %v1994_v30, %v1990_v3  ;;  %v1998_v36 = vmul.f32 %v1993_v44, %v1990_v3  ;;  %v1997_v32 = vmul.f32 %v1992_v61, %v1990_v3  ;;  %v2001_v9 = vmul.f32 %v1996_v43, %v1990_v3  ;;  %v1884_v30 = vpop.permute.xlu1 %1883  ;;  %v1882_v44 = vpop.permute.xlu0 %1881 }
 0xe0f   :  { %v2000_v52 = vmul.f32 %v1995_v7, %v1990_v3 }
 0xe10   :  { %2011 = vrot.lane.b32.xlu2 %v1999_v53, %s3262_s0  ;;  %2009 = vrot.lane.b32.xlu1 %v1998_v36, %s3262_s0 }
 0xe11   :  { %2007 = vrot.lane.b32.xlu0 %v1997_v32, %s3262_s0 }
 0xe16   :  { %v4860_v61 = vpop.permute.xlu1 %1889  ;;  %v4862_v3 = vpop.permute.xlu0 %1887 }
 0xe17   :  { %5915 = vst [vmem:[#allocation16_spill] sm:$0xff] %v4860_v61 }
 0xe18   :  { %2036 = vperm.xlu2 %3251, %v83_v47   ;;  %2015 = vrot.lane.b32.xlu1 %v2001_v9, %s3262_s0 }
 0xe19   :  { %2013 = vrot.lane.b32.xlu0 %v2000_v52, %s3262_s0 }
 0xe1e   :  { %v1926_v53 = vpop.permute.xlu1 %1925  ;;  %v1924_v36 = vpop.permute.xlu0 %1923 }
 0xe26   :  { %v4864_v32 = vpop.permute.xlu1 %1931  ;;  %v4866_v43 = vpop.permute.xlu0 %1929 }
 0xe27   :  { %5916 = vst [vmem:[#allocation14_spill] sm:$0xff] %v4864_v32 }
 0xe2e   :  { %v4868_v47 = vpop.permute.xlu1 %1967  ;;  %v4870_v7 = vpop.permute.xlu0 %1965 }
 0xe36   :  { %v4872_v9 = vpop.permute.xlu1 %1973  ;;  %v4874_v52 = vpop.permute.xlu0 %1971 }
 0xe37   :  { %5917 = vst [vmem:[#allocation15_spill] sm:$0xff] %v4872_v9 }
 0xe6a   :  { %v4802_v62 = vpop.permute.xlu2 %2011 }
 0xe72   :  { %v2037_v57 = vpop.permute.xlu2 %2036 }
 0xe73   :  { %v2046_v49 = vmul.f32 %v2041_v40, %v2037_v57  ;;  %v2045_v46 = vmul.f32 %v2040_v35, %v2037_v57  ;;  %v2044_v0 = vmul.f32 %v2039_v17, %v2037_v57  ;;  %v2048_v39 = vmul.f32 %v2043_v33, %v2037_v57  ;;  %v5919_v40 = vld [vmem:[#allocation131_spill] sm:$0xff] }
 0xe74   :  { %v2047_v56 = vmul.f32 %v2042_v21, %v2037_v57  ;;  %v5920_v35 = vperm.slane %v5919_v40, 0 }
 0xe75   :  { %2058 = vrot.lane.b32.xlu2 %v2046_v49, %s3263_s14  ;;  %2056 = vrot.lane.b32.xlu1 %v2045_v46, %s3263_s14  ;;  %v5921_v49 = vperm.slane %v5919_v40, 1 }
 0xe76   :  { %2054 = vrot.lane.b32.xlu0 %v2044_v0, %s3263_s14  ;;  %v1784_v17 = vmul.f32 %v4716_v60, %v5920_v35 }
 0xe77   :  { %v1785_v46 = vmul.f32 %v4725_v1, %v5921_v49 }
 0xe78   :  { %v1810_v16 = vperm.slane %v1784_v17, 1  ;;  %v1827_v21 = vperm.slane %v1784_v17, 2 }
 0xe79   :  { %v1794_v58 = vperm.slane %v1785_v46, 0  ;;  %v1811_v33 = vperm.slane %v1785_v46, 1  ;;  %v1845_v35 = vperm.slane %v1785_v46, 3 }
 0xe7a   :  { %v1831_v49 = vmul.f32 %v1827_v21, %v4852_v38  ;;  %v1892_v21 = vsel %vm277_vm8, %v1884_v30, %v4760_v45 }
 0xe7b   :  { %v1849_v9 = vmul.f32 %v1845_v35, %v4856_v8 }
 0xe7d   :  { %2078 = vperm.xlu2 %3251, %v84_v41   ;;  %2062 = vrot.lane.b32.xlu1 %v2048_v39, %s3263_s14  ;;  %v1793_v41 = vperm.slane %v1784_v17, 0  ;;  %v1798_v39 = vmul.f32 %v1794_v58, %v4839_v23 }
 0xe7e   :  { %2060 = vrot.lane.b32.xlu0 %v2047_v56, %s3263_s14  ;;  %v1828_v56 = vperm.slane %v1785_v46, 2 }
 0xe82   :  { %v4876_v11 = vpop.permute.xlu1 %2009 }
 0xe83   :  { %v4878_v42 = vpop.permute.xlu0 %2007 }
 0xe8a   :  { %v4880_v13 = vpop.permute.xlu1 %2015 }
 0xe8b   :  { %5918 = vst [vmem:[#allocation18_spill] sm:$0xff] %v4880_v13  ;;  %v4885_v57 = vpop.permute.xlu0 %2013 }
 0xecf   :  { %v4837_v34 = vpop.permute.xlu2 %2058 }
 0xed7   :  { %v2079_v15 = vpop.permute.xlu2 %2078 }
 0xed8   :  { %v2088_v29 = vmul.f32 %v2083_v5, %v2079_v15  ;;  %v2087_v6 = vmul.f32 %v2082_v2, %v2079_v15  ;;  %v2086_v26 = vmul.f32 %v2081_v25, %v2079_v15  ;;  %v2090_v28 = vmul.f32 %v2085_v4, %v2079_v15 }
 0xed9   :  { %v2089_v59 = vmul.f32 %v2084_v27, %v2079_v15  ;;  %v1844_v5 = vperm.slane %v1784_v17, 3  ;;  %v2123_v25 = vperm.slane %v4814_v14, 2  ;;  %v1797_v15 = vmul.f32 %v1793_v41, %v4839_v23 }
 0xeda   :  { %2100 = vrot.lane.b32.xlu2 %v2088_v29, %s3263_s14  ;;  %2098 = vrot.lane.b32.xlu1 %v2087_v6, %s3263_s14  ;;  %v1814_v29 = vmul.f32 %v1810_v16, %v4858_v63  ;;  %v2124_v4 = vperm.slane %v4810_v55, 2 }
 0xedb   :  { %2096 = vrot.lane.b32.xlu0 %v2086_v26, %s3263_s14  ;;  %v2125_v26 = vperm.slane %v4806_v50, 2  ;;  %v1848_v61 = vmul.f32 %v1844_v5, %v4856_v8  ;;  %v2127_v5 = vperm.slane %v4821_v24, 2 }
 0xedc   :  { %v1818_v32 = vadd.f32 %v1814_v29, %v1797_v15  ;;  %v1891_v15 = vsel %vm277_vm8, %v1882_v44, %v1884_v30  ;;  %v2126_v30 = vperm.slane %v4828_v12, 2 }
 0xede   :  { %v1835_v46 = vadd.f32 %v1831_v49, %v1818_v32  ;;  %v1933_v32 = vsel %vm277_vm8, %v1924_v36, %v1926_v53  ;;  %v1975_v36 = vsel %vm277_vm8, %v4870_v7, %v4868_v47 }
 0xee2   :  { %2120 = vperm.xlu2 %3251, %v85_v18   ;;  %2104 = vrot.lane.b32.xlu1 %v2090_v28, %s3263_s14  ;;  %v5922_v18 = vperm.slane %v5919_v40, 2  ;;  %v1832_v28 = vmul.f32 %v1828_v56, %v4852_v38 }
 0xee3   :  { %2102 = vrot.lane.b32.xlu0 %v2089_v59, %s3263_s14  ;;  %v1815_v59 = vmul.f32 %v1811_v33, %v4858_v63 }
 0xee4   :  { %v1786_v27 = vmul.f32 %v4741_v37, %v5922_v18 }
 0xee5   :  { %v1819_v13 = vadd.f32 %v1815_v59, %v1798_v39 }
 0xee6   :  { %v1795_v56 = vperm.slane %v1786_v27, 0  ;;  %v1812_v33 = vperm.slane %v1786_v27, 1  ;;  %v1829_v29 = vperm.slane %v1786_v27, 2 }
 0xee7   :  { %v4893_v2 = vpop.permute.xlu1 %2056  ;;  %v1836_v18 = vadd.f32 %v1832_v28, %v1819_v13  ;;  %v1934_v13 = vsel %vm277_vm8, %v1926_v53, %v4774_v10 }
 0xee8   :  { %v2055_v6 = vpop.permute.xlu0 %2054  ;;  %v1799_v39 = vmul.f32 %v1795_v56, %v4839_v23  ;;  %v1816_v59 = vmul.f32 %v1812_v33, %v4858_v63  ;;  %v1833_v44 = vmul.f32 %v1829_v29, %v4852_v38  ;;  %v2018_v33 = vsel %vm277_vm8, %v4876_v11, %v4802_v62 }
 0xee9   :  { %v2065_v7 = vsel %vm473_vm9, %v4893_v2, %v4837_v34 }
 0xeef   :  { %v4920_v35 = vpop.permute.xlu1 %2062 }
 0xef0   :  { %v4930_v49 = vpop.permute.xlu0 %2060 }
 0xf34   :  { %v4890_v0 = vpop.permute.xlu2 %2100 }
 0xf3c   :  { %v2121_v17 = vpop.permute.xlu2 %2120 }
 0xf3d   :  { %v2130_v58 = vmul.f32 %v2125_v26, %v2121_v17  ;;  %v2129_v41 = vmul.f32 %v2124_v4, %v2121_v17  ;;  %v2128_v16 = vmul.f32 %v2123_v25, %v2121_v17  ;;  %v1853_v25 = vadd.f32 %v1849_v9, %v1836_v18  ;;  %v86_v9 = vld [vmem:[%s5574_s5 + $0x2c] sm:$0xf] }
 0xf3e   :  { %v1852_v26 = vadd.f32 %v1848_v61, %v1835_v46  ;;  %v1846_v4 = vperm.slane %v1786_v27, 3  ;;  %v1976_v27 = vsel %vm277_vm8, %v4868_v47, %v4788_v20 }
 0xf3f   :  { %2142 = vrot.lane.b32.xlu2 %v2130_v58, %s3263_s14  ;;  %2140 = vrot.lane.b32.xlu1 %v2129_v41, %s3263_s14  ;;  %v1900_v28 = vadd.f32 %v1892_v21, %v1853_v25  ;;  %v2132_v58 = vmul.f32 %v2127_v5, %v2121_v17  ;;  %v1820_v41 = vadd.f32 %v1816_v59, %v1799_v39 }
 0xf40   :  { %2138 = vrot.lane.b32.xlu0 %v2128_v16, %s3263_s14  ;;  %v1899_v61 = vadd.f32 %v1891_v15, %v1852_v26  ;;  %v2131_v16 = vmul.f32 %v2126_v30, %v2121_v17  ;;  %v1850_v56 = vmul.f32 %v1846_v4, %v4856_v8  ;;  %v2017_v21 = vsel %vm277_vm8, %v4878_v42, %v4876_v11 }
 0xf41   :  { %v1942_v53 = vadd.f32 %v1934_v13, %v1900_v28  ;;  %v1837_v39 = vadd.f32 %v1833_v44, %v1820_v41  ;;  %v1893_v17 = vsel %vm277_vm8, %v4760_v45, %v4862_v3  ;;  %v2064_v15 = vsel %vm473_vm9, %v2055_v6, %v4893_v2 }
 0xf42   :  { %v1941_v18 = vadd.f32 %v1933_v32, %v1899_v61  ;;  %v1935_v11 = vsel %vm277_vm8, %v4774_v10, %v4866_v43  ;;  %v1977_v45 = vsel %vm277_vm8, %v4788_v20, %v4874_v52  ;;  %v2019_v10 = vsel %vm277_vm8, %v4802_v62, %v4885_v57 }
 0xf43   :  { %v1984_v46 = vadd.f32 %v1976_v27, %v1942_v53  ;;  %v1854_v5 = vadd.f32 %v1850_v56, %v1837_v39  ;;  %v2066_v44 = vsel %vm473_vm9, %v4837_v34, %v4930_v49  ;;  %v2165_v62 = vperm.slane %v4814_v14, 3 }
 0xf44   :  { %v1983_v47 = vadd.f32 %v1975_v36, %v1941_v18  ;;  %v2167_v36 = vperm.slane %v4806_v50, 3  ;;  %v87_v50 = vld [vmem:[%s5574_s5 + $0x30] sm:$0xf] }
 0xf45   :  { %v2026_v25 = vadd.f32 %v2018_v33, %v1984_v46  ;;  %v1901_v4 = vadd.f32 %v1893_v17, %v1854_v5 }
 0xf46   :  { %v2025_v29 = vadd.f32 %v2017_v21, %v1983_v47 }
 0xf47   :  { %2162 = vperm.xlu2 %3251, %v86_v9   ;;  %2146 = vrot.lane.b32.xlu1 %v2132_v58, %s3263_s14  ;;  %v2073_v42 = vadd.f32 %v2065_v7, %v2026_v25  ;;  %v1943_v32 = vadd.f32 %v1935_v11, %v1901_v4  ;;  %v5923_v11 = vld [vmem:[#allocation21_spill] sm:$0xff] }
 0xf48   :  { %2144 = vrot.lane.b32.xlu0 %v2131_v16, %s3263_s14  ;;  %v2072_v13 = vadd.f32 %v2064_v15, %v2025_v29  ;;  %v2166_v16 = vperm.slane %v4810_v55, 3  ;;  %v2168_v55 = vperm.slane %v4828_v12, 3 }
 0xf49   :  { %v1985_v30 = vadd.f32 %v1977_v45, %v1943_v32 }
 0xf4b   :  { %v2027_v61 = vadd.f32 %v2019_v10, %v1985_v30  ;;  %v5926_v30 = vld [vmem:[#allocation22_spill] sm:$0xff] }
 0xf4c   :  { %v2099_v26 = vpop.permute.xlu1 %2098 }
 0xf4d   :  { %v2097_v28 = vpop.permute.xlu0 %2096  ;;  %v2107_v59 = vsel %vm473_vm9, %v2099_v26, %v4890_v0  ;;  %v2074_v27 = vadd.f32 %v2066_v44, %v2027_v61  ;;  %v5010_v44 = vmul.f32 %v4733_v48, %v5926_v30  ;;  %v5927_v61 = vld [vmem:[#allocation23_spill] sm:$0xff] }
 0xf4e   :  { %v2106_v2 = vsel %vm473_vm9, %v2097_v28, %v2099_v26  ;;  %v2115_v6 = vadd.f32 %v2107_v59, %v2073_v42  ;;  %v4995_v42 = vmul.f32 %v4741_v37, %v5923_v11  ;;  %v5924_v26 = vld [vmem:[#allocation20_spill] sm:$0xff] }
 0xf4f   :  { %v2114_v9 = vadd.f32 %v2106_v2, %v2072_v13  ;;  %v4999_v4 = vmul.f32 %v4725_v1, %v5924_v26  ;;  %v5925_v13 = vld [vmem:[#allocation19_spill] sm:$0xff] }
 0xf50   :  { %v5003_v28 = vmul.f32 %v4716_v60, %v5925_v13  ;;  %v2214_v59 = vperm.slane %v4995_v42, 0 }
 0xf51   :  { %v2213_v45 = vperm.slane %v4999_v4, 0 }
 0xf52   :  { %v2212_v2 = vperm.slane %v5003_v28, 0 }
 0xf54   :  { %v4979_v46 = vpop.permute.xlu1 %2104 }
 0xf55   :  { %v4967_v58 = vpop.permute.xlu0 %2102 }
 0xf56   :  { %v2108_v20 = vsel %vm473_vm9, %v4890_v0, %v4967_v58  ;;  %v2169_v0 = vperm.slane %v4821_v24, 3 }
 0xf57   :  { %v2116_v41 = vadd.f32 %v2108_v20, %v2074_v27  ;;  %v5017_v27 = vmul.f32 %v4744_v22, %v5927_v61  ;;  %v2216_v20 = vperm.slane %v5010_v44, 0 }
 0xf99   :  { %v2143_v53 = vpop.permute.xlu2 %2142 }
 0xfa1   :  { %v2163_v56 = vpop.permute.xlu2 %2162 }
 0xfa2   :  { %v2172_v18 = vmul.f32 %v2167_v36, %v2163_v56  ;;  %v2171_v33 = vmul.f32 %v2166_v16, %v2163_v56  ;;  %v2170_v34 = vmul.f32 %v2165_v62, %v2163_v56  ;;  %v2174_v14 = vmul.f32 %v2169_v0, %v2163_v56 }
 0xfa3   :  { %v2173_v21 = vmul.f32 %v2168_v55, %v2163_v56  ;;  %v2215_v36 = vperm.slane %v5017_v27, 0 }
 0xfa4   :  { %2184 = vrot.lane.b32.xlu2 %v2172_v18, %s3263_s14  ;;  %2182 = vrot.lane.b32.xlu1 %v2171_v33, %s3263_s14 }
 0xfa5   :  { %2180 = vrot.lane.b32.xlu0 %v2170_v34, %s3263_s14 }
 0xfac   :  { %2209 = vperm.xlu2 %3251, %v87_v50   ;;  %2188 = vrot.lane.b32.xlu1 %v2174_v14, %s3263_s14 }
 0xfad   :  { %2186 = vrot.lane.b32.xlu0 %v2173_v21, %s3263_s14 }
 0xfb1   :  { %v2141_v39 = vpop.permute.xlu1 %2140 }
 0xfb2   :  { %v2139_v47 = vpop.permute.xlu0 %2138  ;;  %v2149_v7 = vsel %vm473_vm9, %v2141_v39, %v2143_v53 }
 0xfb3   :  { %v2148_v24 = vsel %vm473_vm9, %v2139_v47, %v2141_v39  ;;  %v2157_v17 = vadd.f32 %v2149_v7, %v2115_v6  ;;  %v2256_v47 = vperm.slane %v4995_v42, 1  ;;  %v2255_v7 = vperm.slane %v4999_v4, 1 }
 0xfb4   :  { %v2156_v25 = vadd.f32 %v2148_v24, %v2114_v9  ;;  %v2254_v24 = vperm.slane %v5003_v28, 1 }
 0xfba   :  { %v4989_v15 = vpop.permute.xlu0 %2144 }
 0xfbb   :  { %v2150_v12 = vsel %vm473_vm9, %v2143_v53, %v4989_v15  ;;  %v88_v53 = vld [vmem:[%s5574_s5 + $0x34] sm:$0xf] }
 0xfbc   :  { %v2158_v5 = vadd.f32 %v2150_v12, %v2116_v41  ;;  %v5020_v41 = vpop.permute.xlu1 %2146 }
 0xffe   :  { %v2185_v29 = vpop.permute.xlu2 %2184 }
0x1006   :  { %v2210_v6 = vpop.permute.xlu2 %2209 }
0x1007   :  { %v2219_v32 = vmul.f32 %v2214_v59, %v2210_v6  ;;  %v2218_v9 = vmul.f32 %v2213_v45, %v2210_v6  ;;  %v2217_v10 = vmul.f32 %v2212_v2, %v2210_v6  ;;  %v2221_v16 = vmul.f32 %v2216_v20, %v2210_v6 }
0x1008   :  { %v2220_v62 = vmul.f32 %v2215_v36, %v2210_v6 }
0x1009   :  { %2231 = vrot.lane.b32.xlu2 %v2219_v32, %s3265_s24  ;;  %2229 = vrot.lane.b32.xlu1 %v2218_v9, %s3265_s24 }
0x100a   :  { %2227 = vrot.lane.b32.xlu0 %v2217_v10, %s3265_s24 }
0x1011   :  { %2251 = vperm.xlu2 %3251, %v88_v53   ;;  %2235 = vrot.lane.b32.xlu1 %v2221_v16, %s3265_s24  ;;  %v2298_v16 = vperm.slane %v4995_v42, 2 }
0x1012   :  { %2233 = vrot.lane.b32.xlu0 %v2220_v62, %s3265_s24  ;;  %v2297_v62 = vperm.slane %v4999_v4, 2 }
0x1016   :  { %v2183_v56 = vpop.permute.xlu1 %2182 }
0x1017   :  { %v2181_v18 = vpop.permute.xlu0 %2180  ;;  %v2191_v33 = vsel %vm473_vm9, %v2183_v56, %v2185_v29 }
0x1018   :  { %v2190_v34 = vsel %vm473_vm9, %v2181_v18, %v2183_v56  ;;  %v2199_v0 = vadd.f32 %v2191_v33, %v2157_v17  ;;  %v2258_v17 = vperm.slane %v5010_v44, 1  ;;  %v2296_v56 = vperm.slane %v5003_v28, 2 }
0x1019   :  { %v2198_v50 = vadd.f32 %v2190_v34, %v2156_v25 }
0x101e   :  { %v5041_v25 = vpop.permute.xlu1 %2188 }
0x101f   :  { %v5030_v55 = vpop.permute.xlu0 %2186 }
0x1020   :  { %v2192_v14 = vsel %vm473_vm9, %v2185_v29, %v5030_v55  ;;  %v2257_v29 = vperm.slane %v5017_v27, 1 }
0x1021   :  { %v2200_v21 = vadd.f32 %v2192_v14, %v2158_v5  ;;  %v89_v5 = vld [vmem:[%s5574_s5 + $0x38] sm:$0xf] }
0x1063   :  { %v2232_v39 = vpop.permute.xlu2 %2231 }
0x106b   :  { %v2252_v12 = vpop.permute.xlu2 %2251 }
0x106c   :  { %v2261_v11 = vmul.f32 %v2256_v47, %v2252_v12  ;;  %v2260_v26 = vmul.f32 %v2255_v7, %v2252_v12  ;;  %v2259_v13 = vmul.f32 %v2254_v24, %v2252_v12  ;;  %v2263_v59 = vmul.f32 %v2258_v17, %v2252_v12 }
0x106d   :  { %v2262_v45 = vmul.f32 %v2257_v29, %v2252_v12 }
0x106e   :  { %2273 = vrot.lane.b32.xlu2 %v2261_v11, %s3265_s24  ;;  %2271 = vrot.lane.b32.xlu1 %v2260_v26, %s3265_s24 }
0x106f   :  { %2269 = vrot.lane.b32.xlu0 %v2259_v13, %s3265_s24 }
0x1076   :  { %2293 = vperm.xlu2 %3251, %v89_v5   ;;  %2277 = vrot.lane.b32.xlu1 %v2263_v59, %s3265_s24 }
0x1077   :  { %2275 = vrot.lane.b32.xlu0 %v2262_v45, %s3265_s24 }
0x107b   :  { %v2230_v2 = vpop.permute.xlu1 %2229 }
0x107c   :  { %v2228_v6 = vpop.permute.xlu0 %2227  ;;  %v2238_v32 = vsel %vm669_vm10, %v2230_v2, %v2232_v39 }
0x107d   :  { %v2237_v9 = vsel %vm669_vm10, %v2228_v6, %v2230_v2  ;;  %v2246_v10 = vadd.f32 %v2238_v32, %v2199_v0  ;;  %v2300_v0 = vperm.slane %v5010_v44, 2  ;;  %v2340_v2 = vperm.slane %v4995_v42, 3  ;;  %v91_v42 = vld [vmem:[%s5574_s5 + $0x40] sm:$0xf] }
0x107e   :  { %v2245_v30 = vadd.f32 %v2237_v9, %v2198_v50  ;;  %v2339_v6 = vperm.slane %v4999_v4, 3  ;;  %v2338_v32 = vperm.slane %v5003_v28, 3  ;;  %v2341_v4 = vperm.slane %v5017_v27, 3 }
0x1083   :  { %v5062_v50 = vpop.permute.xlu1 %2235 }
0x1084   :  { %v5051_v61 = vpop.permute.xlu0 %2233 }
0x1085   :  { %v2239_v20 = vsel %vm669_vm10, %v2232_v39, %v5051_v61  ;;  %v2299_v39 = vperm.slane %v5017_v27, 2  ;;  %v92_v27 = vld [vmem:[%s5574_s5 + $0x44] sm:$0xf] }
0x1086   :  { %v2247_v53 = vadd.f32 %v2239_v20, %v2200_v21  ;;  %v90_v21 = vld [vmem:[%s5574_s5 + $0x3c] sm:$0xf] }
0x10c8   :  { %v2274_v36 = vpop.permute.xlu2 %2273 }
0x10d0   :  { %v2294_v18 = vpop.permute.xlu2 %2293 }
0x10d1   :  { %v2303_v33 = vmul.f32 %v2298_v16, %v2294_v18  ;;  %v2302_v34 = vmul.f32 %v2297_v62, %v2294_v18  ;;  %v2301_v14 = vmul.f32 %v2296_v56, %v2294_v18  ;;  %v2305_v47 = vmul.f32 %v2300_v0, %v2294_v18  ;;  %v93_v56 = vld [vmem:[%s5574_s5 + $0x48] sm:$0xf] }
0x10d2   :  { %v2304_v7 = vmul.f32 %v2299_v39, %v2294_v18  ;;  %v95_v39 = vld [vmem:[%s5574_s5 + $0x50] sm:$0xf] }
0x10d3   :  { %2315 = vrot.lane.b32.xlu2 %v2303_v33, %s3265_s24  ;;  %2313 = vrot.lane.b32.xlu1 %v2302_v34, %s3265_s24 }
0x10d4   :  { %2311 = vrot.lane.b32.xlu0 %v2301_v14, %s3265_s24 }
0x10db   :  { %2335 = vperm.xlu2 %3251, %v90_v21   ;;  %2319 = vrot.lane.b32.xlu1 %v2305_v47, %s3265_s24 }
0x10dc   :  { %2317 = vrot.lane.b32.xlu0 %v2304_v7, %s3265_s24 }
0x10e0   :  { %v2272_v24 = vpop.permute.xlu1 %2271 }
0x10e1   :  { %v2270_v12 = vpop.permute.xlu0 %2269  ;;  %v2280_v11 = vsel %vm669_vm10, %v2272_v24, %v2274_v36 }
0x10e2   :  { %v2279_v26 = vsel %vm669_vm10, %v2270_v12, %v2272_v24  ;;  %v2288_v13 = vadd.f32 %v2280_v11, %v2246_v10  ;;  %v2342_v10 = vperm.slane %v5010_v44, 3  ;;  %v94_v44 = vld [vmem:[%s5574_s5 + $0x4c] sm:$0xf]  ;;  %v5928_v24 = vperm.slane %v5919_v40, 3 }
0x10e3   :  { %v2287_v17 = vadd.f32 %v2279_v26, %v2245_v30  ;;  %v2382_v40 = vperm.slane %v4702_v31, 0 }
0x10e4   :  { %v1787_v12 = vmul.f32 %v4744_v22, %v5928_v24 }
0x10e6   :  { %v1796_v11 = vperm.slane %v1787_v12, 0  ;;  %v1813_v26 = vperm.slane %v1787_v12, 1 }
0x10e8   :  { %v5083_v30 = vpop.permute.xlu1 %2277 }
0x10e9   :  { %v5072_v5 = vpop.permute.xlu0 %2275 }
0x10ea   :  { %v2281_v29 = vsel %vm669_vm10, %v2274_v36, %v5072_v5 }
0x10eb   :  { %v2289_v59 = vadd.f32 %v2281_v29, %v2247_v53  ;;  %v1830_v29 = vperm.slane %v1787_v12, 2 }
0x112d   :  { %v2316_v45 = vpop.permute.xlu2 %2315 }
0x1135   :  { %v2336_v9 = vpop.permute.xlu2 %2335 }
0x1136   :  { %v2345_v20 = vmul.f32 %v2340_v2, %v2336_v9  ;;  %v2344_v16 = vmul.f32 %v2339_v6, %v2336_v9  ;;  %v2343_v62 = vmul.f32 %v2338_v32, %v2336_v9  ;;  %v2347_v28 = vmul.f32 %v2342_v10, %v2336_v9 }
0x1137   :  { %v2346_v53 = vmul.f32 %v2341_v4, %v2336_v9  ;;  %v1834_v2 = vmul.f32 %v1830_v29, %v4852_v38  ;;  %v1817_v6 = vmul.f32 %v1813_v26, %v4858_v63  ;;  %v1847_v32 = vperm.slane %v1787_v12, 3 }
0x1138   :  { %2357 = vrot.lane.b32.xlu2 %v2345_v20, %s3265_s24  ;;  %2355 = vrot.lane.b32.xlu1 %v2344_v16, %s3265_s24  ;;  %v2383_v20 = vperm.slane %v4687_v54, 0  ;;  %v2380_v16 = vperm.slane %v4689_v19, 0 }
0x1139   :  { %2353 = vrot.lane.b32.xlu0 %v2343_v62, %s3265_s24 }
0x1140   :  { %2377 = vperm.xlu2 %3251, %v91_v42   ;;  %2361 = vrot.lane.b32.xlu1 %v2347_v28, %s3265_s24  ;;  %v5929_v28 = vld [vmem:[#allocation16_spill] sm:$0xff] }
0x1141   :  { %2359 = vrot.lane.b32.xlu0 %v2346_v53, %s3265_s24  ;;  %v1894_v63 = vsel %vm277_vm8, %v4862_v3, %v5929_v28  ;;  %v2067_v3 = vsel %vm473_vm9, %v4930_v49, %v4920_v35  ;;  %v2240_v49 = vsel %vm669_vm10, %v5051_v61, %v5062_v50 }
0x1145   :  { %v2314_v36 = vpop.permute.xlu1 %2313 }
0x1146   :  { %v2312_v18 = vpop.permute.xlu0 %2311  ;;  %v2322_v33 = vsel %vm669_vm10, %v2314_v36, %v2316_v45 }
0x1147   :  { %v2321_v34 = vsel %vm669_vm10, %v2312_v18, %v2314_v36  ;;  %v2330_v14 = vadd.f32 %v2322_v33, %v2288_v13  ;;  %v5930_v36 = vld [vmem:[#allocation14_spill] sm:$0xff] }
0x1148   :  { %v2329_v0 = vadd.f32 %v2321_v34, %v2287_v17  ;;  %2428 = vperm.xlu2 %3251, %v94_v44   ;;  %2411 = vperm.xlu1 %3253, %v93_v56   ;;  %v1800_v17 = vmul.f32 %v1796_v11, %v4839_v23  ;;  %v5931_v56 = vld [vmem:[#allocation15_spill] sm:$0xff] }
0x1149   :  { %2394 = vperm.xlu0 %3252, %v92_v27   ;;  %v1978_v18 = vsel %vm277_vm8, %v4874_v52, %v5931_v56  ;;  %v5932_v27 = vld [vmem:[#allocation18_spill] sm:$0xff]  ;;  %v2151_v52 = vsel %vm473_vm9, %v4989_v15, %v5020_v41  ;;  %v2282_v15 = vsel %vm669_vm10, %v5072_v5, %v5083_v30  ;;  %v2433_v5 = vperm.slane %v4702_v31, 3 }
0x114a   :  { %v1821_v9 = vadd.f32 %v1817_v6, %v1800_v17  ;;  %v2020_v34 = vsel %vm277_vm8, %v4885_v57, %v5932_v27  ;;  %v2193_v57 = vsel %vm473_vm9, %v5030_v55, %v5041_v25  ;;  %v2434_v30 = vperm.slane %v4687_v54, 3 }
0x114c   :  { %v1838_v62 = vadd.f32 %v1834_v2, %v1821_v9 }
0x114e   :  { %v2318_v21 = vpop.permute.xlu0 %2317 }
0x114f   :  { %v2323_v47 = vsel %vm669_vm10, %v2316_v45, %v2318_v21  ;;  %v2381_v45 = vperm.slane %v4698_v51, 0 }
0x1150   :  { %v2331_v7 = vadd.f32 %v2323_v47, %v2289_v59  ;;  %v1851_v59 = vmul.f32 %v1847_v32, %v4856_v8  ;;  %v1936_v8 = vsel %vm277_vm8, %v4866_v43, %v5930_v36  ;;  %v2109_v43 = vsel %vm473_vm9, %v4967_v58, %v4979_v46  ;;  %v5933_v36 = vld [vmem:[#allocation48_spill] sm:$0xff] }
0x1151   :  { %2450 = vperm.xlu0 %3252, %v95_v39   ;;  %v2320_v39 = vpop.permute.xlu1 %2319 }
0x1152   :  { %v1855_v53 = vadd.f32 %v1851_v59, %v1838_v62  ;;  %v2324_v32 = vsel %vm669_vm10, %v2318_v21, %v2320_v39  ;;  %v2432_v62 = vperm.slane %v4698_v51, 3  ;;  %v2431_v21 = vperm.slane %v4689_v19, 3 }
0x1154   :  { %v1902_v44 = vadd.f32 %v1894_v63, %v1855_v53  ;;  %v2414_v53 = vperm.slane %v4689_v19, 2 }
0x1156   :  { %v1944_v33 = vadd.f32 %v1936_v8, %v1902_v44  ;;  %v5166_v8 = vmul.f32 %v4741_v37, %v5933_v36  ;;  %v5934_v44 = vld [vmem:[#allocation50_spill] sm:$0xff] }
0x1157   :  { %v5170_v56 = vmul.f32 %v4725_v1, %v5934_v44 }
0x1158   :  { %v1986_v47 = vadd.f32 %v1978_v18, %v1944_v33  ;;  %v5935_v18 = vld [vmem:[#allocation49_spill] sm:$0xff] }
0x1159   :  { %v5174_v33 = vmul.f32 %v4716_v60, %v5935_v18 }
0x115a   :  { %v2028_v24 = vadd.f32 %v2020_v34, %v1986_v47 }
0x115c   :  { %v2075_v12 = vadd.f32 %v2067_v3, %v2028_v24 }
0x115e   :  { %v2117_v11 = vadd.f32 %v2109_v43, %v2075_v12 }
0x1160   :  { %v2159_v17 = vadd.f32 %v2151_v52, %v2117_v11 }
0x1162   :  { %v2201_v2 = vadd.f32 %v2193_v57, %v2159_v17 }
0x1164   :  { %v2248_v55 = vadd.f32 %v2240_v49, %v2201_v2  ;;  %v2454_v2 = vperm.slane %v5170_v56, 0 }
0x1166   :  { %v2290_v9 = vadd.f32 %v2282_v15, %v2248_v55 }
0x1168   :  { %v2332_v59 = vadd.f32 %v2324_v32, %v2290_v9 }
0x1192   :  { %v2358_v13 = vpop.permute.xlu2 %2357 }
0x119a   :  { %v2378_v10 = vpop.permute.xlu2 %2377 }
0x119b   :  { %v2384_v23 = vmul.f32 %v2380_v16, %v2378_v10  ;;  %v2385_v42 = vmul.f32 %v2381_v45, %v2378_v10  ;;  %v2386_v4 = vmul.f32 %v2382_v40, %v2378_v10  ;;  %v2387_v38 = vmul.f32 %v2383_v20, %v2378_v10 }
0x119c   :  { %v2398_v10 = vperm.slane %v4698_v51, 1 }
0x11aa   :  { %v2356_v26 = vpop.permute.xlu1 %2355 }
0x11ab   :  { %v2354_v29 = vpop.permute.xlu0 %2353  ;;  %v2364_v35 = vsel %vm669_vm10, %v2356_v26, %v2358_v13 }
0x11ac   :  { %v2363_v58 = vsel %vm669_vm10, %v2354_v29, %v2356_v26  ;;  %v2372_v46 = vadd.f32 %v2364_v35, %v2330_v14 }
0x11ad   :  { %v2371_v6 = vadd.f32 %v2363_v58, %v2329_v0 }
0x11ae   :  { %v2389_v41 = vadd.f32 %v2385_v42, %v2372_v46  ;;  %v2397_v42 = vperm.slane %v4689_v19, 1  ;;  %v2455_v46 = vperm.slane %v5166_v8, 0 }
0x11af   :  { %v2388_v25 = vadd.f32 %v2384_v23, %v2371_v6  ;;  %v2399_v23 = vperm.slane %v4702_v31, 1  ;;  %v2453_v6 = vperm.slane %v5174_v33, 0 }
0x11b2   :  { %v2362_v45 = vpop.permute.xlu1 %2361 }
0x11b3   :  { %v2360_v40 = vpop.permute.xlu0 %2359 }
0x11b4   :  { %v2365_v61 = vsel %vm669_vm10, %v2358_v13, %v2360_v40  ;;  %v2366_v50 = vsel %vm669_vm10, %v2360_v40, %v2362_v45  ;;  %v2400_v13 = vperm.slane %v4687_v54, 1  ;;  %v5936_v40 = vld [vmem:[#allocation51_spill] sm:$0xff] }
0x11b5   :  { %v2373_v14 = vadd.f32 %v2365_v61, %v2331_v7  ;;  %v2374_v20 = vadd.f32 %v2366_v50, %v2332_v59  ;;  %v2415_v7 = vperm.slane %v4698_v51, 2  ;;  %v2429_v51 = vpop.permute.xlu2 %2428  ;;  %v5183_v61 = vmul.f32 %v4733_v48, %v5936_v40  ;;  %v5937_v50 = vld [vmem:[#allocation52_spill] sm:$0xff] }
0x11b6   :  { %v2435_v11 = vmul.f32 %v2431_v21, %v2429_v51  ;;  %v2436_v57 = vmul.f32 %v2432_v62, %v2429_v51  ;;  %v2437_v26 = vmul.f32 %v2433_v5, %v2429_v51  ;;  %v2438_v17 = vmul.f32 %v2434_v30, %v2429_v51 }
0x11b7   :  { %v2390_v0 = vadd.f32 %v2386_v4, %v2373_v14  ;;  %v2391_v16 = vadd.f32 %v2387_v38, %v2374_v20  ;;  %v2416_v4 = vperm.slane %v4702_v31, 2  ;;  %v2417_v38 = vperm.slane %v4687_v54, 2 }
0x11b8   :  { %v5190_v14 = vmul.f32 %v4744_v22, %v5937_v50  ;;  %v2457_v20 = vperm.slane %v5183_v61, 0 }
0x11ba   :  { %v2412_v28 = vpop.permute.xlu1 %2411 }
0x11bb   :  { %v2395_v63 = vpop.permute.xlu0 %2394  ;;  %v2418_v39 = vmul.f32 %v2414_v53, %v2412_v28  ;;  %v2419_v47 = vmul.f32 %v2415_v7, %v2412_v28  ;;  %v2420_v19 = vmul.f32 %v2416_v4, %v2412_v28  ;;  %v2421_v3 = vmul.f32 %v2417_v38, %v2412_v28 }
0x11bc   :  { %v2401_v31 = vmul.f32 %v2397_v42, %v2395_v63  ;;  %v2402_v27 = vmul.f32 %v2398_v10, %v2395_v63  ;;  %v2403_v54 = vmul.f32 %v2399_v23, %v2395_v63  ;;  %v2404_v34 = vmul.f32 %v2400_v13, %v2395_v63 }
0x11bd   :  { %v2497_v4 = vperm.slane %v5166_v8, 1  ;;  %v2496_v38 = vperm.slane %v5170_v56, 1  ;;  %v2495_v28 = vperm.slane %v5174_v33, 1 }
0x11be   :  { %v2405_v24 = vadd.f32 %v2401_v31, %v2388_v25  ;;  %v2406_v43 = vadd.f32 %v2402_v27, %v2389_v41  ;;  %v2407_v12 = vadd.f32 %v2403_v54, %v2390_v0  ;;  %v2408_v52 = vadd.f32 %v2404_v34, %v2391_v16  ;;  %v96_v0 = vld [vmem:[%s5574_s5 + $0x54] sm:$0xf]  ;;  %v97_v54 = vld [vmem:[%s5574_s5 + $0x58] sm:$0xf] }
0x11bf   :  { %v2456_v16 = vperm.slane %v5190_v14, 0  ;;  %v2499_v27 = vperm.slane %v5183_v61, 1  ;;  %v2498_v34 = vperm.slane %v5190_v14, 1 }
0x11c0   :  { %v2423_v29 = vadd.f32 %v2419_v47, %v2406_v43  ;;  %v2422_v35 = vadd.f32 %v2418_v39, %v2405_v24  ;;  %v2424_v49 = vadd.f32 %v2420_v19, %v2407_v12  ;;  %v2425_v58 = vadd.f32 %v2421_v3, %v2408_v52 }
0x11c2   :  { %v2440_v15 = vadd.f32 %v2436_v57, %v2423_v29  ;;  %v2439_v55 = vadd.f32 %v2435_v11, %v2422_v35  ;;  %v2441_v25 = vadd.f32 %v2437_v26, %v2424_v49  ;;  %v5179_v41 = vadd.f32 %v2438_v17, %v2425_v58 }
0x11c3   :  { %v2451_v32 = vpop.permute.xlu0 %2450  ;;  %v2539_v26 = vperm.slane %v5166_v8, 2  ;;  %v2538_v17 = vperm.slane %v5170_v56, 2  ;;  %v2537_v29 = vperm.slane %v5174_v33, 2 }
0x11c4   :  { %v2460_v9 = vmul.f32 %v2455_v46, %v2451_v32  ;;  %v2459_v45 = vmul.f32 %v2454_v2, %v2451_v32  ;;  %v2458_v59 = vmul.f32 %v2453_v6, %v2451_v32  ;;  %v2462_v62 = vmul.f32 %v2457_v20, %v2451_v32 }
0x11c5   :  { %v2461_v5 = vmul.f32 %v2456_v16, %v2451_v32  ;;  %v2540_v32 = vperm.slane %v5190_v14, 2 }
0x11c6   :  { %2472 = vrot.lane.b32.xlu0 %v2460_v9, %s3267_s25  ;;  %2470 = vrot.lane.b32.xlu2 %v2459_v45, %s3267_s25 }
0x11c7   :  { %2468 = vrot.lane.b32.xlu1 %v2458_v59, %s3267_s25 }
0x11ce   :  { %2492 = vperm.xlu0 %3252, %v96_v0   ;;  %2476 = vrot.lane.b32.xlu2 %v2462_v62, %s3267_s25 }
0x11cf   :  { %2474 = vrot.lane.b32.xlu1 %v2461_v5, %s3267_s25 }
0x1220   :  { %v2471_v30 = vpop.permute.xlu2 %2470 }
0x1228   :  { %v5218_v19 = vpop.permute.xlu2 %2476 }
0x1238   :  { %v2473_v21 = vpop.permute.xlu0 %2472 }
0x1239   :  { %v2479_v10 = vsel %vm965_vm11, %v2471_v30, %v2473_v21  ;;  %v2469_v23 = vpop.permute.xlu1 %2468 }
0x123a   :  { %v2487_v13 = vadd.f32 %v2479_v10, %v2440_v15  ;;  %v2478_v42 = vsel %vm965_vm11, %v2469_v23, %v2471_v30  ;;  %v2581_v30 = vperm.slane %v5166_v8, 3  ;;  %v2579_v10 = vperm.slane %v5174_v33, 3 }
0x123b   :  { %v2486_v7 = vadd.f32 %v2478_v42, %v2439_v55  ;;  %v2541_v55 = vperm.slane %v5183_v61, 2  ;;  %v2583_v8 = vperm.slane %v5183_v61, 3  ;;  %v2582_v33 = vperm.slane %v5190_v14, 3 }
0x1240   :  { %v2493_v63 = vpop.permute.xlu0 %2492 }
0x1241   :  { %v5204_v53 = vpop.permute.xlu1 %2474  ;;  %v2502_v36 = vmul.f32 %v2497_v4, %v2493_v63  ;;  %v2501_v44 = vmul.f32 %v2496_v38, %v2493_v63  ;;  %v2500_v18 = vmul.f32 %v2495_v28, %v2493_v63  ;;  %v2504_v39 = vmul.f32 %v2499_v27, %v2493_v63 }
0x1242   :  { %v2480_v51 = vsel %vm965_vm11, %v2473_v21, %v5204_v53  ;;  %v2503_v47 = vmul.f32 %v2498_v34, %v2493_v63  ;;  %v2580_v21 = vperm.slane %v5170_v56, 3  ;;  %v99_v56 = vld [vmem:[%s5574_s5 + $0x60] sm:$0xf] }
0x1243   :  { %v2488_v31 = vadd.f32 %v2480_v51, %v2441_v25  ;;  %2514 = vrot.lane.b32.xlu0 %v2502_v36, %s3267_s25  ;;  %2512 = vrot.lane.b32.xlu2 %v2501_v44, %s3267_s25  ;;  %v98_v25 = vld [vmem:[%s5574_s5 + $0x5c] sm:$0xf] }
0x1244   :  { %2510 = vrot.lane.b32.xlu1 %v2500_v18, %s3267_s25 }
0x124b   :  { %2534 = vperm.xlu0 %3252, %v97_v54   ;;  %2518 = vrot.lane.b32.xlu2 %v2504_v39, %s3267_s25  ;;  %v5938_v39 = vld [vmem:[#allocation75_spill] sm:$0xff] }
0x124c   :  { %2516 = vrot.lane.b32.xlu1 %v2503_v47, %s3267_s25  ;;  %v5266_v14 = vmul.f32 %v4741_v37, %v5938_v39  ;;  %v5939_v47 = vld [vmem:[#allocation74_spill] sm:$0xff] }
0x129d   :  { %v2513_v3 = vpop.permute.xlu2 %2512 }
0x12a5   :  { %v5239_v59 = vpop.permute.xlu2 %2518 }
0x12b5   :  { %v2515_v24 = vpop.permute.xlu0 %2514 }
0x12b6   :  { %v2521_v43 = vsel %vm965_vm11, %v2513_v3, %v2515_v24  ;;  %v2511_v12 = vpop.permute.xlu1 %2510 }
0x12b7   :  { %v2529_v52 = vadd.f32 %v2521_v43, %v2487_v13  ;;  %v2520_v11 = vsel %vm965_vm11, %v2511_v12, %v2513_v3  ;;  %v5270_v3 = vmul.f32 %v4725_v1, %v5939_v47  ;;  %v2628_v12 = vperm.slane %v5266_v14, 0 }
0x12b8   :  { %v2528_v57 = vadd.f32 %v2520_v11, %v2486_v7 }
0x12bd   :  { %v2535_v35 = vpop.permute.xlu0 %2534 }
0x12be   :  { %v5225_v49 = vpop.permute.xlu1 %2516  ;;  %v2544_v58 = vmul.f32 %v2539_v26, %v2535_v35  ;;  %v2543_v46 = vmul.f32 %v2538_v17, %v2535_v35  ;;  %v2542_v2 = vmul.f32 %v2537_v29, %v2535_v35  ;;  %v2546_v9 = vmul.f32 %v2541_v55, %v2535_v35 }
0x12bf   :  { %v2522_v6 = vsel %vm965_vm11, %v2515_v24, %v5225_v49  ;;  %v2545_v45 = vmul.f32 %v2540_v32, %v2535_v35  ;;  %v5940_v24 = vld [vmem:[#allocation73_spill] sm:$0xff] }
0x12c0   :  { %v2530_v15 = vadd.f32 %v2522_v6, %v2488_v31  ;;  %2556 = vrot.lane.b32.xlu0 %v2544_v58, %s3267_s25  ;;  %2554 = vrot.lane.b32.xlu2 %v2543_v46, %s3267_s25  ;;  %v5274_v43 = vmul.f32 %v4716_v60, %v5940_v24  ;;  %v5941_v46 = vld [vmem:[#allocation76_spill] sm:$0xff]  ;;  %v100_v32 = vld [vmem:[%s5574_s5 + $0x64] sm:$0xf] }
0x12c1   :  { %2552 = vrot.lane.b32.xlu1 %v2542_v2, %s3267_s25  ;;  %v5285_v2 = vmul.f32 %v4733_v48, %v5941_v46 }
0x12c2   :  { %v2626_v11 = vperm.slane %v5274_v43, 0 }
0x12c8   :  { %2576 = vperm.xlu0 %3252, %v98_v25   ;;  %2560 = vrot.lane.b32.xlu2 %v2546_v9, %s3267_s25  ;;  %v2630_v25 = vperm.slane %v5285_v2, 0 }
0x12c9   :  { %2558 = vrot.lane.b32.xlu1 %v2545_v45, %s3267_s25 }
0x131a   :  { %v2555_v40 = vpop.permute.xlu2 %2554 }
0x1322   :  { %v5260_v44 = vpop.permute.xlu2 %2560 }
0x1332   :  { %v2557_v50 = vpop.permute.xlu0 %2556 }
0x1333   :  { %v2563_v20 = vsel %vm965_vm11, %v2555_v40, %v2557_v50  ;;  %v2553_v0 = vpop.permute.xlu1 %2552 }
0x1334   :  { %v2571_v16 = vadd.f32 %v2563_v20, %v2529_v52  ;;  %v2562_v62 = vsel %vm965_vm11, %v2553_v0, %v2555_v40  ;;  %v2627_v52 = vperm.slane %v5270_v3, 0 }
0x1335   :  { %v2570_v5 = vadd.f32 %v2562_v62, %v2528_v57 }
0x133a   :  { %v2577_v23 = vpop.permute.xlu0 %2576 }
0x133b   :  { %v5246_v13 = vpop.permute.xlu1 %2558  ;;  %v2586_v42 = vmul.f32 %v2581_v30, %v2577_v23  ;;  %v2585_v7 = vmul.f32 %v2580_v21, %v2577_v23  ;;  %v2584_v4 = vmul.f32 %v2579_v10, %v2577_v23  ;;  %v2588_v63 = vmul.f32 %v2583_v8, %v2577_v23 }
0x133c   :  { %v2564_v38 = vsel %vm965_vm11, %v2557_v50, %v5246_v13  ;;  %v2587_v36 = vmul.f32 %v2582_v33, %v2577_v23  ;;  %v2670_v10 = vperm.slane %v5266_v14, 1  ;;  %v2669_v23 = vperm.slane %v5270_v3, 1 }
0x133d   :  { %v2572_v28 = vadd.f32 %v2564_v38, %v2530_v15  ;;  %2598 = vrot.lane.b32.xlu0 %v2586_v42, %s3267_s25  ;;  %2596 = vrot.lane.b32.xlu2 %v2585_v7, %s3267_s25  ;;  %v5942_v15 = vld [vmem:[#allocation77_spill] sm:$0xff]  ;;  %v2668_v42 = vperm.slane %v5274_v43, 1 }
0x133e   :  { %2594 = vrot.lane.b32.xlu1 %v2584_v4, %s3267_s25  ;;  %v5292_v55 = vmul.f32 %v4744_v22, %v5942_v15 }
0x1340   :  { %v2629_v9 = vperm.slane %v5292_v55, 0 }
0x1345   :  { %2623 = vperm.xlu0 %3252, %v99_v56   ;;  %2602 = vrot.lane.b32.xlu2 %v2588_v63, %s3267_s25  ;;  %v2672_v63 = vperm.slane %v5285_v2, 1 }
0x1346   :  { %2600 = vrot.lane.b32.xlu1 %v2587_v36, %s3267_s25  ;;  %v101_v36 = vld [vmem:[%s5574_s5 + $0x68] sm:$0xf] }
0x1397   :  { %v2597_v18 = vpop.permute.xlu2 %2596 }
0x139f   :  { %v5301_v50 = vpop.permute.xlu2 %2602 }
0x13af   :  { %v2599_v51 = vpop.permute.xlu0 %2598 }
0x13b0   :  { %v2605_v31 = vsel %vm965_vm11, %v2597_v18, %v2599_v51  ;;  %v2595_v61 = vpop.permute.xlu1 %2594 }
0x13b1   :  { %v2613_v27 = vadd.f32 %v2605_v31, %v2571_v16  ;;  %v2604_v54 = vsel %vm965_vm11, %v2595_v61, %v2597_v18  ;;  %v2671_v18 = vperm.slane %v5292_v55, 1 }
0x13b2   :  { %v2612_v34 = vadd.f32 %v2604_v54, %v2570_v5 }
0x13b7   :  { %v2624_v57 = vpop.permute.xlu0 %2623 }
0x13b8   :  { %v5279_v26 = vpop.permute.xlu1 %2600  ;;  %v2633_v17 = vmul.f32 %v2628_v12, %v2624_v57  ;;  %v2632_v29 = vmul.f32 %v2627_v52, %v2624_v57  ;;  %v2631_v35 = vmul.f32 %v2626_v11, %v2624_v57  ;;  %v2635_v45 = vmul.f32 %v2630_v25, %v2624_v57 }
0x13b9   :  { %v2606_v58 = vsel %vm965_vm11, %v2599_v51, %v5279_v26  ;;  %v2634_v40 = vmul.f32 %v2629_v9, %v2624_v57  ;;  %v2712_v52 = vperm.slane %v5266_v14, 2  ;;  %v2711_v11 = vperm.slane %v5270_v3, 2 }
0x13ba   :  { %v2614_v6 = vadd.f32 %v2606_v58, %v2572_v28  ;;  %2645 = vrot.lane.b32.xlu0 %v2633_v17, %s3269_s17  ;;  %2643 = vrot.lane.b32.xlu2 %v2632_v29, %s3269_s17  ;;  %v2710_v57 = vperm.slane %v5274_v43, 2  ;;  %v2714_v25 = vperm.slane %v5285_v2, 2  ;;  %v2713_v9 = vperm.slane %v5292_v55, 2 }
0x13bb   :  { %2641 = vrot.lane.b32.xlu1 %v2631_v35, %s3269_s17 }
0x13c2   :  { %2665 = vperm.xlu0 %3252, %v100_v32   ;;  %2649 = vrot.lane.b32.xlu2 %v2635_v45, %s3269_s17  ;;  %v102_v32 = vld [vmem:[%s5574_s5 + $0x6c] sm:$0xf] }
0x13c3   :  { %2647 = vrot.lane.b32.xlu1 %v2634_v40, %s3269_s17 }
0x1414   :  { %v2644_v20 = vpop.permute.xlu2 %2643 }
0x141c   :  { %v5322_v61 = vpop.permute.xlu2 %2649 }
0x142c   :  { %v2646_v0 = vpop.permute.xlu0 %2645 }
0x142d   :  { %v2652_v16 = vsel %vm1161_vm12, %v2644_v20, %v2646_v0  ;;  %v2642_v62 = vpop.permute.xlu1 %2641 }
0x142e   :  { %v2660_v5 = vadd.f32 %v2652_v16, %v2613_v27  ;;  %v2651_v30 = vsel %vm1161_vm12, %v2642_v62, %v2644_v20 }
0x142f   :  { %v2659_v21 = vadd.f32 %v2651_v30, %v2612_v34 }
0x1434   :  { %v2666_v7 = vpop.permute.xlu0 %2665 }
0x1435   :  { %v5308_v4 = vpop.permute.xlu1 %2647  ;;  %v2675_v38 = vmul.f32 %v2670_v10, %v2666_v7  ;;  %v2674_v28 = vmul.f32 %v2669_v23, %v2666_v7  ;;  %v2673_v8 = vmul.f32 %v2668_v42, %v2666_v7  ;;  %v2677_v51 = vmul.f32 %v2672_v63, %v2666_v7 }
0x1436   :  { %v2653_v56 = vsel %vm1161_vm12, %v2646_v0, %v5308_v4  ;;  %v2676_v31 = vmul.f32 %v2671_v18, %v2666_v7  ;;  %v2754_v23 = vperm.slane %v5266_v14, 3  ;;  %v2753_v42 = vperm.slane %v5270_v3, 3  ;;  %v103_v3 = vld [vmem:[%s5574_s5 + $0x70] sm:$0xf] }
0x1437   :  { %v2661_v33 = vadd.f32 %v2653_v56, %v2614_v6  ;;  %2687 = vrot.lane.b32.xlu0 %v2675_v38, %s3269_s17  ;;  %2685 = vrot.lane.b32.xlu2 %v2674_v28, %s3269_s17  ;;  %v2752_v7 = vperm.slane %v5274_v43, 3  ;;  %v2756_v14 = vperm.slane %v5285_v2, 3  ;;  %v2755_v43 = vperm.slane %v5292_v55, 3 }
0x1438   :  { %2683 = vrot.lane.b32.xlu1 %v2673_v8, %s3269_s17 }
0x143f   :  { %2707 = vperm.xlu0 %3252, %v101_v36   ;;  %2691 = vrot.lane.b32.xlu2 %v2677_v51, %s3269_s17 }
0x1440   :  { %2689 = vrot.lane.b32.xlu1 %v2676_v31, %s3269_s17 }
0x1491   :  { %v2686_v27 = vpop.permute.xlu2 %2685 }
0x1499   :  { %v5343_v20 = vpop.permute.xlu2 %2691 }
0x14a9   :  { %v2688_v54 = vpop.permute.xlu0 %2687 }
0x14aa   :  { %v2694_v34 = vsel %vm1161_vm12, %v2686_v27, %v2688_v54  ;;  %v2684_v39 = vpop.permute.xlu1 %2683 }
0x14ab   :  { %v2702_v47 = vadd.f32 %v2694_v34, %v2660_v5  ;;  %v2693_v24 = vsel %vm1161_vm12, %v2684_v39, %v2686_v27 }
0x14ac   :  { %v2701_v12 = vadd.f32 %v2693_v24, %v2659_v21 }
0x14b1   :  { %v2708_v17 = vpop.permute.xlu0 %2707 }
0x14b2   :  { %v5329_v29 = vpop.permute.xlu1 %2689  ;;  %v2717_v35 = vmul.f32 %v2712_v52, %v2708_v17  ;;  %v2716_v58 = vmul.f32 %v2711_v11, %v2708_v17  ;;  %v2715_v46 = vmul.f32 %v2710_v57, %v2708_v17  ;;  %v2719_v45 = vmul.f32 %v2714_v25, %v2708_v17  ;;  %v5944_v52 = vld [vmem:[#allocation99_spill] sm:$0xff]  ;;  %v5945_v57 = vld [vmem:[#allocation98_spill] sm:$0xff] }
0x14b3   :  { %v2695_v6 = vsel %vm1161_vm12, %v2688_v54, %v5329_v29  ;;  %v2718_v40 = vmul.f32 %v2713_v9, %v2708_v17  ;;  %v5374_v11 = vmul.f32 %v4725_v1, %v5944_v52  ;;  %v5378_v17 = vmul.f32 %v4716_v60, %v5945_v57 }
0x14b4   :  { %v2703_v15 = vadd.f32 %v2695_v6, %v2661_v33  ;;  %2729 = vrot.lane.b32.xlu0 %v2717_v35, %s3269_s17  ;;  %2727 = vrot.lane.b32.xlu2 %v2716_v58, %s3269_s17 }
0x14b5   :  { %2725 = vrot.lane.b32.xlu1 %v2715_v46, %s3269_s17  ;;  %v2800_v58 = vperm.slane %v5374_v11, 0  ;;  %v2799_v46 = vperm.slane %v5378_v17, 0  ;;  %v2842_v57 = vperm.slane %v5374_v11, 1 }
0x14bc   :  { %2749 = vperm.xlu0 %3252, %v102_v32   ;;  %2733 = vrot.lane.b32.xlu2 %v2719_v45, %s3269_s17 }
0x14bd   :  { %2731 = vrot.lane.b32.xlu1 %v2718_v40, %s3269_s17  ;;  %v5946_v40 = vld [vmem:[#allocation101_spill] sm:$0xff] }
0x150e   :  { %v2728_v0 = vpop.permute.xlu2 %2727 }
0x1516   :  { %v5364_v31 = vpop.permute.xlu2 %2733 }
0x1526   :  { %v2730_v16 = vpop.permute.xlu0 %2729 }
0x1527   :  { %v2736_v62 = vsel %vm1161_vm12, %v2728_v0, %v2730_v16  ;;  %v2726_v5 = vpop.permute.xlu1 %2725 }
0x1528   :  { %v2744_v30 = vadd.f32 %v2736_v62, %v2702_v47  ;;  %v2735_v21 = vsel %vm1161_vm12, %v2726_v5, %v2728_v0  ;;  %v5386_v0 = vmul.f32 %v4733_v48, %v5946_v40  ;;  %v5947_v62 = vld [vmem:[#allocation102_spill] sm:$0xff] }
0x1529   :  { %v2743_v10 = vadd.f32 %v2735_v21, %v2701_v12  ;;  %v5943_v12 = vld [vmem:[#allocation100_spill] sm:$0xff]  ;;  %v5393_v5 = vmul.f32 %v4744_v22, %v5947_v62  ;;  %v104_v21 = vld [vmem:[%s5574_s5 + $0x74] sm:$0xf] }
0x152a   :  { %v5370_v55 = vmul.f32 %v4741_v37, %v5943_v12 }
0x152c   :  { %v2801_v35 = vperm.slane %v5370_v55, 0  ;;  %v2843_v52 = vperm.slane %v5370_v55, 1 }
0x152e   :  { %v2750_v38 = vpop.permute.xlu0 %2749 }
0x152f   :  { %v5350_v28 = vpop.permute.xlu1 %2731  ;;  %v2759_v8 = vmul.f32 %v2754_v23, %v2750_v38  ;;  %v2758_v56 = vmul.f32 %v2753_v42, %v2750_v38  ;;  %v2757_v33 = vmul.f32 %v2752_v7, %v2750_v38  ;;  %v2761_v18 = vmul.f32 %v2756_v14, %v2750_v38  ;;  %v107_v7 = vld [vmem:[%s5574_s5 + $0x80] sm:$0xf] }
0x1530   :  { %v2737_v63 = vsel %vm1161_vm12, %v2730_v16, %v5350_v28  ;;  %v2760_v51 = vmul.f32 %v2755_v43, %v2750_v38  ;;  %v106_v38 = vld [vmem:[%s5574_s5 + $0x7c] sm:$0xf]  ;;  %v2481_v14 = vsel %vm965_vm11, %v5204_v53, %v5218_v19  ;;  %v2654_v53 = vsel %vm1161_vm12, %v5308_v4, %v5322_v61 }
0x1531   :  { %v2745_v36 = vadd.f32 %v2737_v63, %v2703_v15  ;;  %2771 = vrot.lane.b32.xlu0 %v2759_v8, %s3269_s17  ;;  %2769 = vrot.lane.b32.xlu2 %v2758_v56, %s3269_s17  ;;  %v105_v8 = vld [vmem:[%s5574_s5 + $0x78] sm:$0xf]  ;;  %v110_v56 = vld [vmem:[%s5574_s5 + $0x8c] sm:$0xf]  ;;  %v2489_v43 = vadd.f32 %v2481_v14, %v5179_v41  ;;  %v2738_v4 = vsel %vm1161_vm12, %v5350_v28, %v5364_v31 }
0x1532   :  { %2767 = vrot.lane.b32.xlu1 %v2757_v33, %s3269_s17  ;;  %v109_v33 = vld [vmem:[%s5574_s5 + $0x88] sm:$0xf]  ;;  %v108_v63 = vld [vmem:[%s5574_s5 + $0x84] sm:$0xf] }
0x1539   :  { %2796 = vperm.xlu0 %3252, %v103_v3   ;;  %2775 = vrot.lane.b32.xlu2 %v2761_v18, %s3269_s17  ;;  %v2523_v3 = vsel %vm965_vm11, %v5225_v49, %v5239_v59  ;;  %v2565_v18 = vsel %vm965_vm11, %v5246_v13, %v5260_v44  ;;  %v2696_v59 = vsel %vm1161_vm12, %v5329_v29, %v5343_v20  ;;  %v2841_v29 = vperm.slane %v5378_v17, 1 }
0x153a   :  { %2773 = vrot.lane.b32.xlu1 %v2760_v51, %s3269_s17  ;;  %v2531_v51 = vadd.f32 %v2523_v3, %v2489_v43  ;;  %v5948_v43 = vld [vmem:[#allocation122_spill] sm:$0xff] }
0x158b   :  { %v2770_v27 = vpop.permute.xlu2 %2769 }
0x15a3   :  { %v2772_v54 = vpop.permute.xlu0 %2771 }
0x15a4   :  { %v2778_v34 = vsel %vm1161_vm12, %v2770_v27, %v2772_v54  ;;  %v2768_v2 = vpop.permute.xlu1 %2767 }
0x15a5   :  { %v2786_v39 = vadd.f32 %v2778_v34, %v2744_v30  ;;  %v2777_v47 = vsel %vm1161_vm12, %v2768_v2, %v2770_v27  ;;  %v2803_v30 = vperm.slane %v5386_v0, 0  ;;  %v2607_v27 = vsel %vm965_vm11, %v5279_v26, %v5301_v50 }
0x15a6   :  { %v2785_v24 = vadd.f32 %v2777_v47, %v2743_v10  ;;  %v2802_v10 = vperm.slane %v5393_v5, 0 }
0x15ab   :  { %v2797_v6 = vpop.permute.xlu0 %2796 }
0x15ac   :  { %v2774_v15 = vpop.permute.xlu1 %2773  ;;  %v2806_v25 = vmul.f32 %v2801_v35, %v2797_v6  ;;  %v2805_v32 = vmul.f32 %v2800_v58, %v2797_v6  ;;  %v2804_v9 = vmul.f32 %v2799_v46, %v2797_v6  ;;  %v2808_v23 = vmul.f32 %v2803_v30, %v2797_v6 }
0x15ad   :  { %v2779_v45 = vsel %vm1161_vm12, %v2772_v54, %v2774_v15  ;;  %v2807_v42 = vmul.f32 %v2802_v10, %v2797_v6  ;;  %v2573_v54 = vadd.f32 %v2565_v18, %v2531_v51  ;;  %v2886_v10 = vperm.slane %v5393_v5, 2 }
0x15ae   :  { %v2787_v16 = vadd.f32 %v2779_v45, %v2745_v36  ;;  %2818 = vrot.lane.b32.xlu0 %v2806_v25, %s3271_s9  ;;  %2816 = vrot.lane.b32.xlu2 %v2805_v32, %s3271_s9  ;;  %v2776_v36 = vpop.permute.xlu2 %2775  ;;  %v2844_v32 = vperm.slane %v5393_v5, 1  ;;  %v2883_v45 = vperm.slane %v5378_v17, 2  ;;  %v2962_v18 = vmul.f32 %v4716_v60, %v5948_v43  ;;  %v5950_v60 = vld [vmem:[#allocation126_spill] sm:$0xff] }
0x15af   :  { %2814 = vrot.lane.b32.xlu1 %v2804_v9, %s3271_s9  ;;  %v2615_v2 = vadd.f32 %v2607_v27, %v2573_v54  ;;  %v2780_v47 = vsel %vm1161_vm12, %v2774_v15, %v2776_v36  ;;  %v2884_v9 = vperm.slane %v5374_v11, 2  ;;  %v2887_v27 = vperm.slane %v5386_v0, 2 }
0x15b1   :  { %v2662_v26 = vadd.f32 %v2654_v53, %v2615_v2  ;;  %v5949_v53 = vld [vmem:[#allocation124_spill] sm:$0xff]  ;;  %v2964_v2 = vmul.f32 %v4741_v37, %v5950_v60  ;;  %v3014_v37 = vperm.slane %v2962_v18, 1 }
0x15b3   :  { %v2704_v61 = vadd.f32 %v2696_v59, %v2662_v26  ;;  %v2974_v59 = vperm.slane %v2964_v2, 0 }
0x15b5   :  { %v2746_v12 = vadd.f32 %v2738_v4, %v2704_v61  ;;  %v5951_v4 = vld [vmem:[#allocation127_spill] sm:$0xff] }
0x15b6   :  { %2838 = vperm.xlu0 %3252, %v104_v21   ;;  %2822 = vrot.lane.b32.xlu2 %v2808_v23, %s3271_s9  ;;  %v2845_v23 = vperm.slane %v5386_v0, 1  ;;  %v2965_v61 = vmul.f32 %v4744_v22, %v5951_v4 }
0x15b7   :  { %2820 = vrot.lane.b32.xlu1 %v2807_v42, %s3271_s9 }
0x15b8   :  { %v3017_v22 = vperm.slane %v2965_v61, 1 }
0x15be   :  { %2969 = vperm.xlu0 %3252, %v107_v7   ;;  %2922 = vperm.xlu2 %3251, %v106_v38  }
0x15bf   :  { %2880 = vperm.xlu1 %3253, %v105_v8  }
0x15c6   :  { %3095 = vperm.xlu0 %3252, %v110_v56   ;;  %3053 = vperm.xlu2 %3251, %v109_v33   ;;  %v2925_v56 = vperm.slane %v5378_v17, 3  ;;  %v2927_v33 = vperm.slane %v5370_v55, 3  ;;  %v2972_v17 = vperm.slane %v2962_v18, 0 }
0x15c7   :  { %3011 = vperm.xlu1 %3253, %v108_v63   ;;  %v2926_v63 = vperm.slane %v5374_v11, 3 }
0x1608   :  { %v2817_v34 = vpop.permute.xlu2 %2816 }
0x1610   :  { %v2823_v35 = vpop.permute.xlu2 %2822 }
0x1618   :  { %v2923_v8 = vpop.permute.xlu2 %2922 }
0x1619   :  { %v2930_v36 = vmul.f32 %v2925_v56, %v2923_v8  ;;  %v2932_v14 = vmul.f32 %v2927_v33, %v2923_v8  ;;  %v2931_v3 = vmul.f32 %v2926_v63, %v2923_v8  ;;  %v3101_v63 = vperm.slane %v2965_v61, 3 }
0x1620   :  { %v2819_v19 = vpop.permute.xlu0 %2818 }
0x1621   :  { %v2825_v49 = vsel %vm1357_vm13, %v2817_v34, %v2819_v19  ;;  %v2815_v41 = vpop.permute.xlu1 %2814 }
0x1622   :  { %v5440_v13 = vadd.f32 %v2825_v49, %v2786_v39  ;;  %v2824_v44 = vsel %vm1357_vm13, %v2815_v41, %v2817_v34  ;;  %v2788_v39 = vadd.f32 %v2780_v47, %v2746_v12  ;;  %v2929_v41 = vperm.slane %v5386_v0, 3 }
0x1623   :  { %v5443_v50 = vadd.f32 %v2824_v44, %v2785_v24  ;;  %v2975_v47 = vperm.slane %v2965_v61, 0 }
0x1624   :  { %v2934_v44 = vmul.f32 %v2929_v41, %v2923_v8 }
0x1628   :  { %v2839_v20 = vpop.permute.xlu0 %2838 }
0x1629   :  { %v2821_v58 = vpop.permute.xlu1 %2820  ;;  %v2848_v24 = vmul.f32 %v2843_v52, %v2839_v20  ;;  %v2847_v46 = vmul.f32 %v2842_v57, %v2839_v20  ;;  %v2846_v6 = vmul.f32 %v2841_v29, %v2839_v20  ;;  %v2849_v62 = vmul.f32 %v2844_v32, %v2839_v20  ;;  %v5952_v29 = vld [vmem:[#allocation125_spill] sm:$0xff] }
0x162a   :  { %v2826_v25 = vsel %vm1357_vm13, %v2819_v19, %v2821_v58  ;;  %v2827_v28 = vsel %vm1357_vm13, %v2821_v58, %v2823_v35  ;;  %v2850_v38 = vmul.f32 %v2845_v23, %v2839_v20  ;;  %v2963_v19 = vmul.f32 %v4725_v1, %v5949_v53 }
0x162b   :  { %v5454_v31 = vadd.f32 %v2826_v25, %v2787_v16  ;;  %v5456_v15 = vadd.f32 %v2827_v28, %v2788_v39  ;;  %2860 = vrot.lane.b32.xlu0 %v2848_v24, %s3271_s9  ;;  %2858 = vrot.lane.b32.xlu2 %v2847_v46, %s3271_s9  ;;  %v2885_v16 = vperm.slane %v5370_v55, 2  ;;  %v2928_v55 = vperm.slane %v5393_v5, 3 }
0x162c   :  { %2856 = vrot.lane.b32.xlu1 %v2846_v6, %s3271_s9  ;;  %v2973_v49 = vperm.slane %v2963_v19, 0  ;;  %v3015_v12 = vperm.slane %v2963_v19, 1  ;;  %v2966_v20 = vmul.f32 %v4733_v48, %v5952_v29  ;;  %v3016_v39 = vperm.slane %v2964_v2, 1  ;;  %v3054_v6 = vpop.permute.xlu2 %3053 }
0x162d   :  { %v2933_v34 = vmul.f32 %v2928_v55, %v2923_v8  ;;  %v3056_v25 = vperm.slane %v2962_v18, 2  ;;  %v3058_v28 = vperm.slane %v2964_v2, 2  ;;  %v3057_v32 = vperm.slane %v2963_v19, 2 }
0x162e   :  { %v2976_v35 = vperm.slane %v2966_v20, 0 }
0x162f   :  { %v3063_v48 = vmul.f32 %v3058_v28, %v3054_v6 }
0x1630   :  { %v2970_v51 = vpop.permute.xlu0 %2969 }
0x1631   :  { %v2881_v40 = vpop.permute.xlu1 %2880  ;;  %v2977_v11 = vmul.f32 %v2972_v17, %v2970_v51  ;;  %v2978_v5 = vmul.f32 %v2973_v49, %v2970_v51  ;;  %v2979_v26 = vmul.f32 %v2974_v59, %v2970_v51  ;;  %v2980_v52 = vmul.f32 %v2975_v47, %v2970_v51 }
0x1632   :  { %v2889_v30 = vmul.f32 %v2884_v9, %v2881_v40  ;;  %v2888_v21 = vmul.f32 %v2883_v45, %v2881_v40  ;;  %v2890_v42 = vmul.f32 %v2885_v16, %v2881_v40  ;;  %v2891_v7 = vmul.f32 %v2886_v10, %v2881_v40 }
0x1633   :  { %v2892_v54 = vmul.f32 %v2887_v27, %v2881_v40  ;;  %v2981_v46 = vmul.f32 %v2976_v35, %v2970_v51  ;;  %v3061_v9 = vmul.f32 %v3056_v25, %v3054_v6  ;;  %v3062_v45 = vmul.f32 %v3057_v32, %v3054_v6  ;;  %v3136_v27 = vld [vmem:[%s5576_s7] sm:$0xf] }
0x1634   :  { %2862 = vrot.lane.b32.xlu1 %v2849_v62, %s3271_s9  ;;  %2900 = vrot.lane.b32.xlu0 %v2889_v30, %s3271_s9  ;;  %v3018_v62 = vperm.slane %v2966_v20, 1  ;;  %v3098_v30 = vperm.slane %v2962_v18, 3  ;;  %v3135_v18 = vld [vmem:[%s5575_s6] sm:$0xf] }
0x1635   :  { %2898 = vrot.lane.b32.xlu2 %v2888_v21, %s3271_s9  ;;  %v3059_v21 = vperm.slane %v2965_v61, 2 }
0x1637   :  { %v3064_v23 = vmul.f32 %v3059_v21, %v3054_v6 }
0x1638   :  { %v3096_v40 = vpop.permute.xlu0 %3095 }
0x1639   :  { %v3012_v1 = vpop.permute.xlu1 %3011  ;;  %v3103_v10 = vmul.f32 %v3098_v30, %v3096_v40 }
0x163a   :  { %v3020_v57 = vmul.f32 %v3015_v12, %v3012_v1  ;;  %v3019_v0 = vmul.f32 %v3014_v37, %v3012_v1  ;;  %v3021_v58 = vmul.f32 %v3016_v39, %v3012_v1  ;;  %v3022_v24 = vmul.f32 %v3017_v22, %v3012_v1 }
0x163b   :  { %v3023_v16 = vmul.f32 %v3018_v62, %v3012_v1 }
0x163c   :  { %2902 = vrot.lane.b32.xlu1 %v2890_v42, %s3271_s9  ;;  %2904 = vrot.lane.b32.xlu0 %v2891_v7, %s3271_s9  ;;  %v3099_v42 = vperm.slane %v2963_v19, 3  ;;  %v3060_v7 = vperm.slane %v2966_v20, 2 }
0x163d   :  { %2864 = vrot.lane.b32.xlu2 %v2850_v38, %s3271_s9  ;;  %v3100_v38 = vperm.slane %v2964_v2, 3 }
0x163e   :  { %v3104_v8 = vmul.f32 %v3099_v42, %v3096_v40  ;;  %v3065_v56 = vmul.f32 %v3060_v7, %v3054_v6 }
0x163f   :  { %v3105_v33 = vmul.f32 %v3100_v38, %v3096_v40 }
0x1644   :  { %2940 = vrot.lane.b32.xlu1 %v2930_v36, %s3271_s9  ;;  %2944 = vrot.lane.b32.xlu0 %v2932_v14, %s3271_s9  ;;  %v3102_v36 = vperm.slane %v2966_v20, 3  ;;  %v3106_v14 = vmul.f32 %v3101_v63, %v3096_v40 }
0x1645   :  { %2942 = vrot.lane.b32.xlu2 %v2931_v3, %s3271_s9 }
0x1646   :  { %v3107_v3 = vmul.f32 %v3102_v36, %v3096_v40 }
0x164c   :  { %2906 = vrot.lane.b32.xlu1 %v2892_v54, %s3271_s9  ;;  %2987 = vrot.lane.b32.xlu0 %v2977_v11, %s3273_s26 }
0x164d   :  { %2946 = vrot.lane.b32.xlu2 %v2933_v34, %s3271_s9 }
0x1654   :  { %2989 = vrot.lane.b32.xlu1 %v2978_v5, %s3273_s26  ;;  %2948 = vrot.lane.b32.xlu0 %v2934_v44, %s3271_s9 }
0x1655   :  { %2991 = vrot.lane.b32.xlu2 %v2979_v26, %s3273_s26 }
0x165c   :  { %2993 = vrot.lane.b32.xlu1 %v2980_v52, %s3273_s26  ;;  %3031 = vrot.lane.b32.xlu0 %v3020_v57, %s3273_s26 }
0x165d   :  { %3029 = vrot.lane.b32.xlu2 %v3019_v0, %s3273_s26 }
0x1664   :  { %3033 = vrot.lane.b32.xlu1 %v3021_v58, %s3273_s26  ;;  %3035 = vrot.lane.b32.xlu0 %v3022_v24, %s3273_s26 }
0x1665   :  { %2995 = vrot.lane.b32.xlu2 %v2981_v46, %s3273_s26 }
0x166c   :  { %3071 = vrot.lane.b32.xlu1 %v3061_v9, %s3273_s26  ;;  %3075 = vrot.lane.b32.xlu0 %v3063_v48, %s3273_s26 }
0x166d   :  { %3073 = vrot.lane.b32.xlu2 %v3062_v45, %s3273_s26 }
0x1674   :  { %3037 = vrot.lane.b32.xlu1 %v3023_v16, %s3273_s26  ;;  %3113 = vrot.lane.b32.xlu0 %v3103_v10, %s3273_s26 }
0x1675   :  { %3077 = vrot.lane.b32.xlu2 %v3064_v23, %s3273_s26 }
0x167c   :  { %3115 = vrot.lane.b32.xlu1 %v3104_v8, %s3273_s26  ;;  %3079 = vrot.lane.b32.xlu0 %v3065_v56, %s3273_s26 }
0x167d   :  { %3117 = vrot.lane.b32.xlu2 %v3105_v33, %s3273_s26 }
0x1684   :  { %3119 = vrot.lane.b32.xlu1 %v3106_v14, %s3273_s26 }
0x1685   :  { %3121 = vrot.lane.b32.xlu2 %v3107_v3, %s3273_s26  ;;  %v2859_v43 = vpop.permute.xlu2 %2858 }
0x168d   :  { %3184 = vperm.xlu2 %3251, %v3135_v18  }
0x168f   :  { %v2899_v51 = vpop.permute.xlu2 %2898 }
0x1695   :  { %3193 = vperm.xlu2 %3251, %v3136_v27  }
0x1697   :  { %v2865_v17 = vpop.permute.xlu2 %2864 }
0x169d   :  { %v2861_v55 = vpop.permute.xlu0 %2860 }
0x169e   :  { %v2867_v54 = vsel %vm1357_vm13, %v2859_v43, %v2861_v55  ;;  %v2857_v11 = vpop.permute.xlu1 %2856 }
0x169f   :  { %v2875_v34 = vadd.f32 %v2867_v54, %v5440_v13  ;;  %v2866_v53 = vsel %vm1357_vm13, %v2857_v11, %v2859_v43  ;;  %v2943_v60 = vpop.permute.xlu2 %2942 }
0x16a0   :  { %v2874_v19 = vadd.f32 %v2866_v53, %v5443_v50 }
0x16a6   :  { %v2901_v2 = vpop.permute.xlu0 %2900  ;;  %v2863_v49 = vpop.permute.xlu1 %2862 }
0x16a7   :  { %v2908_v41 = vsel %vm1357_vm13, %v2899_v51, %v2901_v2  ;;  %v2868_v59 = vsel %vm1357_vm13, %v2861_v55, %v2863_v49  ;;  %v2869_v5 = vsel %vm1357_vm13, %v2863_v49, %v2865_v17  ;;  %v2947_v1 = vpop.permute.xlu2 %2946 }
0x16a8   :  { %v2916_v44 = vadd.f32 %v2908_v41, %v2874_v19  ;;  %v2876_v26 = vadd.f32 %v2868_v59, %v5454_v31  ;;  %v2877_v4 = vadd.f32 %v2869_v5, %v5456_v15 }
0x16ae   :  { %v2905_v61 = vpop.permute.xlu0 %2904  ;;  %v2903_v13 = vpop.permute.xlu1 %2902 }
0x16af   :  { %v2992_v50 = vpop.permute.xlu2 %2991  ;;  %v2909_v6 = vsel %vm1357_vm13, %v2901_v2, %v2903_v13  ;;  %v2910_v42 = vsel %vm1357_vm13, %v2903_v13, %v2905_v61 }
0x16b0   :  { %v2917_v32 = vadd.f32 %v2909_v6, %v2875_v34  ;;  %v2918_v3 = vadd.f32 %v2910_v42, %v2876_v26 }
0x16b6   :  { %v2945_v47 = vpop.permute.xlu0 %2944  ;;  %v2941_v12 = vpop.permute.xlu1 %2940 }
0x16b7   :  { %v3030_v57 = vpop.permute.xlu2 %3029  ;;  %v2951_v25 = vsel %vm1357_vm13, %v2943_v60, %v2945_v47  ;;  %v2950_v28 = vsel %vm1357_vm13, %v2941_v12, %v2943_v60  ;;  %v2952_v36 = vsel %vm1357_vm13, %v2945_v47, %v2947_v1 }
0x16b8   :  { %v2959_v62 = vadd.f32 %v2951_v25, %v2917_v32  ;;  %v2958_v30 = vadd.f32 %v2950_v28, %v2916_v44  ;;  %v2960_v34 = vadd.f32 %v2952_v36, %v2918_v3 }
0x16be   :  { %v2988_v37 = vpop.permute.xlu0 %2987  ;;  %v2907_v52 = vpop.permute.xlu1 %2906 }
0x16bf   :  { %v2996_v20 = vpop.permute.xlu2 %2995  ;;  %v2911_v7 = vsel %vm1357_vm13, %v2905_v61, %v2907_v52 }
0x16c0   :  { %v2919_v43 = vadd.f32 %v2911_v7, %v2877_v4 }
0x16c6   :  { %v2949_v0 = vpop.permute.xlu0 %2948  ;;  %v2990_v29 = vpop.permute.xlu1 %2989 }
0x16c7   :  { %v3074_v24 = vpop.permute.xlu2 %3073  ;;  %v2997_v45 = vsel %vm1553_vm14, %v2988_v37, %v2990_v29  ;;  %v2998_v40 = vsel %vm1553_vm14, %v2990_v29, %v2992_v50  ;;  %v2953_v14 = vsel %vm1357_vm13, %v2947_v1, %v2949_v0 }
0x16c8   :  { %v3005_v10 = vadd.f32 %v2997_v45, %v2958_v30  ;;  %v3006_v23 = vadd.f32 %v2998_v40, %v2959_v62  ;;  %v2961_v53 = vadd.f32 %v2953_v14, %v2919_v43 }
0x16ce   :  { %v3032_v39 = vpop.permute.xlu0 %3031  ;;  %v2994_v22 = vpop.permute.xlu1 %2993 }
0x16cf   :  { %v3078_v15 = vpop.permute.xlu2 %3077  ;;  %v3039_v21 = vsel %vm1553_vm14, %v3030_v57, %v3032_v39  ;;  %v2999_v17 = vsel %vm1553_vm14, %v2992_v50, %v2994_v22  ;;  %v3000_v55 = vsel %vm1553_vm14, %v2994_v22, %v2996_v20 }
0x16d0   :  { %v3047_v56 = vadd.f32 %v3039_v21, %v3005_v10  ;;  %v3007_v59 = vadd.f32 %v2999_v17, %v2960_v34  ;;  %v3008_v5 = vadd.f32 %v3000_v55, %v2961_v53 }
0x16d6   :  { %v3036_v35 = vpop.permute.xlu0 %3035  ;;  %v3034_v58 = vpop.permute.xlu1 %3033 }
0x16d7   :  { %v3040_v16 = vsel %vm1553_vm14, %v3032_v39, %v3034_v58  ;;  %v3118_v33 = vpop.permute.xlu2 %3117  ;;  %v3041_v49 = vsel %vm1553_vm14, %v3034_v58, %v3036_v35 }
0x16d8   :  { %v3048_v63 = vadd.f32 %v3040_v16, %v3006_v23  ;;  %v3049_v4 = vadd.f32 %v3041_v49, %v3007_v59  ;;  %v3203_v59 = vld.sshfl [vmem:[#allocation1] sm:$0xff pattern:$0x75316420] }
0x16de   :  { %v3076_v31 = vpop.permute.xlu0 %3075  ;;  %v3072_v46 = vpop.permute.xlu1 %3071 }
0x16df   :  { %v3082_v38 = vsel %vm1553_vm14, %v3074_v24, %v3076_v31  ;;  %v3081_v8 = vsel %vm1553_vm14, %v3072_v46, %v3074_v24  ;;  %v3083_v44 = vsel %vm1553_vm14, %v3076_v31, %v3078_v15  ;;  %v3122_v12 = vpop.permute.xlu2 %3121 }
0x16e0   :  { %v3090_v18 = vadd.f32 %v3082_v38, %v3048_v63  ;;  %v3089_v51 = vadd.f32 %v3081_v8, %v3047_v56  ;;  %v3091_v47 = vadd.f32 %v3083_v44, %v3049_v4 }
0x16e6   :  { %v3114_v9 = vpop.permute.xlu0 %3113  ;;  %v3038_v48 = vpop.permute.xlu1 %3037 }
0x16e7   :  { %v3042_v41 = vsel %vm1553_vm14, %v3036_v35, %v3038_v48  ;;  %v3185_v8 = vpop.permute.xlu2 %3184 }
0x16e8   :  { %v3050_v61 = vadd.f32 %v3042_v41, %v3008_v5  ;;  %v3204_v5 = vld.sshfl [vmem:[#allocation1 + $0x8] sm:$0xff pattern:$0x75316420] }
0x16ee   :  { %v3116_v27 = vpop.permute.xlu1 %3115  ;;  %v3080_v19 = vpop.permute.xlu0 %3079 }
0x16ef   :  { %v3123_v54 = vsel %vm1553_vm14, %v3114_v9, %v3116_v27  ;;  %v3124_v11 = vsel %vm1553_vm14, %v3116_v27, %v3118_v33  ;;  %v3084_v26 = vsel %vm1553_vm14, %v3078_v15, %v3080_v19  ;;  %v3194_v41 = vpop.permute.xlu2 %3193 }
0x16f0   :  { %v3131_v60 = vadd.f32 %v3123_v54, %v3089_v51  ;;  %v3132_v2 = vadd.f32 %v3124_v11, %v3090_v18  ;;  %v3092_v50 = vadd.f32 %v3084_v26, %v3050_v61  ;;  %v3205_v54 = vld.sshfl [vmem:[#allocation1 + $0x10] sm:$0xff pattern:$0x75316420]  ;;  %v3206_v11 = vld.sshfl [vmem:[#allocation1 + $0x18] sm:$0xff pattern:$0x75316420] }
0x16f2   :  { %v3146_v13 = vmul.f32 %v3131_v60, %v3131_v60  ;;  %v3147_v1 = vmul.f32 %v3132_v2, %v3132_v2  ;;  %v3137_v37 = vsel %vm1694_vm15, %v3131_v60, 0.0  ;;  %v3138_v52 = vsel %vm1694_vm15, %v3132_v2, 0.0 }
0x16f3   :  { %v3139_v58 = vadd.f32 %v3138_v52, %v3137_v37 }
0x16f4   :  { %v3150_v22 = vsel %vm1694_vm15, %v3146_v13, 0.0  ;;  %v3151_v35 = vsel %vm1694_vm15, %v3147_v1, 0.0 }
0x16f5   :  { %v3152_v6 = vadd.f32 %v3151_v35, %v3150_v22 }
0x16f6   :  { %v3120_v57 = vpop.permute.xlu1 %3119 }
0x16f7   :  { %v3125_v0 = vsel %vm1553_vm14, %v3118_v33, %v3120_v57  ;;  %v3126_v29 = vsel %vm1553_vm14, %v3120_v57, %v3122_v12 }
0x16f8   :  { %v3133_v20 = vadd.f32 %v3125_v0, %v3091_v47  ;;  %v3134_v39 = vadd.f32 %v3126_v29, %v3092_v50 }
0x16fa   :  { %v3148_v24 = vmul.f32 %v3133_v20, %v3133_v20  ;;  %v3140_v31 = vsel %vm1694_vm15, %v3133_v20, 0.0  ;;  %v3149_v46 = vmul.f32 %v3134_v39, %v3134_v39  ;;  %v3142_v25 = vsel %vm1694_vm15, %v3134_v39, 0.0 }
0x16fb   :  { %v3141_v15 = vadd.f32 %v3140_v31, %v3139_v58 }
0x16fc   :  { %v3153_v28 = vsel %vm1694_vm15, %v3148_v24, 0.0  ;;  %v3155_v48 = vsel %vm1694_vm15, %v3149_v46, 0.0 }
0x16fd   :  { %v3143_v32 = vadd.f32 %v3142_v25, %v3141_v15  ;;  %v3154_v9 = vadd.f32 %v3153_v28, %v3152_v6 }
0x16ff   :  { %3144 = vadd.xlane.f32.xlu0 %v3143_v32  ;;  %v3156_v45 = vadd.f32 %v3155_v48, %v3154_v9 }
0x1701   :  { %3157 = vadd.xlane.f32.xlu1 %v3156_v45 }
0x1772   :  { %v3145_v40 = vpop.xlane.xlu0 %3144 }
0x1773   :  { %v3159_v62 = vmul.f32 0.001953125, %v3145_v40 }
0x1774   :  { %v3158_v30 = vpop.xlane.xlu1 %3157 }
0x1775   :  { %v3160_v21 = vmul.f32 0.001953125, %v3158_v30  ;;  %v3161_v16 = vmul.f32 %v3159_v62, %v3159_v62  ;;  %v3163_v36 = vsub.f32 %v3131_v60, %v3159_v62  ;;  %v3164_v14 = vsub.f32 %v3132_v2, %v3159_v62 }
0x1776   :  { %v3165_v3 = vsub.f32 %v3133_v20, %v3159_v62  ;;  %v3166_v43 = vsub.f32 %v3134_v39, %v3159_v62 }
0x1777   :  { %v3162_v10 = vsub.f32 %v3160_v21, %v3161_v16 }
0x1779   :  { %v3167_v23 = vadd.f32 1e-05, %v3162_v10 }
0x177b   :  { %3256 = vrsqrt.f32 %v3167_v23  ;;  %vm3174_vm4 = vweird.f32 %v3167_v23 }
0x1781   :  { %v3257_v42 = vpop.eup %3256 }
0x1782   :  { %v3169_v7 = vmul.f32 %v3257_v42, %v3167_v23  ;;  %vm3175_vm1 = vweird.f32 %v3257_v42 }
0x1783   :  { %vm3176_vm5 = vmor %vm3174_vm4, %vm3175_vm1 }
0x1784   :  { %v3170_v38 = vmul.f32 %v3257_v42, %v3169_v7 }
0x1786   :  { %v3171_v56 = vmul.f32 0.5, %v3170_v38 }
0x1788   :  { %v3172_v33 = vsub.f32 1.5, %v3171_v56 }
0x178a   :  { %v3173_v63 = vmul.f32 %v3257_v42, %v3172_v33 }
0x178c   :  { %v3177_v18 = vsel %vm3176_vm5, %v3257_v42, %v3173_v63 }
0x178d   :  { %v3178_v51 = vmul.f32 %v3177_v18, %v3163_v36  ;;  %v3179_v27 = vmul.f32 %v3177_v18, %v3164_v14  ;;  %v3180_v17 = vmul.f32 %v3177_v18, %v3165_v3  ;;  %v3181_v55 = vmul.f32 %v3177_v18, %v3166_v43 }
0x178f   :  { %v3187_v34 = vmul.f32 %v3185_v8, %v3178_v51  ;;  %v3188_v53 = vmul.f32 %v3185_v8, %v3179_v27  ;;  %v3189_v19 = vmul.f32 %v3185_v8, %v3180_v17  ;;  %v3190_v49 = vmul.f32 %v3185_v8, %v3181_v55 }
0x1791   :  { %v3196_v44 = vadd.f32 %v3194_v41, %v3187_v34  ;;  %v3197_v60 = vadd.f32 %v3194_v41, %v3188_v53  ;;  %v3198_v2 = vadd.f32 %v3194_v41, %v3189_v19  ;;  %v3199_v26 = vadd.f32 %v3194_v41, %v3190_v49 }
0x1793   :  { %v3211_v4 = vadd.f32 %v3203_v59, %v3196_v44  ;;  %v3212_v61 = vadd.f32 %v3204_v5, %v3197_v60  ;;  %v3213_v13 = vadd.f32 %v3205_v54, %v3198_v2  ;;  %v3214_v1 = vadd.f32 %v3206_v11, %v3199_v26 }
0x1795   :  { %v3216_v47 = vmax.f32 %v3212_v61, 0.0  ;;  %v3218_v12 = vmax.f32 %v3214_v1, 0.0  ;;  %v3215_v50 = vmax.f32 %v3211_v4, 0.0  ;;  %v3217_v37 = vmax.f32 %v3213_v13, 0.0 }
0x1797   :  { %v3223_v52 = vrot.slane %v3216_v47, 4  ;;  %v3224_v57 = vrot.slane %v3218_v12, 4 }
0x1799   :  { %v3225_v0 = vsel %vm1694_vm15, %v3215_v50, %v3223_v52  ;;  %v3226_v29 = vsel %vm1694_vm15, %v3217_v37, %v3224_v57 }
0x179a   :  { %3229 = vst [vmem:[%s5577_s8] sm:$0xff] %v3225_v0 }
0x179b   :  { %3230 = vst [vmem:[%s5577_s8 + $0x8] sm:$0xff] %v3226_v29 }

</bundles_post_ra>
